<compile_context>
chip_gen: v6e
topology: v6e:2x2x1
jax: 0.10.0
libtpu: 0.0.40
codegen_flags: <defaults>
</compile_context>

<pallas_src>
from functools import partial
import math

import numpy as np
import jax
import jax.numpy as jnp
from jax import lax
from jax.experimental import pallas as pl
from jax.experimental.pallas import tpu as pltpu


def _basic_conv_kernel(*refs, K, stride, dilation, tile_h, W_out,
                       C_in, C_out, C_out_pad, mh, hm):
    # refs (hm > 0):  x_main, x_halo, w, bias | out | band_scratch, acc_scratch
    # refs (hm == 0): x_main,         w, bias | out |               acc_scratch
    if hm > 0:
        x_main, x_halo, w_ref, bias_ref, o_ref, band_ref, acc_ref = refs
    else:
        x_main, w_ref, bias_ref, o_ref, acc_ref = refs
        x_halo = None
        band_ref = None

    # ---- assemble the input band (main rows + halo rows) in VMEM -----------
    if hm > 0:
        band_ref[0:mh, :, :] = x_main[...]
        band_ref[mh:mh + hm, :, :] = x_halo[...]
        src = band_ref
    else:
        src = x_main

    R = tile_h * W_out

    # ---- K*K accumulating MXU matmuls (per-tap contiguous ref slices) ------
    for kh in range(K):
        for kw in range(K):
            r0 = kh * dilation
            c0 = kw * dilation
            if stride == 1:
                win = src[r0:r0 + tile_h, c0:c0 + W_out, :]
            else:
                # TODO(synk): stride>1 falls back to an in-vreg strided slice;
                #             a strided DMA would be cheaper.
                full = src[r0:r0 + (tile_h - 1) * stride + 1,
                           c0:c0 + (W_out - 1) * stride + 1, :]
                win = lax.slice(full, (0, 0, 0), full.shape,
                                (stride, stride, 1))
            contrib = jnp.dot(win.reshape(R, C_in),
                              w_ref[kh * K + kw],
                              preferred_element_type=jnp.float32)
            if kh == 0 and kw == 0:
                acc_ref[...] = contrib          # first tap initialises
            else:
                acc_ref[...] += contrib

    # ---- fused BN bias + ReLU epilogue; store only the real channels -------
    y = acc_ref[...][:, :C_out] + bias_ref[...]
    y = jnp.maximum(y, 0.0)
    o_ref[...] = y.reshape(tile_h, W_out, C_out).astype(o_ref.dtype)


def _pick_tile_h(H_out, W_out, stride, hm, target_rows):
    """Output rows per band: a multiple of the halo-alignment unit, ~target_rows/W_out."""
    t_unit = hm // math.gcd(hm, stride) if hm > 0 else 1
    raw = max(1, target_rows // max(W_out, 1))
    tile_h = max(t_unit, (raw // t_unit) * t_unit)
    cap = -(-H_out // t_unit) * t_unit            # smallest multiple >= H_out
    return min(tile_h, cap)


@partial(jax.jit,
         static_argnames=("stride", "padding", "dilation", "eps", "target_rows"))
def basic_conv(x_nchw, weight_oihw, bn_gamma, bn_beta, bn_mean, bn_var, *,
               stride=1, padding=0, dilation=1, eps=1e-5, target_rows=256):
    """BasicConv forward: Conv2d(bias=False) -> BatchNorm2d(eval) -> ReLU.

    target_rows ~256 suits v6e/v7x (256-deep MXU); use ~128 on v5e.
    """
    N, C_in, H, W = x_nchw.shape
    C_out, C_in_w, K, K2 = weight_oihw.shape
    assert K == K2
    assert C_in_w == C_in  # TODO(synk): groups > 1 not implemented (module default groups=1)

    H_out = (H + 2 * padding - dilation * (K - 1) - 1) // stride + 1
    W_out = (W + 2 * padding - dilation * (K - 1) - 1) // stride + 1
    Wp = W + 2 * padding
    hm = (K - 1) * dilation                        # halo rows below each main block
    tile_h = _pick_tile_h(H_out, W_out, stride, hm, target_rows)
    mh = tile_h * stride                           # main block rows (multiple of hm)
    n_h = -(-H_out // tile_h)                      # cdiv: no exact-divisor cliff
    C_out_pad = ((C_out + 127) // 128) * 128       # MXU / accumulator lane width only

    # NCHW -> NHWC, spatial zero-pad; H padded so n_h main blocks + 1 halo block tile it.
    Hp_pad = (n_h + 1) * mh
    x_nhwc = jnp.transpose(x_nchw, (0, 2, 3, 1))
    x_pad = jnp.pad(
        x_nhwc,
        ((0, 0), (padding, Hp_pad - H - padding), (padding, padding), (0, 0)),
    ).astype(jnp.bfloat16)

    # Fold BatchNorm (running stats): scale into the weights (f32 fold, then
    # bf16 cast), bias as an f32 epilogue vector.
    inv_std = 1.0 / jnp.sqrt(bn_var.astype(jnp.float32) + eps)
    scale = bn_gamma.astype(jnp.float32) * inv_std                     # (C_out,)
    bias = bn_beta.astype(jnp.float32) - bn_mean.astype(jnp.float32) * scale
    w_f32 = weight_oihw.astype(jnp.float32) * scale[:, None, None, None]
    w_taps = jnp.transpose(w_f32, (2, 3, 1, 0)).reshape(K * K, C_in, C_out)
    w_taps = jnp.pad(w_taps, ((0, 0), (0, 0), (0, C_out_pad - C_out))).astype(jnp.bfloat16)
    bias = bias.reshape(1, C_out)

    kernel = partial(_basic_conv_kernel, K=K, stride=stride, dilation=dilation,
                     tile_h=tile_h, W_out=W_out, C_in=C_in, C_out=C_out,
                     C_out_pad=C_out_pad, mh=mh, hm=hm)

    in_specs = [
        # Main band: rows [h*mh, (h+1)*mh) — banded, auto-double-buffered.
        pl.BlockSpec((None, mh, Wp, C_in), lambda b, h: (b, h, 0, 0)),
    ]
    args = [x_pad]
    if hm > 0:
        halo_blocks_per_band = mh // hm            # exact: mh is a multiple of hm
        in_specs.append(
            pl.BlockSpec((None, hm, Wp, C_in),
                         lambda b, h: (b, (h + 1) * halo_blocks_per_band, 0, 0)))
        args.append(x_pad)
    in_specs += [
        pl.BlockSpec((K * K, C_in, C_out_pad), lambda b, h: (0, 0, 0)),
        pl.BlockSpec((1, C_out), lambda b, h: (0, 0)),
    ]
    args += [w_taps, bias]

    scratch_shapes = []
    if hm > 0:
        scratch_shapes.append(pltpu.VMEM((mh + hm, Wp, C_in), jnp.bfloat16))
    scratch_shapes.append(pltpu.VMEM((tile_h * W_out, C_out_pad), jnp.float32))

    out_nhwc = pl.pallas_call(
        kernel,
        # Only the real C_out channels hit HBM; rows are over-allocated to the
        # band grid and trimmed in the final (fused) slice + transpose.
        out_shape=jax.ShapeDtypeStruct((N, n_h * tile_h, W_out, C_out), x_nchw.dtype),
        grid=(N, n_h),
        in_specs=in_specs,
        out_specs=pl.BlockSpec((None, tile_h, W_out, C_out),
                               lambda b, h: (b, h, 0, 0)),
        scratch_shapes=scratch_shapes,
        compiler_params=pltpu.CompilerParams(
            dimension_semantics=("parallel", "parallel"),
            vmem_limit_bytes=64 * 1024 * 1024),
    )(*args)

    # Trim the band-rounded rows, back to NCHW.
    return jnp.transpose(out_nhwc[:, :H_out], (0, 3, 1, 2))


def _reference(x_nchw, weight_oihw, gamma, beta, mean, var,
               *, stride, padding, dilation, eps=1e-5):
    y = lax.conv_general_dilated(
        x_nchw.astype(jnp.float32), weight_oihw.astype(jnp.float32),
        window_strides=(stride, stride),
        padding=[(padding, padding), (padding, padding)],
        rhs_dilation=(dilation, dilation),
        dimension_numbers=('NCHW', 'OIHW', 'NCHW'))
    s = (gamma / jnp.sqrt(var + eps)).reshape(1, -1, 1, 1)
    b = (beta - mean * gamma / jnp.sqrt(var + eps)).reshape(1, -1, 1, 1)
    return jnp.maximum(y * s + b, 0.0)


if __name__ == "__main__":
    # BasicConv(in_planes=4, out_planes=8, kernel_size=3, stride=1, padding=1)
    N, C_in, H, W = 2, 4, 16, 16
    C_out, K = 8, 3
    stride, padding, dilation = 1, 1, 1

    key = jax.random.PRNGKey(0)
    kx, kw, kg, kb, km, kv = jax.random.split(key, 6)

    x = jax.random.normal(kx, (N, C_in, H, W), dtype=jnp.float32)
    weight = 0.1 * jax.random.normal(kw, (C_out, C_in, K, K), dtype=jnp.float32)
    gamma = 1.0 + 0.1 * jax.random.normal(kg, (C_out,), dtype=jnp.float32)
    beta = 0.1 * jax.random.normal(kb, (C_out,), dtype=jnp.float32)
    running_mean = 0.1 * jax.random.normal(km, (C_out,), dtype=jnp.float32)
    running_var = 1.0 + 0.1 * jax.random.uniform(kv, (C_out,), dtype=jnp.float32)

    out = basic_conv(x, weight, gamma, beta, running_mean, running_var,
                     stride=stride, padding=padding, dilation=dilation)
    out = jax.block_until_ready(out)

    ref = _reference(x, weight, gamma, beta, running_mean, running_var,
                     stride=stride, padding=padding, dilation=dilation)
    # bf16 matmul operands (f32 accumulation) + BN scale folded into bf16
    # weights -> slightly looser tolerance than a pure-f32 conv.
    np.testing.assert_allclose(np.asarray(out), np.asarray(ref), rtol=2e-2, atol=2e-2)
    assert out.shape == (N, C_out, H, W)

    print("KERNEL_OK")
</pallas_src>

<mosaic_0001>
module attributes {stable_mosaic.version = 11 : i64} {
  func.func @_basic_conv_kernel(%arg0: i32, %arg1: i32, %arg2: memref<1x16x18x4xbf16, #tpu.memory_space<vmem>>, %arg3: memref<1x2x18x4xbf16, #tpu.memory_space<vmem>>, %arg4: memref<9x4x128xbf16, #tpu.memory_space<vmem>>, %arg5: memref<1x8xf32, #tpu.memory_space<vmem>>, %arg6: memref<1x16x16x8xf32, #tpu.memory_space<vmem>>, %arg7: memref<18x18x4xbf16, #tpu.memory_space<vmem>>, %arg8: memref<256x128xf32, #tpu.memory_space<vmem>>) attributes {dimension_semantics = [#tpu.dimension_semantics<parallel>, #tpu.dimension_semantics<parallel>], iteration_bounds = array<i64: 2, 1>, scalar_prefetch = 0 : i64, scratch_operands = 2 : i64, tpu.core_type = #tpu.core_type<tc>, window_params = [{transform_indices = @transform_0, window_bounds = array<i64: 1, 16, 18, 4>}, {transform_indices = @transform_1, window_bounds = array<i64: 1, 2, 18, 4>}, {pipeline_mode = #tpu.pipeline_mode<synchronous>, transform_indices = @transform_2, window_bounds = array<i64: 9, 4, 128>}, {pipeline_mode = #tpu.pipeline_mode<synchronous>, transform_indices = @transform_3, window_bounds = array<i64: 1, 8>}, {transform_indices = @transform_4, window_bounds = array<i64: 1, 16, 16, 8>}]} {
    %c0 = arith.constant 0 : index
    %c0_0 = arith.constant 0 : index
    %c0_1 = arith.constant 0 : index
    %c0_2 = arith.constant 0 : index
    %0 = vector.load %arg2[%c0, %c0_0, %c0_1, %c0_2] : memref<1x16x18x4xbf16, #tpu.memory_space<vmem>>, vector<1x16x18x4xbf16>
    %1 = vector.shape_cast %0 : vector<1x16x18x4xbf16> to vector<16x18x4xbf16>
    %c0_3 = arith.constant 0 : index
    %c0_4 = arith.constant 0 : index
    %c0_5 = arith.constant 0 : index
    %2 = vector.load %arg7[%c0_3, %c0_4, %c0_5] : memref<18x18x4xbf16, #tpu.memory_space<vmem>>, vector<16x18x4xbf16>
    tpu.vector_store %arg7[%c0_3, %c0_4, %c0_5], %1 {strides = array<i32>} : memref<18x18x4xbf16, #tpu.memory_space<vmem>>, vector<16x18x4xbf16>,
    %c0_6 = arith.constant 0 : index
    %c0_7 = arith.constant 0 : index
    %c0_8 = arith.constant 0 : index
    %c0_9 = arith.constant 0 : index
    %3 = vector.load %arg3[%c0_6, %c0_7, %c0_8, %c0_9] : memref<1x2x18x4xbf16, #tpu.memory_space<vmem>>, vector<1x2x18x4xbf16>
    %4 = vector.shape_cast %3 : vector<1x2x18x4xbf16> to vector<2x18x4xbf16>
    %c16 = arith.constant 16 : index
    %c0_10 = arith.constant 0 : index
    %c0_11 = arith.constant 0 : index
    %5 = vector.load %arg7[%c16, %c0_10, %c0_11] : memref<18x18x4xbf16, #tpu.memory_space<vmem>>, vector<2x18x4xbf16>
    tpu.vector_store %arg7[%c16, %c0_10, %c0_11], %4 {strides = array<i32>} : memref<18x18x4xbf16, #tpu.memory_space<vmem>>, vector<2x18x4xbf16>,
    %c0_12 = arith.constant 0 : index
    %c0_13 = arith.constant 0 : index
    %c0_14 = arith.constant 0 : index
    %6 = vector.load %arg7[%c0_12, %c0_13, %c0_14] : memref<18x18x4xbf16, #tpu.memory_space<vmem>>, vector<16x16x4xbf16>
    %7 = vector.shape_cast %6 : vector<16x16x4xbf16> to vector<256x4xbf16>
    %c0_15 = arith.constant 0 : index
    %c0_16 = arith.constant 0 : index
    %c0_17 = arith.constant 0 : index
    %8 = vector.load %arg4[%c0_15, %c0_16, %c0_17] : memref<9x4x128xbf16, #tpu.memory_space<vmem>>, vector<1x4x128xbf16>
    %9 = vector.shape_cast %8 : vector<1x4x128xbf16> to vector<4x128xbf16>
    %cst = arith.constant dense<0.000000e+00> : vector<256x128xf32>
    %10 = tpu.matmul %7, %9, %cst {dimension_numbers = #tpu.dot_dimension_numbers<[1], [0], [0], [1], [0, 0, 1, 1], [], []>} : vector<256x4xbf16>, vector<4x128xbf16>, vector<256x128xf32> -> vector<256x128xf32>
    %c0_18 = arith.constant 0 : index
    %c0_19 = arith.constant 0 : index
    %11 = vector.load %arg8[%c0_18, %c0_19] : memref<256x128xf32, #tpu.memory_space<vmem>>, vector<256x128xf32>
    tpu.vector_store %arg8[%c0_18, %c0_19], %10 {strides = array<i32>} : memref<256x128xf32, #tpu.memory_space<vmem>>, vector<256x128xf32>,
    %c0_20 = arith.constant 0 : index
    %c1 = arith.constant 1 : index
    %c0_21 = arith.constant 0 : index
    %12 = vector.load %arg7[%c0_20, %c1, %c0_21] : memref<18x18x4xbf16, #tpu.memory_space<vmem>>, vector<16x16x4xbf16>
    %13 = vector.shape_cast %12 : vector<16x16x4xbf16> to vector<256x4xbf16>
    %c1_22 = arith.constant 1 : index
    %c0_23 = arith.constant 0 : index
    %c0_24 = arith.constant 0 : index
    %14 = vector.load %arg4[%c1_22, %c0_23, %c0_24] : memref<9x4x128xbf16, #tpu.memory_space<vmem>>, vector<1x4x128xbf16>
    %15 = vector.shape_cast %14 : vector<1x4x128xbf16> to vector<4x128xbf16>
    %cst_25 = arith.constant dense<0.000000e+00> : vector<256x128xf32>
    %16 = tpu.matmul %13, %15, %cst_25 {dimension_numbers = #tpu.dot_dimension_numbers<[1], [0], [0], [1], [0, 0, 1, 1], [], []>} : vector<256x4xbf16>, vector<4x128xbf16>, vector<256x128xf32> -> vector<256x128xf32>
    %c0_26 = arith.constant 0 : index
    %c0_27 = arith.constant 0 : index
    %17 = vector.load %arg8[%c0_26, %c0_27] : memref<256x128xf32, #tpu.memory_space<vmem>>, vector<256x128xf32>
    %18 = arith.addf %17, %16 : vector<256x128xf32>
    %c0_28 = arith.constant 0 : index
    %c0_29 = arith.constant 0 : index
    %19 = vector.load %arg8[%c0_28, %c0_29] : memref<256x128xf32, #tpu.memory_space<vmem>>, vector<256x128xf32>
    tpu.vector_store %arg8[%c0_28, %c0_29], %18 {strides = array<i32>} : memref<256x128xf32, #tpu.memory_space<vmem>>, vector<256x128xf32>,
    %c0_30 = arith.constant 0 : index
    %c2 = arith.constant 2 : index
    %c0_31 = arith.constant 0 : index
    %20 = vector.load %arg7[%c0_30, %c2, %c0_31] : memref<18x18x4xbf16, #tpu.memory_space<vmem>>, vector<16x16x4xbf16>
    %21 = vector.shape_cast %20 : vector<16x16x4xbf16> to vector<256x4xbf16>
    %c2_32 = arith.constant 2 : index
    %c0_33 = arith.constant 0 : index
    %c0_34 = arith.constant 0 : index
    %22 = vector.load %arg4[%c2_32, %c0_33, %c0_34] : memref<9x4x128xbf16, #tpu.memory_space<vmem>>, vector<1x4x128xbf16>
    %23 = vector.shape_cast %22 : vector<1x4x128xbf16> to vector<4x128xbf16>
    %cst_35 = arith.constant dense<0.000000e+00> : vector<256x128xf32>
    %24 = tpu.matmul %21, %23, %cst_35 {dimension_numbers = #tpu.dot_dimension_numbers<[1], [0], [0], [1], [0, 0, 1, 1], [], []>} : vector<256x4xbf16>, vector<4x128xbf16>, vector<256x128xf32> -> vector<256x128xf32>
    %c0_36 = arith.constant 0 : index
    %c0_37 = arith.constant 0 : index
    %25 = vector.load %arg8[%c0_36, %c0_37] : memref<256x128xf32, #tpu.memory_space<vmem>>, vector<256x128xf32>
    %26 = arith.addf %25, %24 : vector<256x128xf32>
    %c0_38 = arith.constant 0 : index
    %c0_39 = arith.constant 0 : index
    %27 = vector.load %arg8[%c0_38, %c0_39] : memref<256x128xf32, #tpu.memory_space<vmem>>, vector<256x128xf32>
    tpu.vector_store %arg8[%c0_38, %c0_39], %26 {strides = array<i32>} : memref<256x128xf32, #tpu.memory_space<vmem>>, vector<256x128xf32>,
    %c1_40 = arith.constant 1 : index
    %c0_41 = arith.constant 0 : index
    %c0_42 = arith.constant 0 : index
    %28 = vector.load %arg7[%c1_40, %c0_41, %c0_42] : memref<18x18x4xbf16, #tpu.memory_space<vmem>>, vector<16x16x4xbf16>
    %29 = vector.shape_cast %28 : vector<16x16x4xbf16> to vector<256x4xbf16>
    %c3 = arith.constant 3 : index
    %c0_43 = arith.constant 0 : index
    %c0_44 = arith.constant 0 : index
    %30 = vector.load %arg4[%c3, %c0_43, %c0_44] : memref<9x4x128xbf16, #tpu.memory_space<vmem>>, vector<1x4x128xbf16>
    %31 = vector.shape_cast %30 : vector<1x4x128xbf16> to vector<4x128xbf16>
    %cst_45 = arith.constant dense<0.000000e+00> : vector<256x128xf32>
    %32 = tpu.matmul %29, %31, %cst_45 {dimension_numbers = #tpu.dot_dimension_numbers<[1], [0], [0], [1], [0, 0, 1, 1], [], []>} : vector<256x4xbf16>, vector<4x128xbf16>, vector<256x128xf32> -> vector<256x128xf32>
    %c0_46 = arith.constant 0 : index
    %c0_47 = arith.constant 0 : index
    %33 = vector.load %arg8[%c0_46, %c0_47] : memref<256x128xf32, #tpu.memory_space<vmem>>, vector<256x128xf32>
    %34 = arith.addf %33, %32 : vector<256x128xf32>
    %c0_48 = arith.constant 0 : index
    %c0_49 = arith.constant 0 : index
    %35 = vector.load %arg8[%c0_48, %c0_49] : memref<256x128xf32, #tpu.memory_space<vmem>>, vector<256x128xf32>
    tpu.vector_store %arg8[%c0_48, %c0_49], %34 {strides = array<i32>} : memref<256x128xf32, #tpu.memory_space<vmem>>, vector<256x128xf32>,
    %c1_50 = arith.constant 1 : index
    %c1_51 = arith.constant 1 : index
    %c0_52 = arith.constant 0 : index
    %36 = vector.load %arg7[%c1_50, %c1_51, %c0_52] : memref<18x18x4xbf16, #tpu.memory_space<vmem>>, vector<16x16x4xbf16>
    %37 = vector.shape_cast %36 : vector<16x16x4xbf16> to vector<256x4xbf16>
    %c4 = arith.constant 4 : index
    %c0_53 = arith.constant 0 : index
    %c0_54 = arith.constant 0 : index
    %38 = vector.load %arg4[%c4, %c0_53, %c0_54] : memref<9x4x128xbf16, #tpu.memory_space<vmem>>, vector<1x4x128xbf16>
    %39 = vector.shape_cast %38 : vector<1x4x128xbf16> to vector<4x128xbf16>
    %cst_55 = arith.constant dense<0.000000e+00> : vector<256x128xf32>
    %40 = tpu.matmul %37, %39, %cst_55 {dimension_numbers = #tpu.dot_dimension_numbers<[1], [0], [0], [1], [0, 0, 1, 1], [], []>} : vector<256x4xbf16>, vector<4x128xbf16>, vector<256x128xf32> -> vector<256x128xf32>
    %c0_56 = arith.constant 0 : index
    %c0_57 = arith.constant 0 : index
    %41 = vector.load %arg8[%c0_56, %c0_57] : memref<256x128xf32, #tpu.memory_space<vmem>>, vector<256x128xf32>
    %42 = arith.addf %41, %40 : vector<256x128xf32>
    %c0_58 = arith.constant 0 : index
    %c0_59 = arith.constant 0 : index
    %43 = vector.load %arg8[%c0_58, %c0_59] : memref<256x128xf32, #tpu.memory_space<vmem>>, vector<256x128xf32>
    tpu.vector_store %arg8[%c0_58, %c0_59], %42 {strides = array<i32>} : memref<256x128xf32, #tpu.memory_space<vmem>>, vector<256x128xf32>,
    %c1_60 = arith.constant 1 : index
    %c2_61 = arith.constant 2 : index
    %c0_62 = arith.constant 0 : index
    %44 = vector.load %arg7[%c1_60, %c2_61, %c0_62] : memref<18x18x4xbf16, #tpu.memory_space<vmem>>, vector<16x16x4xbf16>
    %45 = vector.shape_cast %44 : vector<16x16x4xbf16> to vector<256x4xbf16>
    %c5 = arith.constant 5 : index
    %c0_63 = arith.constant 0 : index
    %c0_64 = arith.constant 0 : index
    %46 = vector.load %arg4[%c5, %c0_63, %c0_64] : memref<9x4x128xbf16, #tpu.memory_space<vmem>>, vector<1x4x128xbf16>
    %47 = vector.shape_cast %46 : vector<1x4x128xbf16> to vector<4x128xbf16>
    %cst_65 = arith.constant dense<0.000000e+00> : vector<256x128xf32>
    %48 = tpu.matmul %45, %47, %cst_65 {dimension_numbers = #tpu.dot_dimension_numbers<[1], [0], [0], [1], [0, 0, 1, 1], [], []>} : vector<256x4xbf16>, vector<4x128xbf16>, vector<256x128xf32> -> vector<256x128xf32>
    %c0_66 = arith.constant 0 : index
    %c0_67 = arith.constant 0 : index
    %49 = vector.load %arg8[%c0_66, %c0_67] : memref<256x128xf32, #tpu.memory_space<vmem>>, vector<256x128xf32>
    %50 = arith.addf %49, %48 : vector<256x128xf32>
    %c0_68 = arith.constant 0 : index
    %c0_69 = arith.constant 0 : index
    %51 = vector.load %arg8[%c0_68, %c0_69] : memref<256x128xf32, #tpu.memory_space<vmem>>, vector<256x128xf32>
    tpu.vector_store %arg8[%c0_68, %c0_69], %50 {strides = array<i32>} : memref<256x128xf32, #tpu.memory_space<vmem>>, vector<256x128xf32>,
    %c2_70 = arith.constant 2 : index
    %c0_71 = arith.constant 0 : index
    %c0_72 = arith.constant 0 : index
    %52 = vector.load %arg7[%c2_70, %c0_71, %c0_72] : memref<18x18x4xbf16, #tpu.memory_space<vmem>>, vector<16x16x4xbf16>
    %53 = vector.shape_cast %52 : vector<16x16x4xbf16> to vector<256x4xbf16>
    %c6 = arith.constant 6 : index
    %c0_73 = arith.constant 0 : index
    %c0_74 = arith.constant 0 : index
    %54 = vector.load %arg4[%c6, %c0_73, %c0_74] : memref<9x4x128xbf16, #tpu.memory_space<vmem>>, vector<1x4x128xbf16>
    %55 = vector.shape_cast %54 : vector<1x4x128xbf16> to vector<4x128xbf16>
    %cst_75 = arith.constant dense<0.000000e+00> : vector<256x128xf32>
    %56 = tpu.matmul %53, %55, %cst_75 {dimension_numbers = #tpu.dot_dimension_numbers<[1], [0], [0], [1], [0, 0, 1, 1], [], []>} : vector<256x4xbf16>, vector<4x128xbf16>, vector<256x128xf32> -> vector<256x128xf32>
    %c0_76 = arith.constant 0 : index
    %c0_77 = arith.constant 0 : index
    %57 = vector.load %arg8[%c0_76, %c0_77] : memref<256x128xf32, #tpu.memory_space<vmem>>, vector<256x128xf32>
    %58 = arith.addf %57, %56 : vector<256x128xf32>
    %c0_78 = arith.constant 0 : index
    %c0_79 = arith.constant 0 : index
    %59 = vector.load %arg8[%c0_78, %c0_79] : memref<256x128xf32, #tpu.memory_space<vmem>>, vector<256x128xf32>
    tpu.vector_store %arg8[%c0_78, %c0_79], %58 {strides = array<i32>} : memref<256x128xf32, #tpu.memory_space<vmem>>, vector<256x128xf32>,
    %c2_80 = arith.constant 2 : index
    %c1_81 = arith.constant 1 : index
    %c0_82 = arith.constant 0 : index
    %60 = vector.load %arg7[%c2_80, %c1_81, %c0_82] : memref<18x18x4xbf16, #tpu.memory_space<vmem>>, vector<16x16x4xbf16>
    %61 = vector.shape_cast %60 : vector<16x16x4xbf16> to vector<256x4xbf16>
    %c7 = arith.constant 7 : index
    %c0_83 = arith.constant 0 : index
    %c0_84 = arith.constant 0 : index
    %62 = vector.load %arg4[%c7, %c0_83, %c0_84] : memref<9x4x128xbf16, #tpu.memory_space<vmem>>, vector<1x4x128xbf16>
    %63 = vector.shape_cast %62 : vector<1x4x128xbf16> to vector<4x128xbf16>
    %cst_85 = arith.constant dense<0.000000e+00> : vector<256x128xf32>
    %64 = tpu.matmul %61, %63, %cst_85 {dimension_numbers = #tpu.dot_dimension_numbers<[1], [0], [0], [1], [0, 0, 1, 1], [], []>} : vector<256x4xbf16>, vector<4x128xbf16>, vector<256x128xf32> -> vector<256x128xf32>
    %c0_86 = arith.constant 0 : index
    %c0_87 = arith.constant 0 : index
    %65 = vector.load %arg8[%c0_86, %c0_87] : memref<256x128xf32, #tpu.memory_space<vmem>>, vector<256x128xf32>
    %66 = arith.addf %65, %64 : vector<256x128xf32>
    %c0_88 = arith.constant 0 : index
    %c0_89 = arith.constant 0 : index
    %67 = vector.load %arg8[%c0_88, %c0_89] : memref<256x128xf32, #tpu.memory_space<vmem>>, vector<256x128xf32>
    tpu.vector_store %arg8[%c0_88, %c0_89], %66 {strides = array<i32>} : memref<256x128xf32, #tpu.memory_space<vmem>>, vector<256x128xf32>,
    %c2_90 = arith.constant 2 : index
    %c2_91 = arith.constant 2 : index
    %c0_92 = arith.constant 0 : index
    %68 = vector.load %arg7[%c2_90, %c2_91, %c0_92] : memref<18x18x4xbf16, #tpu.memory_space<vmem>>, vector<16x16x4xbf16>
    %69 = vector.shape_cast %68 : vector<16x16x4xbf16> to vector<256x4xbf16>
    %c8 = arith.constant 8 : index
    %c0_93 = arith.constant 0 : index
    %c0_94 = arith.constant 0 : index
    %70 = vector.load %arg4[%c8, %c0_93, %c0_94] : memref<9x4x128xbf16, #tpu.memory_space<vmem>>, vector<1x4x128xbf16>
    %71 = vector.shape_cast %70 : vector<1x4x128xbf16> to vector<4x128xbf16>
    %cst_95 = arith.constant dense<0.000000e+00> : vector<256x128xf32>
    %72 = tpu.matmul %69, %71, %cst_95 {dimension_numbers = #tpu.dot_dimension_numbers<[1], [0], [0], [1], [0, 0, 1, 1], [], []>} : vector<256x4xbf16>, vector<4x128xbf16>, vector<256x128xf32> -> vector<256x128xf32>
    %c0_96 = arith.constant 0 : index
    %c0_97 = arith.constant 0 : index
    %73 = vector.load %arg8[%c0_96, %c0_97] : memref<256x128xf32, #tpu.memory_space<vmem>>, vector<256x128xf32>
    %74 = arith.addf %73, %72 : vector<256x128xf32>
    %c0_98 = arith.constant 0 : index
    %c0_99 = arith.constant 0 : index
    %75 = vector.load %arg8[%c0_98, %c0_99] : memref<256x128xf32, #tpu.memory_space<vmem>>, vector<256x128xf32>
    tpu.vector_store %arg8[%c0_98, %c0_99], %74 {strides = array<i32>} : memref<256x128xf32, #tpu.memory_space<vmem>>, vector<256x128xf32>,
    %c0_100 = arith.constant 0 : index
    %c0_101 = arith.constant 0 : index
    %76 = vector.load %arg8[%c0_100, %c0_101] : memref<256x128xf32, #tpu.memory_space<vmem>>, vector<256x128xf32>
    %77 = vector.extract_strided_slice %76 {offsets = [0, 0], sizes = [256, 8], strides = [1, 1]} : vector<256x128xf32> to vector<256x8xf32>
    %c0_102 = arith.constant 0 : index
    %c0_103 = arith.constant 0 : index
    %78 = vector.load %arg5[%c0_102, %c0_103] : memref<1x8xf32, #tpu.memory_space<vmem>>, vector<1x8xf32>
    %79 = vector.broadcast %78 : vector<1x8xf32> to vector<256x8xf32>
    %80 = arith.addf %77, %79 : vector<256x8xf32>
    %cst_104 = arith.constant 0.000000e+00 : f32
    %81 = vector.broadcast %cst_104 : f32 to vector<256x8xf32>
    %82 = arith.maximumf %80, %81 : vector<256x8xf32>
    %83 = vector.shape_cast %82 : vector<256x8xf32> to vector<16x16x8xf32>
    %c0_105 = arith.constant 0 : index
    %c0_106 = arith.constant 0 : index
    %c0_107 = arith.constant 0 : index
    %c0_108 = arith.constant 0 : index
    %84 = vector.load %arg6[%c0_105, %c0_106, %c0_107, %c0_108] : memref<1x16x16x8xf32, #tpu.memory_space<vmem>>, vector<1x16x16x8xf32>
    %85 = vector.shape_cast %84 : vector<1x16x16x8xf32> to vector<16x16x8xf32>
    %86 = vector.shape_cast %83 : vector<16x16x8xf32> to vector<1x16x16x8xf32>
    tpu.vector_store %arg6[%c0_105, %c0_106, %c0_107, %c0_108], %86 {strides = array<i32>} : memref<1x16x16x8xf32, #tpu.memory_space<vmem>>, vector<1x16x16x8xf32>,
    return
  }
  func.func @transform_0(%arg0: i32, %arg1: i32) -> (i32, i32, i32, i32) {
    %c0_i32 = arith.constant 0 : i32
    %c0_i32_0 = arith.constant 0 : i32
    %c0_i32_1 = arith.constant 0 : i32
    return %arg0, %arg1, %c0_i32, %c0_i32_0 : i32, i32, i32, i32
  }
  func.func @transform_1(%arg0: i32, %arg1: i32) -> (i32, i32, i32, i32) {
    %c1_i32 = arith.constant 1 : i32
    %0 = arith.addi %arg1, %c1_i32 : i32
    %c8_i32 = arith.constant 8 : i32
    %1 = arith.muli %0, %c8_i32 : i32
    %c0_i32 = arith.constant 0 : i32
    %c0_i32_0 = arith.constant 0 : i32
    %c0_i32_1 = arith.constant 0 : i32
    return %arg0, %1, %c0_i32, %c0_i32_0 : i32, i32, i32, i32
  }
  func.func @transform_2(%arg0: i32, %arg1: i32) -> (i32, i32, i32) {
    %c0_i32 = arith.constant 0 : i32
    %c0_i32_0 = arith.constant 0 : i32
    %c0_i32_1 = arith.constant 0 : i32
    %c0_i32_2 = arith.constant 0 : i32
    return %c0_i32, %c0_i32_0, %c0_i32_1 : i32, i32, i32
  }
  func.func @transform_3(%arg0: i32, %arg1: i32) -> (i32, i32) {
    %c0_i32 = arith.constant 0 : i32
    %c0_i32_0 = arith.constant 0 : i32
    %c0_i32_1 = arith.constant 0 : i32
    return %c0_i32, %c0_i32_0 : i32, i32
  }
  func.func @transform_4(%arg0: i32, %arg1: i32) -> (i32, i32, i32, i32) {
    %c0_i32 = arith.constant 0 : i32
    %c0_i32_0 = arith.constant 0 : i32
    %c0_i32_1 = arith.constant 0 : i32
    return %arg0, %arg1, %c0_i32, %c0_i32_0 : i32, i32, i32, i32
  }
}

</mosaic_0001>

<bundles_post_ra>
// kernel: basic_conv.1
= control target key start
LH: loop header
LB: loop body
LE: loop exit
PB: predicated region body
PF: predicated region fallthrough
CT: control target
= control target key end

     0   :  { %s6893_s15 = smov 0   ;;  %s6895_s16 = smov 0   ;;  %s8453_s0 = inlined_call_operand.vmem [shape: bf16[2,32,18,4], index: 0, kind: input, shape index: {}, may-alias: {0,1}]   ;;  %s8454_s1 = inlined_call_operand.vmem [shape: bf16[2,32,18,4], index: 1, kind: input, shape index: {}, may-alias: {0,1}]   ;;  %s8455_s2 = inlined_call_operand.vmem [shape: bf16[9,4,128], index: 2, kind: input, shape index: {}]   ;;  %s8456_s3 = inlined_call_operand.vmem [shape: f32[1,8], index: 3, kind: input, shape index: {}]   ;;  %s8457_s4 = inlined_call_operand.vmem [shape: f32[2,16,16,8], index: 4, kind: output, shape index: {}]  }
   0x1   :  { %s6897_s17 = smov 0  }
   0x2 LB: > { %s26_s18 = sadd.s32 1, %s6862_s16  ;;  %p5943_p0 = scmp.ge.s32.totalorder %s6866_s17, 1  ;;  %s6866_s17 = sphi %s6897_s17, %s14_s17   ;;  %s6862_s16 = sphi %s6895_s16, %s8566_s16   ;;  %s6858_s15 = sphi %s6893_s15, %s8565_s15  }
   0x3   : > { %p28_p1 = scmp.ge.s32.totalorder %s26_s18, 2  ;;  %p210_p2 = scmp.lt.s32.totalorder %s6866_s17, 3 }
   0x5   : > { %s8568_s18 = smov (%p28_p1, %s26_s18), 0  ;;  %p211_p3 = pnand %p5943_p0, %p210_p2 }
   0x7   : > { %214 = sbr.rel (%p211_p3) target bundleno = 571 (0x23b), region = 36 }
   0xc   : > { %v439_v0 = vld [vmem:[%s8455_s2] sm:$0x3]  ;;  %vm569_vm0 = vcmask 1041408   ;;  %p259_p4 = scmp.lt.s32.totalorder %s6858_s15, 1  ;;  %v6920_v2 = vld [vmem:[%s8455_s2 + $0x2] sm:$0x3] }
   0xd   : > { %6760 = vmatprep.subr.msk.bf16.mxu1 %vm569_vm0, %v439_v0  ;;  %6759 = vmatprep.subr.msk.bf16.mxu0 %vm569_vm0, %v439_v0  ;;  %v571_v1 = vsel %vm569_vm0, %v439_v0, 0  ;;  %v6029_v3 = vld [vmem:[%s8455_s2 + $0x4] sm:$0x3]  ;;  %vm344_vm1 = vcmask 27648   ;;  %vm520_vm2 = vcmask 31744   ;;  %v1300_v34 = vsel %vm569_vm0, %v6920_v2, 0 }
   0xe   : > { %6758 = vmatpush3.bf16.msra.mxu1 %v571_v1  ;;  %6452 = vmatpush3.bf16.msra.mxu0 %v571_v1  ;;  %s8570_s15 = smov (!%p259_p4, %s6858_s15), 1  ;;  %v1869_v31 = vsel %vm569_vm0, %v6029_v3, 0  ;;  %v6062_v32 = vld [vmem:[%s8455_s2 + $0x6] sm:$0x3]  ;;  %v6997_v35 = vld [vmem:[%s8455_s2 + $0x8] sm:$0x3] }
   0xf   : > { %6761 = vmatprep.subr.msk.bf16.mxu1 %vm569_vm0, %v6920_v2  ;;  %6762 = vmatprep.subr.msk.bf16.mxu0 %vm569_vm0, %v6029_v3  ;;  %s6769_s25 = smul.u32 384, %s8570_s15  ;;  %vm814_vm3 = vsmask.f32 3328  ;;  %vm815_vm4 = vsmask.f32 7440  ;;  %vm347_vm5 = vcmask 24576  }
  0x10   : > { %vm1655_vm6 = vcmask 1042432   ;;  %vm1656_vm7 = vcmask 1046532   ;;  %v7007_v42 = vsel %vm569_vm0, %v6062_v32, 0  ;;  %vm7034_vm8 = vmor %vm814_vm3, %vm815_vm4  ;;  %vm5789_vm10 = vcmask 64512  }
  0x11   : > { %s6936_s28 = scalar_lea.vmem %s8453_s0, %s6769_s25  ;;  %vm7041_vm9 = vmor %vm1655_vm6, %vm1656_vm7  ;;  %s6296_s11 = sadd.s32 192, %s6769_s25 }
  0x12   : > { %v296_v4 = vld [vmem:[%s6936_s28] sm:$0xf]  ;;  %v297_v5 = vld [vmem:[%s6936_s28 + $0x4] sm:$0xf]  ;;  %v299_v8 = vld [vmem:[%s6936_s28 + $0xc] sm:$0xf]  ;;  %s7314_s14 = scalar_lea.vmem %s8454_s1, %s6296_s11 }
  0x13   : > { %v320_v6 = vld [vmem:[%s6936_s28 + $0x60] sm:$0xf]  ;;  %345 = vst.msk [vmem:[#allocation2] sm:$0xf] %vm344_vm1, %v296_v4  ;;  %346 = vst.msk [vmem:[#allocation2 + $0x4] sm:$0xf] %vm344_vm1, %v297_v5 }
  0x14   : > { %v321_v7 = vld [vmem:[%s6936_s28 + $0x64] sm:$0xf]  ;;  %370 = vst.msk [vmem:[#allocation2 + $0x60] sm:$0xf] %vm344_vm1, %v320_v6  ;;  %v300_v9 = vld [vmem:[%s6936_s28 + $0x10] sm:$0xf] }
  0x15   : > { %371 = vst.msk [vmem:[#allocation2 + $0x64] sm:$0xf] %vm344_vm1, %v321_v7  ;;  %349 = vst.msk [vmem:[#allocation2 + $0xc] sm:$0xf] %vm344_vm1, %v299_v8  ;;  %v323_v10 = vld [vmem:[%s6936_s28 + $0x6c] sm:$0xf] }
  0x16   : > { %350 = vst.msk [vmem:[#allocation2 + $0x10] sm:$0xf] %vm344_vm1, %v300_v9  ;;  %v324_v11 = vld [vmem:[%s6936_s28 + $0x70] sm:$0xf]  ;;  %v302_v12 = vld [vmem:[%s6936_s28 + $0x18] sm:$0xf] }
  0x17   : > { %373 = vst.msk [vmem:[#allocation2 + $0x6c] sm:$0xf] %vm344_vm1, %v323_v10  ;;  %374 = vst.msk [vmem:[#allocation2 + $0x70] sm:$0xf] %vm344_vm1, %v324_v11  ;;  %v303_v13 = vld [vmem:[%s6936_s28 + $0x1c] sm:$0xf] }
  0x18   : > { %352 = vst.msk [vmem:[#allocation2 + $0x18] sm:$0xf] %vm344_vm1, %v302_v12  ;;  %v326_v14 = vld [vmem:[%s6936_s28 + $0x78] sm:$0xf]  ;;  %v327_v15 = vld [vmem:[%s6936_s28 + $0x7c] sm:$0xf] }
  0x19   : > { %353 = vst.msk [vmem:[#allocation2 + $0x1c] sm:$0xf] %vm344_vm1, %v303_v13  ;;  %376 = vst.msk [vmem:[#allocation2 + $0x78] sm:$0xf] %vm344_vm1, %v326_v14  ;;  %v305_v16 = vld [vmem:[%s6936_s28 + $0x24] sm:$0xf] }
  0x1a   : > { %377 = vst.msk [vmem:[#allocation2 + $0x7c] sm:$0xf] %vm344_vm1, %v327_v15  ;;  %v306_v17 = vld [vmem:[%s6936_s28 + $0x28] sm:$0xf]  ;;  %v329_v18 = vld [vmem:[%s6936_s28 + $0x84] sm:$0xf] }
  0x1b   : > { %355 = vst.msk [vmem:[#allocation2 + $0x24] sm:$0xf] %vm344_vm1, %v305_v16  ;;  %356 = vst.msk [vmem:[#allocation2 + $0x28] sm:$0xf] %vm344_vm1, %v306_v17  ;;  %v330_v19 = vld [vmem:[%s6936_s28 + $0x88] sm:$0xf] }
  0x1c   : > { %379 = vst.msk [vmem:[#allocation2 + $0x84] sm:$0xf] %vm344_vm1, %v329_v18  ;;  %v308_v20 = vld [vmem:[%s6936_s28 + $0x30] sm:$0xf]  ;;  %v309_v21 = vld [vmem:[%s6936_s28 + $0x34] sm:$0xf] }
  0x1d   : > { %380 = vst.msk [vmem:[#allocation2 + $0x88] sm:$0xf] %vm344_vm1, %v330_v19  ;;  %358 = vst.msk [vmem:[#allocation2 + $0x30] sm:$0xf] %vm344_vm1, %v308_v20  ;;  %v332_v22 = vld [vmem:[%s6936_s28 + $0x90] sm:$0xf] }
  0x1e   : > { %359 = vst.msk [vmem:[#allocation2 + $0x34] sm:$0xf] %vm344_vm1, %v309_v21  ;;  %v333_v23 = vld [vmem:[%s6936_s28 + $0x94] sm:$0xf]  ;;  %v311_v24 = vld [vmem:[%s6936_s28 + $0x3c] sm:$0xf] }
  0x1f   : > { %382 = vst.msk [vmem:[#allocation2 + $0x90] sm:$0xf] %vm344_vm1, %v332_v22  ;;  %383 = vst.msk [vmem:[#allocation2 + $0x94] sm:$0xf] %vm344_vm1, %v333_v23  ;;  %v312_v25 = vld [vmem:[%s6936_s28 + $0x40] sm:$0xf] }
  0x20   : > { %361 = vst.msk [vmem:[#allocation2 + $0x3c] sm:$0xf] %vm344_vm1, %v311_v24  ;;  %v335_v26 = vld [vmem:[%s6936_s28 + $0x9c] sm:$0xf]  ;;  %v336_v27 = vld [vmem:[%s6936_s28 + $0xa0] sm:$0xf] }
  0x21   : > { %v6796_v28 = vld [vmem:[#allocation2] sm:$0xff]   ;;  %362 = vst.msk [vmem:[#allocation2 + $0x40] sm:$0xf] %vm344_vm1, %v312_v25  ;;  %385 = vst.msk [vmem:[#allocation2 + $0x9c] sm:$0xf] %vm344_vm1, %v335_v26  ;;  %v6798_v30 = vld [vmem:[#allocation2 + $0xc] sm:$0xff]  }
  0x22   : > { %386 = vst.msk [vmem:[#allocation2 + $0xa0] sm:$0xf] %vm344_vm1, %v336_v27  ;;  %v6797_v29 = vld [vmem:[#allocation2 + $0x60] sm:$0xff]   ;;  %6453 = vmatprep.mubr.msk.bf16.mxu0 %vm520_vm2, %v6796_v28  ;;  %v6799_v33 = vld [vmem:[#allocation2 + $0x6c] sm:$0xff]   ;;  %v6800_v36 = vld [vmem:[#allocation2 + $0x18] sm:$0xff]   ;;  %s6297_s25 = sshll.u32 %s8570_s15, 8 }
  0x23   : > { %6469 = vmatprep.mubr.msk.bf16.mxu1 %vm520_vm2, %v6797_v29  ;;  %6454 = vmatmul.mubr.msk.bf16.vlgmr.msra.gmra.mxu0 %vm520_vm2, %v6798_v30  ;;  %v6801_v37 = vld [vmem:[#allocation2 + $0x78] sm:$0xff]   ;;  %v6802_v38 = vld [vmem:[#allocation2 + $0x24] sm:$0xff]   ;;  %v315_v44 = vld [vmem:[%s6936_s28 + $0x4c] sm:$0xf]  ;;  %s8289_s27 = scalar_lea.vmem %s8457_s4, %s6297_s25 }
  0x24   : > { %6470 = vmatmul.mubr.msk.bf16.vlgmr.msra.gmra.mxu1 %vm520_vm2, %v6799_v33  ;;  %6520 = vmatpush3.bf16.msra.mxu0 %v1869_v31  ;;  %v6803_v39 = vld [vmem:[#allocation2 + $0x84] sm:$0xff]   ;;  %365 = vst.msk [vmem:[#allocation2 + $0x4c] sm:$0xf] %vm344_vm1, %v315_v44  ;;  %v339_v46 = vld [vmem:[%s6936_s28 + $0xac] sm:$0xf] }
  0x25   : > { %6486 = vmatpush3.bf16.msra.mxu1 %v1300_v34  ;;  %6457 = vmatprep.mubr.msk.bf16.mxu0 %vm520_vm2, %v6800_v36  ;;  %v6804_v40 = vld [vmem:[#allocation2 + $0x30] sm:$0xff]   ;;  %v314_v43 = vld [vmem:[%s6936_s28 + $0x48] sm:$0xf]  ;;  %v318_v48 = vld [vmem:[%s6936_s28 + $0x58] sm:$0xf] }
  0x26   : > { %6473 = vmatprep.mubr.msk.bf16.mxu1 %vm520_vm2, %v6801_v37  ;;  %6763 = vmatprep.subr.msk.bf16.mxu1 %vm569_vm0, %v6062_v32  ;;  %v6805_v41 = vld [vmem:[#allocation2 + $0x90] sm:$0xff]   ;;  %v338_v45 = vld [vmem:[%s6936_s28 + $0xa8] sm:$0xf]  ;;  %364 = vst.msk [vmem:[#allocation2 + $0x48] sm:$0xf] %vm344_vm1, %v314_v43 }
  0x27   : > { %6764 = vmatprep.subr.msk.bf16.mxu0 %vm569_vm0, %v6997_v35  ;;  %388 = vst.msk [vmem:[#allocation2 + $0xa8] sm:$0xf] %vm344_vm1, %v338_v45  ;;  %v317_v47 = vld [vmem:[%s6936_s28 + $0x54] sm:$0xf]  ;;  %389 = vst.msk [vmem:[#allocation2 + $0xac] sm:$0xf] %vm344_vm1, %v339_v46 }
  0x28   : > { %v6806_v49 = vld [vmem:[#allocation2 + $0x3c] sm:$0xff]   ;;  %367 = vst.msk [vmem:[#allocation2 + $0x54] sm:$0xf] %vm344_vm1, %v317_v47  ;;  %368 = vst.msk [vmem:[#allocation2 + $0x58] sm:$0xf] %vm344_vm1, %v318_v48 }
  0x29   : > { %v341_v50 = vld [vmem:[%s6936_s28 + $0xb4] sm:$0xf]  ;;  %v342_v51 = vld [vmem:[%s6936_s28 + $0xb8] sm:$0xf]  ;;  %v298_v52 = vld [vmem:[%s6936_s28 + $0x8] sm:$0x1] }
  0x2a   : > { %391 = vst.msk [vmem:[#allocation2 + $0xb4] sm:$0xf] %vm344_vm1, %v341_v50  ;;  %392 = vst.msk [vmem:[#allocation2 + $0xb8] sm:$0xf] %vm344_vm1, %v342_v51  ;;  %v766_v53 = vld [vmem:[#allocation2] sm:$0xf] }
  0x2b   : > { %6458 = vmatmul.mubr.msk.bf16.gmra.mxu0 %vm520_vm2, %v6802_v38  ;;  %348 = vst.msk [vmem:[#allocation2 + $0x8] sm:$0x1] %vm347_vm5, %v298_v52  ;;  %v767_v54 = vld [vmem:[#allocation2 + $0x4] sm:$0xf]  ;;  %v1559_v55 = vld [vmem:[#allocation2] sm:$0xe] }
  0x2c   : > { %6474 = vmatmul.mubr.msk.bf16.gmra.mxu1 %vm520_vm2, %v6803_v39  ;;  %6461 = vmatprep.mubr.msk.bf16.mxu0 %vm520_vm2, %v6804_v40  ;;  %v818_v56 = vshrl.u32 %v766_v53, 16  ;;  %v821_v57 = vshll.u32 %v766_v53, 16  ;;  %v827_v58 = vshll.u32 %v767_v54, 16  ;;  %v831_v59 = vshrl.u32 %v767_v54, 16  ;;  %v1560_v60 = vld [vmem:[#allocation2 + $0x4] sm:$0xf] }
  0x2d   : > { %6477 = vmatprep.mubr.msk.bf16.mxu1 %vm520_vm2, %v6805_v41  ;;  %v6807_v61 = vld [vmem:[#allocation2 + $0x9c] sm:$0xff]   ;;  %v1660_v62 = vrot.slane %v1560_v60, 5  ;;  %v301_v63 = vld [vmem:[%s6936_s28 + $0x14] sm:$0x1]  ;;  %v769_v0 = vld [vmem:[#allocation2 + $0xc] sm:$0xf] }
  0x2e   : > { %v820_v2 = vrot.slane %v818_v56, 4  ;;  %v823_v3 = vrot.slane %v821_v57, 5  ;;  %v829_v4 = vrot.slane %v827_v58, 5  ;;  %v833_v5 = vrot.slane %v831_v59, 4  ;;  %351 = vst.msk [vmem:[#allocation2 + $0x14] sm:$0x1] %vm347_vm5, %v301_v63 }
  0x2f   : > { %v770_v6 = vld [vmem:[#allocation2 + $0x10] sm:$0xf]  ;;  %v6013_v8 = vrot.slane %v1559_v55, 9  ;;  %v1662_v9 = vrot.slane %v1660_v62, 4  ;;  %v842_v10 = vshrl.u32 %v769_v0, 16  ;;  %v845_v11 = vshll.u32 %v769_v0, 16 }
  0x30   : > { %v6808_v12 = vld [vmem:[#allocation2 + $0x48] sm:$0xff]   ;;  %v824_v13 = vor.u32 %v823_v3, %v820_v2  ;;  %v834_v14 = vor.u32 %v833_v5, %v829_v4  ;;  %v851_v15 = vshll.u32 %v770_v6, 16  ;;  %v6810_v19 = vld [vmem:[#allocation2 + $0x54] sm:$0xff]   ;;  %v855_v31 = vshrl.u32 %v770_v6, 16  ;;  %v1563_v37 = vld [vmem:[#allocation2 + $0x10] sm:$0xf] }
  0x31   : > { %v1562_v16 = vld [vmem:[#allocation2 + $0xc] sm:$0xe]  ;;  %v844_v18 = vrot.slane %v842_v10, 4  ;;  %v6811_v21 = vld [vmem:[#allocation2 + $0xb4] sm:$0xff]   ;;  %v1661_v25 = vsel %vm7041_vm9, %v6013_v8, %v1660_v62  ;;  %v847_v26 = vrot.slane %v845_v11, 5  ;;  %v7055_v39 = vsel %vm569_vm0, %v6997_v35, 0 }
  0x32   : > { %v6809_v17 = vld [vmem:[#allocation2 + $0xa8] sm:$0xff]   ;;  %v825_v20 = vrot.slane %v824_v13, 4  ;;  %v835_v22 = vrot.slane %v834_v14, 4  ;;  %v853_v27 = vrot.slane %v851_v15, 5  ;;  %v6014_v32 = vrot.slane %v1562_v16, 9 }
  0x33   : > { %6462 = vmatmul.mubr.msk.bf16.gmra.mxu0 %vm520_vm2, %v6806_v49  ;;  %v768_v23 = vld [vmem:[#allocation2 + $0x8] sm:$0x1]  ;;  %v848_v34 = vor.u32 %v847_v26, %v844_v18  ;;  %v857_v43 = vrot.slane %v855_v31, 4  ;;  %v1667_v44 = vrot.slane %v1563_v37, 5  ;;  %v304_v45 = vld [vmem:[%s6936_s28 + $0x20] sm:$0x1] }
  0x34   : > { %6478 = vmatmul.mubr.msk.bf16.gmra.mxu1 %vm520_vm2, %v6807_v61  ;;  %6465 = vmatprep.mubr.msk.bf16.mxu0 %vm520_vm2, %v6808_v12  ;;  %v1561_v24 = vld [vmem:[#allocation2 + $0x8] sm:$0x1]  ;;  %v837_v28 = vshll.u32 %v768_v23, 16  ;;  %v830_v33 = vsel %vm7034_vm8, %v825_v20, %v829_v4  ;;  %354 = vst.msk [vmem:[#allocation2 + $0x20] sm:$0x1] %vm347_vm5, %v304_v45 }
  0x35   : > { %6481 = vmatprep.mubr.msk.bf16.mxu1 %vm520_vm2, %v6809_v17  ;;  %v1663_v29 = vrot.slane %v1561_v24, 5  ;;  %v771_v30 = vld [vmem:[#allocation2 + $0x14] sm:$0x1]  ;;  %v849_v47 = vrot.slane %v848_v34, 4  ;;  %v772_v50 = vld [vmem:[#allocation2 + $0x18] sm:$0xf]  ;;  %v858_v51 = vor.u32 %v857_v43, %v853_v27  ;;  %v1668_v52 = vsel %vm7041_vm9, %v6014_v32, %v1667_v44 }
  0x36   : > { %v861_v36 = vshll.u32 %v771_v30, 16  ;;  %v1564_v38 = vld [vmem:[#allocation2 + $0x14] sm:$0x1]  ;;  %v839_v40 = vrot.slane %v837_v28, 5  ;;  %v1669_v53 = vrot.slane %v1667_v44, 4  ;;  %v866_v58 = vshrl.u32 %v772_v50, 16 }
  0x37   : > { %v1664_v41 = vsel %vm7041_vm9, %v1662_v9, %v1663_v29  ;;  %v1670_v49 = vrot.slane %v1564_v38, 5  ;;  %v773_v54 = vld [vmem:[#allocation2 + $0x1c] sm:$0xf]  ;;  %v1565_v55 = vld [vmem:[#allocation2 + $0x18] sm:$0xe]  ;;  %v854_v57 = vsel %vm7034_vm8, %v849_v47, %v853_v27  ;;  %v869_v59 = vshll.u32 %v772_v50, 16 }
  0x38   : > { %v6030_v46 = vcombine.low %v1661_v25, %v1664_v41  ;;  %v863_v48 = vrot.slane %v861_v36, 5  ;;  %v840_v35 = vsel %vm7034_vm8, %v835_v22, %v839_v40  ;;  %v1566_v60 = vld [vmem:[#allocation2 + $0x1c] sm:$0xf]  ;;  %v307_v61 = vld [vmem:[%s6936_s28 + $0x2c] sm:$0x1]  ;;  %v859_v62 = vrot.slane %v858_v51, 4 }
  0x39   : > { %v5981_v56 = vcombine.low %v830_v33, %v840_v35  ;;  %v1671_v63 = vsel %vm7041_vm9, %v1669_v53, %v1670_v49  ;;  %v875_v0 = vshll.u32 %v773_v54, 16  ;;  %v879_v2 = vshrl.u32 %v773_v54, 16  ;;  %357 = vst.msk [vmem:[#allocation2 + $0x2c] sm:$0x1] %vm347_vm5, %v307_v61  ;;  %v775_v3 = vld [vmem:[#allocation2 + $0x24] sm:$0xf] }
  0x3a   : > { %v6031_v4 = vcombine.low %v1668_v52, %v1671_v63  ;;  %v868_v5 = vrot.slane %v866_v58, 4  ;;  %v871_v6 = vrot.slane %v869_v59, 5  ;;  %v6015_v8 = vrot.slane %v1565_v55, 9  ;;  %v776_v9 = vld [vmem:[#allocation2 + $0x28] sm:$0xf] }
  0x3b   : > { %6466 = vmatmul.mubr.msk.bf16.gmra.mxu0 %vm520_vm2, %v6810_v19  ;;  %v864_v10 = vsel %vm7034_vm8, %v859_v62, %v863_v48  ;;  %v877_v11 = vrot.slane %v875_v0, 5  ;;  %v881_v12 = vrot.slane %v879_v2, 4  ;;  %v1674_v13 = vrot.slane %v1566_v60, 5  ;;  %v1568_v18 = vld [vmem:[#allocation2 + $0x24] sm:$0xe] }
  0x3c   : > { %6482 = vmatmul.mubr.msk.bf16.gmra.mxu1 %vm520_vm2, %v6811_v21  ;;  %6521 = vmatprep.mubr.msk.bf16.mxu0 %vm520_vm2, %v6030_v46  ;;  %v5982_v14 = vcombine.low %v854_v57, %v864_v10  ;;  %v872_v15 = vor.u32 %v871_v6, %v868_v5  ;;  %v890_v16 = vshrl.u32 %v775_v3, 16  ;;  %v893_v17 = vshll.u32 %v775_v3, 16  ;;  %v310_v19 = vld [vmem:[%s6936_s28 + $0x38] sm:$0x1]  ;;  %v774_v20 = vld [vmem:[#allocation2 + $0x20] sm:$0x1] }
  0x3d   : > { %6487 = vmatprep.mubr.msk.bf16.mxu1 %vm520_vm2, %v5981_v56  ;;  %v882_v21 = vor.u32 %v881_v12, %v877_v11  ;;  %v1567_v22 = vld [vmem:[#allocation2 + $0x20] sm:$0x1]  ;;  %v1675_v23 = vsel %vm7041_vm9, %v6015_v8, %v1674_v13  ;;  %v1676_v24 = vrot.slane %v1674_v13, 4  ;;  %v899_v25 = vshll.u32 %v776_v9, 16  ;;  %360 = vst.msk [vmem:[#allocation2 + $0x38] sm:$0x1] %vm347_vm5, %v310_v19 }
  0x3e   : > { %v873_v26 = vrot.slane %v872_v15, 4  ;;  %v885_v27 = vshll.u32 %v774_v20, 16  ;;  %v1677_v28 = vrot.slane %v1567_v22, 5  ;;  %v892_v29 = vrot.slane %v890_v16, 4  ;;  %v1569_v30 = vld [vmem:[#allocation2 + $0x28] sm:$0xf] }
  0x3f   : > { %v883_v31 = vrot.slane %v882_v21, 4  ;;  %v895_v32 = vrot.slane %v893_v17, 5  ;;  %v901_v33 = vrot.slane %v899_v25, 5  ;;  %v903_v34 = vshrl.u32 %v776_v9, 16  ;;  %v778_v36 = vld [vmem:[#allocation2 + $0x30] sm:$0xf] }
  0x40   : > { %v878_v37 = vsel %vm7034_vm8, %v873_v26, %v877_v11  ;;  %v887_v38 = vrot.slane %v885_v27, 5  ;;  %v1678_v40 = vsel %vm7041_vm9, %v1676_v24, %v1677_v28  ;;  %v777_v41 = vld [vmem:[#allocation2 + $0x2c] sm:$0x1]  ;;  %v6016_v44 = vrot.slane %v1568_v18, 9  ;;  %v779_v48 = vld [vmem:[#allocation2 + $0x34] sm:$0xf] }
  0x41   : > { %v1570_v43 = vld [vmem:[#allocation2 + $0x2c] sm:$0x1]  ;;  %v6032_v45 = vcombine.low %v1675_v23, %v1678_v40  ;;  %v905_v46 = vrot.slane %v903_v34, 4  ;;  %v909_v47 = vshll.u32 %v777_v41, 16  ;;  %v914_v35 = vshrl.u32 %v778_v36, 16 }
  0x42   : > { %v888_v49 = vsel %vm7034_vm8, %v883_v31, %v887_v38  ;;  %v1684_v50 = vrot.slane %v1570_v43, 5  ;;  %v313_v51 = vld [vmem:[%s6936_s28 + $0x44] sm:$0x1]  ;;  %v1571_v56 = vld [vmem:[#allocation2 + $0x30] sm:$0xe]  ;;  %v917_v62 = vshll.u32 %v778_v36, 16 }
  0x43   : > { %6522 = vmatmul.mubr.msk.bf16.vlgmr.msra.gmra.mxu0 %vm520_vm2, %v6031_v4  ;;  %v5983_v52 = vcombine.low %v878_v37, %v888_v49  ;;  %v906_v54 = vor.u32 %v905_v46, %v901_v33  ;;  %v911_v55 = vrot.slane %v909_v47, 5  ;;  %v1572_v57 = vld [vmem:[#allocation2 + $0x34] sm:$0xf]  ;;  %363 = vst.msk [vmem:[#allocation2 + $0x44] sm:$0x1] %vm347_vm5, %v313_v51  ;;  %v916_v61 = vrot.slane %v914_v35, 4 }
  0x44   : > { %6488 = vmatmul.mubr.msk.bf16.vlgmr.msra.gmra.mxu1 %vm520_vm2, %v5982_v14  ;;  %6588 = vmatpush3.bf16.msra.mxu0 %v7055_v39  ;;  %v896_v39 = vor.u32 %v895_v32, %v892_v29  ;;  %v780_v60 = vld [vmem:[#allocation2 + $0x38] sm:$0x1]  ;;  %v923_v2 = vshll.u32 %v779_v48, 16  ;;  %v927_v3 = vshrl.u32 %v779_v48, 16  ;;  %v781_v4 = vld [vmem:[#allocation2 + $0x3c] sm:$0xf] }
  0x45   : > { %6554 = vmatpush3.bf16.msra.mxu1 %v7007_v42  ;;  %v1681_v42 = vrot.slane %v1569_v30, 5  ;;  %6525 = vmatprep.mubr.msk.bf16.mxu0 %vm520_vm2, %v6032_v45  ;;  %v907_v0 = vrot.slane %v906_v54, 4  ;;  %v919_v6 = vrot.slane %v917_v62, 5  ;;  %v933_v8 = vshll.u32 %v780_v60, 16  ;;  %v1573_v9 = vld [vmem:[#allocation2 + $0x38] sm:$0x1] }
  0x46   : > { %v897_v53 = vrot.slane %v896_v39, 4  ;;  %6491 = vmatprep.mubr.msk.bf16.mxu1 %vm520_vm2, %v5983_v52  ;;  %v6017_v10 = vrot.slane %v1571_v56, 9  ;;  %v925_v13 = vrot.slane %v923_v2, 5  ;;  %v929_v14 = vrot.slane %v927_v3, 4  ;;  %v782_v15 = vld [vmem:[#allocation2 + $0x40] sm:$0xf] }
  0x47   : > { %v1682_v58 = vsel %vm7041_vm9, %v6016_v44, %v1681_v42  ;;  %v1683_v59 = vrot.slane %v1681_v42, 4  ;;  %v912_v11 = vsel %vm7034_vm8, %v907_v0, %v911_v55  ;;  %v316_v16 = vld [vmem:[%s6936_s28 + $0x50] sm:$0x1]  ;;  %v920_v18 = vor.u32 %v919_v6, %v916_v61  ;;  %v1574_v25 = vld [vmem:[#allocation2 + $0x3c] sm:$0xe] }
  0x48   : > { %v902_v63 = vsel %vm7034_vm8, %v897_v53, %v901_v33  ;;  %v935_v19 = vrot.slane %v933_v8, 5  ;;  %v1688_v20 = vrot.slane %v1572_v57, 5  ;;  %366 = vst.msk [vmem:[#allocation2 + $0x50] sm:$0x1] %vm347_vm5, %v316_v16  ;;  %v930_v21 = vor.u32 %v929_v14, %v925_v13  ;;  %v1575_v26 = vld [vmem:[#allocation2 + $0x40] sm:$0xf] }
  0x49   : > { %v1685_v5 = vsel %vm7041_vm9, %v1683_v59, %v1684_v50  ;;  %v5984_v17 = vcombine.low %v902_v63, %v912_v11  ;;  %v1691_v22 = vrot.slane %v1573_v9, 5  ;;  %v938_v23 = vshrl.u32 %v781_v4, 16  ;;  %v784_v37 = vld [vmem:[#allocation2 + $0x48] sm:$0xf]  ;;  %v319_v45 = vld [vmem:[%s6936_s28 + $0x5c] sm:$0x1] }
  0x4a   : > { %v6033_v12 = vcombine.low %v1682_v58, %v1685_v5  ;;  %v941_v24 = vshll.u32 %v781_v4, 16  ;;  %v921_v27 = vrot.slane %v920_v18, 4  ;;  %v1689_v28 = vsel %vm7041_vm9, %v6017_v10, %v1688_v20  ;;  %v783_v30 = vld [vmem:[#allocation2 + $0x44] sm:$0x1]  ;;  %v785_v49 = vld [vmem:[#allocation2 + $0x4c] sm:$0xf] }
  0x4b   : > { %v1690_v29 = vrot.slane %v1688_v20, 4  ;;  %v947_v31 = vshll.u32 %v782_v15, 16  ;;  %v931_v32 = vrot.slane %v930_v21, 4  ;;  %v940_v33 = vrot.slane %v938_v23, 4  ;;  %v1576_v44 = vld [vmem:[#allocation2 + $0x44] sm:$0x1] }
  0x4c   : > { %6526 = vmatmul.mubr.msk.bf16.gmra.mxu0 %vm520_vm2, %v6033_v12  ;;  %6492 = vmatmul.mubr.msk.bf16.gmra.mxu1 %vm520_vm2, %v5984_v17  ;;  %v943_v34 = vrot.slane %v941_v24, 5  ;;  %v951_v36 = vshrl.u32 %v782_v15, 16  ;;  %v926_v38 = vsel %vm7034_vm8, %v921_v27, %v925_v13  ;;  %v957_v43 = vshll.u32 %v783_v30, 16  ;;  %369 = vst.msk [vmem:[#allocation2 + $0x5c] sm:$0x1] %vm347_vm5, %v319_v45 }
  0x4d   : > { %v1692_v40 = vsel %vm7041_vm9, %v1690_v29, %v1691_v22  ;;  %v949_v41 = vrot.slane %v947_v31, 5  ;;  %v936_v39 = vsel %vm7034_vm8, %v931_v32, %v935_v19  ;;  %v6018_v35 = vrot.slane %v1574_v25, 9  ;;  %v1577_v52 = vld [vmem:[#allocation2 + $0x48] sm:$0xe]  ;;  %v1578_v58 = vld [vmem:[#allocation2 + $0x4c] sm:$0xf] }
  0x4e   : > { %v6034_v46 = vcombine.low %v1689_v28, %v1692_v40  ;;  %v944_v47 = vor.u32 %v943_v34, %v940_v33  ;;  %v953_v48 = vrot.slane %v951_v36, 4  ;;  %v5985_v42 = vcombine.low %v926_v38, %v936_v39  ;;  %v787_v63 = vld [vmem:[#allocation2 + $0x54] sm:$0xf]  ;;  %v322_v11 = vld [vmem:[%s6936_s28 + $0x68] sm:$0x1] }
  0x4f   : > { %v959_v50 = vrot.slane %v957_v43, 5  ;;  %v1695_v51 = vrot.slane %v1575_v26, 5  ;;  %v1698_v55 = vrot.slane %v1576_v44, 5  ;;  %v786_v56 = vld [vmem:[#allocation2 + $0x50] sm:$0x1]  ;;  %v962_v57 = vshrl.u32 %v784_v37, 16 }
  0x50   : > { %6529 = vmatprep.mubr.msk.bf16.mxu0 %vm520_vm2, %v6034_v46  ;;  %v945_v53 = vrot.slane %v944_v47, 4  ;;  %v954_v54 = vor.u32 %v953_v48, %v949_v41  ;;  %6495 = vmatprep.mubr.msk.bf16.mxu1 %vm520_vm2, %v5985_v42  ;;  %v965_v61 = vshll.u32 %v784_v37, 16  ;;  %v971_v62 = vshll.u32 %v785_v49, 16  ;;  %v1579_v5 = vld [vmem:[#allocation2 + $0x50] sm:$0x1] }
  0x51   : > { %v1696_v59 = vsel %vm7041_vm9, %v6018_v35, %v1695_v51  ;;  %v1697_v60 = vrot.slane %v1695_v51, 4  ;;  %v964_v3 = vrot.slane %v962_v57, 4  ;;  %v975_v4 = vshrl.u32 %v785_v49, 16  ;;  %v788_v16 = vld [vmem:[#allocation2 + $0x58] sm:$0xf] }
  0x52   : > { %v950_v0 = vsel %vm7034_vm8, %v945_v53, %v949_v41  ;;  %v955_v2 = vrot.slane %v954_v54, 4  ;;  %v967_v8 = vrot.slane %v965_v61, 5  ;;  %v973_v9 = vrot.slane %v971_v62, 5  ;;  %372 = vst.msk [vmem:[#allocation2 + $0x68] sm:$0x1] %vm347_vm5, %v322_v11 }
  0x53   : > { %v1699_v6 = vsel %vm7041_vm9, %v1697_v60, %v1698_v55  ;;  %v981_v10 = vshll.u32 %v786_v56, 16  ;;  %v977_v14 = vrot.slane %v975_v4, 4  ;;  %v6019_v15 = vrot.slane %v1577_v52, 9  ;;  %v789_v23 = vld [vmem:[#allocation2 + $0x5c] sm:$0x1] }
  0x54   : > { %v960_v12 = vsel %vm7034_vm8, %v955_v2, %v959_v50  ;;  %v6035_v13 = vcombine.low %v1696_v59, %v1699_v6  ;;  %v968_v18 = vor.u32 %v967_v8, %v964_v3  ;;  %v1702_v20 = vrot.slane %v1578_v58, 5  ;;  %v1580_v26 = vld [vmem:[#allocation2 + $0x54] sm:$0xe]  ;;  %v1581_v31 = vld [vmem:[#allocation2 + $0x58] sm:$0xf] }
  0x55   : > { %v5986_v17 = vcombine.low %v950_v0, %v960_v12  ;;  %v983_v19 = vrot.slane %v981_v10, 5  ;;  %v978_v21 = vor.u32 %v977_v14, %v973_v9  ;;  %v1705_v22 = vrot.slane %v1579_v5, 5  ;;  %v325_v37 = vld [vmem:[%s6936_s28 + $0x74] sm:$0x1]  ;;  %v1582_v44 = vld [vmem:[#allocation2 + $0x5c] sm:$0x1] }
  0x56   : > { %6530 = vmatmul.mubr.msk.bf16.gmra.mxu0 %vm520_vm2, %v6035_v13  ;;  %v986_v24 = vshrl.u32 %v787_v63, 16  ;;  %v989_v25 = vshll.u32 %v787_v63, 16  ;;  %v969_v27 = vrot.slane %v968_v18, 4  ;;  %v1703_v28 = vsel %vm7041_vm9, %v6019_v15, %v1702_v20  ;;  %v790_v45 = vld [vmem:[#allocation2 + $0x60] sm:$0xf] }
  0x57   : > { %6496 = vmatmul.mubr.msk.bf16.gmra.mxu1 %vm520_vm2, %v5986_v17  ;;  %v1704_v29 = vrot.slane %v1702_v20, 4  ;;  %v995_v30 = vshll.u32 %v788_v16, 16  ;;  %v979_v32 = vrot.slane %v978_v21, 4  ;;  %v999_v36 = vshrl.u32 %v788_v16, 16  ;;  %375 = vst.msk [vmem:[#allocation2 + $0x74] sm:$0x1] %vm347_vm5, %v325_v37 }
  0x58   : > { %v988_v33 = vrot.slane %v986_v24, 4  ;;  %v991_v34 = vrot.slane %v989_v25, 5  ;;  %v974_v38 = vsel %vm7034_vm8, %v969_v27, %v973_v9  ;;  %v1005_v43 = vshll.u32 %v789_v23, 16  ;;  %v791_v49 = vld [vmem:[#allocation2 + $0x64] sm:$0xf] }
  0x59   : > { %v1706_v40 = vsel %vm7041_vm9, %v1704_v29, %v1705_v22  ;;  %v997_v41 = vrot.slane %v995_v30, 5  ;;  %v984_v39 = vsel %vm7034_vm8, %v979_v32, %v983_v19  ;;  %v1001_v48 = vrot.slane %v999_v36, 4  ;;  %v1583_v52 = vld [vmem:[#allocation2 + $0x60] sm:$0xe]  ;;  %v792_v56 = vld [vmem:[#allocation2 + $0x68] sm:$0x1] }
  0x5a   : > { %v6036_v46 = vcombine.low %v1703_v28, %v1706_v40  ;;  %v992_v47 = vor.u32 %v991_v34, %v988_v33  ;;  %v5987_v42 = vcombine.low %v974_v38, %v984_v39  ;;  %v1007_v50 = vrot.slane %v1005_v43, 5  ;;  %v1584_v58 = vld [vmem:[#allocation2 + $0x64] sm:$0xf]  ;;  %v328_v63 = vld [vmem:[%s6936_s28 + $0x80] sm:$0x1] }
  0x5b   : > { %v6020_v35 = vrot.slane %v1580_v26, 9  ;;  %v1709_v51 = vrot.slane %v1581_v31, 5  ;;  %v1002_v54 = vor.u32 %v1001_v48, %v997_v41  ;;  %v1712_v55 = vrot.slane %v1582_v44, 5  ;;  %v793_v5 = vld [vmem:[#allocation2 + $0x6c] sm:$0xf] }
  0x5c   : > { %6533 = vmatprep.mubr.msk.bf16.mxu0 %vm520_vm2, %v6036_v46  ;;  %v993_v53 = vrot.slane %v992_v47, 4  ;;  %v1010_v57 = vshrl.u32 %v790_v45, 16  ;;  %6499 = vmatprep.mubr.msk.bf16.mxu1 %vm520_vm2, %v5987_v42  ;;  %v1013_v61 = vshll.u32 %v790_v45, 16  ;;  %v1019_v62 = vshll.u32 %v791_v49, 16  ;;  %378 = vst.msk [vmem:[#allocation2 + $0x80] sm:$0x1] %vm347_vm5, %v328_v63 }
  0x5d   : > { %v1710_v59 = vsel %vm7041_vm9, %v6020_v35, %v1709_v51  ;;  %v1711_v60 = vrot.slane %v1709_v51, 4  ;;  %v1003_v2 = vrot.slane %v1002_v54, 4  ;;  %v1023_v4 = vshrl.u32 %v791_v49, 16  ;;  %v1585_v11 = vld [vmem:[#allocation2 + $0x68] sm:$0x1] }
  0x5e   : > { %v998_v0 = vsel %vm7034_vm8, %v993_v53, %v997_v41  ;;  %v1012_v3 = vrot.slane %v1010_v57, 4  ;;  %v1015_v8 = vrot.slane %v1013_v61, 5  ;;  %v1021_v9 = vrot.slane %v1019_v62, 5  ;;  %v794_v16 = vld [vmem:[#allocation2 + $0x70] sm:$0xf] }
  0x5f   : > { %v1713_v6 = vsel %vm7041_vm9, %v1711_v60, %v1712_v55  ;;  %v1029_v10 = vshll.u32 %v792_v56, 16  ;;  %v1008_v12 = vsel %vm7034_vm8, %v1003_v2, %v1007_v50  ;;  %v1025_v14 = vrot.slane %v1023_v4, 4  ;;  %v795_v21 = vld [vmem:[#allocation2 + $0x74] sm:$0x1]  ;;  %v331_v26 = vld [vmem:[%s6936_s28 + $0x8c] sm:$0x1] }
  0x60   : > { %v6037_v13 = vcombine.low %v1710_v59, %v1713_v6  ;;  %v6021_v15 = vrot.slane %v1583_v52, 9  ;;  %v5988_v17 = vcombine.low %v998_v0, %v1008_v12  ;;  %v1016_v18 = vor.u32 %v1015_v8, %v1012_v3  ;;  %v1586_v31 = vld [vmem:[#allocation2 + $0x6c] sm:$0xe]  ;;  %381 = vst.msk [vmem:[#allocation2 + $0x8c] sm:$0x1] %vm347_vm5, %v331_v26 }
  0x61   : > { %v1031_v19 = vrot.slane %v1029_v10, 5  ;;  %v1716_v20 = vrot.slane %v1584_v58, 5  ;;  %v1026_v22 = vor.u32 %v1025_v14, %v1021_v9  ;;  %v1719_v23 = vrot.slane %v1585_v11, 5  ;;  %v1587_v37 = vld [vmem:[#allocation2 + $0x70] sm:$0xf] }
  0x62   : > { %6534 = vmatmul.mubr.msk.bf16.gmra.mxu0 %vm520_vm2, %v6037_v13  ;;  %v1034_v24 = vshrl.u32 %v793_v5, 16  ;;  %v1037_v25 = vshll.u32 %v793_v5, 16  ;;  %6500 = vmatmul.mubr.msk.bf16.gmra.mxu1 %vm520_vm2, %v5988_v17  ;;  %v1017_v27 = vrot.slane %v1016_v18, 4  ;;  %v1043_v30 = vshll.u32 %v794_v16, 16  ;;  %v1588_v44 = vld [vmem:[#allocation2 + $0x74] sm:$0x1] }
  0x63   : > { %v1717_v28 = vsel %vm7041_vm9, %v6021_v15, %v1716_v20  ;;  %v1718_v29 = vrot.slane %v1716_v20, 4  ;;  %v1027_v32 = vrot.slane %v1026_v22, 4  ;;  %v1047_v36 = vshrl.u32 %v794_v16, 16  ;;  %v796_v45 = vld [vmem:[#allocation2 + $0x78] sm:$0xf] }
  0x64   : > { %v1036_v33 = vrot.slane %v1034_v24, 4  ;;  %v1039_v34 = vrot.slane %v1037_v25, 5  ;;  %v1022_v38 = vsel %vm7034_vm8, %v1017_v27, %v1021_v9  ;;  %v1045_v41 = vrot.slane %v1043_v30, 5  ;;  %v797_v49 = vld [vmem:[#allocation2 + $0x7c] sm:$0xf] }
  0x65   : > { %v1720_v40 = vsel %vm7041_vm9, %v1718_v29, %v1719_v23  ;;  %v1053_v43 = vshll.u32 %v795_v21, 16  ;;  %v1032_v39 = vsel %vm7034_vm8, %v1027_v32, %v1031_v19  ;;  %v1049_v48 = vrot.slane %v1047_v36, 4  ;;  %v1589_v52 = vld [vmem:[#allocation2 + $0x78] sm:$0xe]  ;;  %v334_v53 = vld [vmem:[%s6936_s28 + $0x98] sm:$0x1] }
  0x66   : > { %v6038_v46 = vcombine.low %v1717_v28, %v1720_v40  ;;  %v1040_v47 = vor.u32 %v1039_v34, %v1036_v33  ;;  %v5989_v42 = vcombine.low %v1022_v38, %v1032_v39  ;;  %v6022_v35 = vrot.slane %v1586_v31, 9  ;;  %v798_v57 = vld [vmem:[#allocation2 + $0x80] sm:$0x1]  ;;  %384 = vst.msk [vmem:[#allocation2 + $0x98] sm:$0x1] %vm347_vm5, %v334_v53 }
  0x67   : > { %v1055_v50 = vrot.slane %v1053_v43, 5  ;;  %v1723_v51 = vrot.slane %v1587_v37, 5  ;;  %v1050_v55 = vor.u32 %v1049_v48, %v1045_v41  ;;  %v1726_v56 = vrot.slane %v1588_v44, 5  ;;  %v1590_v63 = vld [vmem:[#allocation2 + $0x7c] sm:$0xf] }
  0x68   : > { %6537 = vmatprep.mubr.msk.bf16.mxu0 %vm520_vm2, %v6038_v46  ;;  %v1041_v54 = vrot.slane %v1040_v47, 4  ;;  %v1058_v58 = vshrl.u32 %v796_v45, 16  ;;  %6503 = vmatprep.mubr.msk.bf16.mxu1 %vm520_vm2, %v5989_v42  ;;  %v1061_v61 = vshll.u32 %v796_v45, 16  ;;  %v1067_v62 = vshll.u32 %v797_v49, 16  ;;  %v799_v5 = vld [vmem:[#allocation2 + $0x84] sm:$0xf] }
  0x69   : > { %v1724_v59 = vsel %vm7041_vm9, %v6022_v35, %v1723_v51  ;;  %v1725_v60 = vrot.slane %v1723_v51, 4  ;;  %v1051_v2 = vrot.slane %v1050_v55, 4  ;;  %v1071_v4 = vshrl.u32 %v797_v49, 16  ;;  %v1591_v11 = vld [vmem:[#allocation2 + $0x80] sm:$0x1] }
  0x6a   : > { %v1046_v0 = vsel %vm7034_vm8, %v1041_v54, %v1045_v41  ;;  %v1060_v3 = vrot.slane %v1058_v58, 4  ;;  %v1063_v8 = vrot.slane %v1061_v61, 5  ;;  %v1069_v9 = vrot.slane %v1067_v62, 5  ;;  %v800_v16 = vld [vmem:[#allocation2 + $0x88] sm:$0xf] }
  0x6b   : > { %v1727_v6 = vsel %vm7041_vm9, %v1725_v60, %v1726_v56  ;;  %v1077_v10 = vshll.u32 %v798_v57, 16  ;;  %v1056_v12 = vsel %vm7034_vm8, %v1051_v2, %v1055_v50  ;;  %v1073_v14 = vrot.slane %v1071_v4, 4  ;;  %v337_v21 = vld [vmem:[%s6936_s28 + $0xa4] sm:$0x1]  ;;  %v801_v24 = vld [vmem:[#allocation2 + $0x8c] sm:$0x1] }
  0x6c   : > { %v6039_v13 = vcombine.low %v1724_v59, %v1727_v6  ;;  %v6023_v15 = vrot.slane %v1589_v52, 9  ;;  %v5990_v17 = vcombine.low %v1046_v0, %v1056_v12  ;;  %v1064_v18 = vor.u32 %v1063_v8, %v1060_v3  ;;  %387 = vst.msk [vmem:[#allocation2 + $0xa4] sm:$0x1] %vm347_vm5, %v337_v21  ;;  %v1592_v31 = vld [vmem:[#allocation2 + $0x84] sm:$0xe] }
  0x6d   : > { %v1079_v19 = vrot.slane %v1077_v10, 5  ;;  %v1730_v20 = vrot.slane %v1590_v63, 5  ;;  %v1074_v22 = vor.u32 %v1073_v14, %v1069_v9  ;;  %v1733_v23 = vrot.slane %v1591_v11, 5  ;;  %v1593_v37 = vld [vmem:[#allocation2 + $0x88] sm:$0xf] }
  0x6e   : > { %6538 = vmatmul.mubr.msk.bf16.gmra.mxu0 %vm520_vm2, %v6039_v13  ;;  %v1082_v25 = vshrl.u32 %v799_v5, 16  ;;  %v1085_v26 = vshll.u32 %v799_v5, 16  ;;  %6504 = vmatmul.mubr.msk.bf16.gmra.mxu1 %vm520_vm2, %v5990_v17  ;;  %v1065_v27 = vrot.slane %v1064_v18, 4  ;;  %v1091_v30 = vshll.u32 %v800_v16, 16  ;;  %v1594_v44 = vld [vmem:[#allocation2 + $0x8c] sm:$0x1] }
  0x6f   : > { %v1731_v28 = vsel %vm7041_vm9, %v6023_v15, %v1730_v20  ;;  %v1732_v29 = vrot.slane %v1730_v20, 4  ;;  %v1075_v32 = vrot.slane %v1074_v22, 4  ;;  %v1095_v36 = vshrl.u32 %v800_v16, 16  ;;  %v802_v45 = vld [vmem:[#allocation2 + $0x90] sm:$0xf] }
  0x70   : > { %v1084_v33 = vrot.slane %v1082_v25, 4  ;;  %v1087_v34 = vrot.slane %v1085_v26, 5  ;;  %v1070_v38 = vsel %vm7034_vm8, %v1065_v27, %v1069_v9  ;;  %v1093_v41 = vrot.slane %v1091_v30, 5  ;;  %v803_v49 = vld [vmem:[#allocation2 + $0x94] sm:$0xf] }
  0x71   : > { %v1734_v40 = vsel %vm7041_vm9, %v1732_v29, %v1733_v23  ;;  %v1101_v43 = vshll.u32 %v801_v24, 16  ;;  %v1080_v39 = vsel %vm7034_vm8, %v1075_v32, %v1079_v19  ;;  %v1097_v48 = vrot.slane %v1095_v36, 4  ;;  %v340_v42 = vld [vmem:[%s6936_s28 + $0xb0] sm:$0x1]  ;;  %v1595_v53 = vld [vmem:[#allocation2 + $0x90] sm:$0xe] }
  0x72   : > { %v6040_v46 = vcombine.low %v1731_v28, %v1734_v40  ;;  %v1088_v47 = vor.u32 %v1087_v34, %v1084_v33  ;;  %v5991_v50 = vcombine.low %v1070_v38, %v1080_v39  ;;  %v6024_v51 = vrot.slane %v1592_v31, 9  ;;  %390 = vst.msk [vmem:[#allocation2 + $0xb0] sm:$0x1] %vm347_vm5, %v340_v42  ;;  %v804_v57 = vld [vmem:[#allocation2 + $0x98] sm:$0x1] }
  0x73   : > { %v1103_v35 = vrot.slane %v1101_v43, 5  ;;  %v1737_v52 = vrot.slane %v1593_v37, 5  ;;  %v1098_v55 = vor.u32 %v1097_v48, %v1093_v41  ;;  %v1740_v56 = vrot.slane %v1594_v44, 5  ;;  %v1596_v63 = vld [vmem:[#allocation2 + $0x94] sm:$0xf] }
  0x74   : > { %6541 = vmatprep.mubr.msk.bf16.mxu0 %vm520_vm2, %v6040_v46  ;;  %v1089_v54 = vrot.slane %v1088_v47, 4  ;;  %v1106_v58 = vshrl.u32 %v802_v45, 16  ;;  %6507 = vmatprep.mubr.msk.bf16.mxu1 %vm520_vm2, %v5991_v50  ;;  %v1109_v61 = vshll.u32 %v802_v45, 16  ;;  %v1115_v62 = vshll.u32 %v803_v49, 16  ;;  %v805_v5 = vld [vmem:[#allocation2 + $0x9c] sm:$0xf] }
  0x75   : > { %v1738_v59 = vsel %vm7041_vm9, %v6024_v51, %v1737_v52  ;;  %v1739_v60 = vrot.slane %v1737_v52, 4  ;;  %v1099_v2 = vrot.slane %v1098_v55, 4  ;;  %v1119_v4 = vshrl.u32 %v803_v49, 16  ;;  %v1597_v11 = vld [vmem:[#allocation2 + $0x98] sm:$0x1] }
  0x76   : > { %v1094_v0 = vsel %vm7034_vm8, %v1089_v54, %v1093_v41  ;;  %v1108_v3 = vrot.slane %v1106_v58, 4  ;;  %v1111_v8 = vrot.slane %v1109_v61, 5  ;;  %v1117_v9 = vrot.slane %v1115_v62, 5  ;;  %v806_v16 = vld [vmem:[#allocation2 + $0xa0] sm:$0xf] }
  0x77   : > { %v1741_v6 = vsel %vm7041_vm9, %v1739_v60, %v1740_v56  ;;  %v1125_v10 = vshll.u32 %v804_v57, 16  ;;  %v1104_v12 = vsel %vm7034_vm8, %v1099_v2, %v1103_v35  ;;  %v1121_v14 = vrot.slane %v1119_v4, 4  ;;  %v343_v17 = vld [vmem:[%s6936_s28 + $0xbc] sm:$0x1]  ;;  %v807_v24 = vld [vmem:[#allocation2 + $0xa4] sm:$0x1] }
  0x78   : > { %v6041_v13 = vcombine.low %v1738_v59, %v1741_v6  ;;  %v6025_v15 = vrot.slane %v1595_v53, 9  ;;  %v5992_v18 = vcombine.low %v1094_v0, %v1104_v12  ;;  %v1112_v19 = vor.u32 %v1111_v8, %v1108_v3  ;;  %393 = vst.msk [vmem:[#allocation2 + $0xbc] sm:$0x1] %vm347_vm5, %v343_v17  ;;  %v1598_v27 = vld [vmem:[#allocation2 + $0x9c] sm:$0xe] }
  0x79   : > { %v1127_v20 = vrot.slane %v1125_v10, 5  ;;  %v1744_v21 = vrot.slane %v1596_v63, 5  ;;  %v1122_v22 = vor.u32 %v1121_v14, %v1117_v9  ;;  %v1747_v23 = vrot.slane %v1597_v11, 5  ;;  %v1599_v28 = vld [vmem:[#allocation2 + $0xa0] sm:$0xf] }
  0x7a   : > { %6542 = vmatmul.mubr.msk.bf16.gmra.mxu0 %vm520_vm2, %v6041_v13  ;;  %v1130_v25 = vshrl.u32 %v805_v5, 16  ;;  %v1133_v26 = vshll.u32 %v805_v5, 16  ;;  %6508 = vmatmul.mubr.msk.bf16.gmra.mxu1 %vm520_vm2, %v5992_v18  ;;  %v1113_v29 = vrot.slane %v1112_v19, 4  ;;  %v1139_v32 = vshll.u32 %v806_v16, 16  ;;  %v808_v33 = vld [vmem:[#allocation2 + $0xa8] sm:$0xf] }
  0x7b   : > { %v1745_v30 = vsel %vm7041_vm9, %v6025_v15, %v1744_v21  ;;  %v1746_v31 = vrot.slane %v1744_v21, 4  ;;  %v1123_v34 = vrot.slane %v1122_v22, 4  ;;  %v1143_v38 = vshrl.u32 %v806_v16, 16  ;;  %v1600_v40 = vld [vmem:[#allocation2 + $0xa4] sm:$0x1] }
  0x7c   : > { %v1132_v36 = vrot.slane %v1130_v25, 4  ;;  %v1135_v37 = vrot.slane %v1133_v26, 5  ;;  %v1118_v41 = vsel %vm7034_vm8, %v1113_v29, %v1117_v9  ;;  %v1141_v44 = vrot.slane %v1139_v32, 5  ;;  %v809_v49 = vld [vmem:[#allocation2 + $0xac] sm:$0xf] }
  0x7d   : > { %v1748_v43 = vsel %vm7041_vm9, %v1746_v31, %v1747_v23  ;;  %v1149_v45 = vshll.u32 %v807_v24, 16  ;;  %v1128_v39 = vsel %vm7034_vm8, %v1123_v34, %v1127_v20  ;;  %v1145_v48 = vrot.slane %v1143_v38, 4  ;;  %v1601_v52 = vld [vmem:[#allocation2 + $0xa8] sm:$0xe]  ;;  %v810_v56 = vld [vmem:[#allocation2 + $0xb0] sm:$0x1] }
  0x7e   : > { %v6042_v46 = vcombine.low %v1745_v30, %v1748_v43  ;;  %v1136_v47 = vor.u32 %v1135_v37, %v1132_v36  ;;  %v5993_v42 = vcombine.low %v1118_v41, %v1128_v39  ;;  %v6026_v35 = vrot.slane %v1598_v27, 9  ;;  %v1602_v58 = vld [vmem:[#allocation2 + $0xac] sm:$0xf]  ;;  %v1603_v63 = vld [vmem:[#allocation2 + $0xb0] sm:$0x1] }
  0x7f   : > { %v1151_v50 = vrot.slane %v1149_v45, 5  ;;  %v1751_v51 = vrot.slane %v1599_v28, 5  ;;  %v1146_v54 = vor.u32 %v1145_v48, %v1141_v44  ;;  %v1754_v55 = vrot.slane %v1600_v40, 5  ;;  %v811_v0 = vld [vmem:[#allocation2 + $0xb4] sm:$0xf] }
  0x80   : > { %6545 = vmatprep.mubr.msk.bf16.mxu0 %vm520_vm2, %v6042_v46  ;;  %v1137_v53 = vrot.slane %v1136_v47, 4  ;;  %v1154_v57 = vshrl.u32 %v808_v33, 16  ;;  %6511 = vmatprep.mubr.msk.bf16.mxu1 %vm520_vm2, %v5993_v42  ;;  %v1157_v61 = vshll.u32 %v808_v33, 16  ;;  %v1163_v62 = vshll.u32 %v809_v49, 16  ;;  %v7222_v6 = vld [vmem:[%s8455_s2 + $0xa] sm:$0x3] }
  0x81   : > { %v1752_v59 = vsel %vm7041_vm9, %v6026_v35, %v1751_v51  ;;  %v1753_v60 = vrot.slane %v1751_v51, 4  ;;  %v1147_v3 = vrot.slane %v1146_v54, 4  ;;  %v1167_v5 = vshrl.u32 %v809_v49, 16  ;;  %6765 = vmatprep.subr.msk.bf16.mxu1 %vm569_vm0, %v7222_v6  ;;  %v812_v16 = vld [vmem:[#allocation2 + $0xb8] sm:$0xf] }
  0x82   : > { %v1142_v2 = vsel %vm7034_vm8, %v1137_v53, %v1141_v44  ;;  %v1156_v4 = vrot.slane %v1154_v57, 4  ;;  %v1159_v9 = vrot.slane %v1157_v61, 5  ;;  %v1165_v10 = vrot.slane %v1163_v62, 5  ;;  %v813_v21 = vld [vmem:[#allocation2 + $0xbc] sm:$0x1] }
  0x83   : > { %v1755_v8 = vsel %vm7041_vm9, %v1753_v60, %v1754_v55  ;;  %v1173_v11 = vshll.u32 %v810_v56, 16  ;;  %v1152_v12 = vsel %vm7034_vm8, %v1147_v3, %v1151_v50  ;;  %v1169_v14 = vrot.slane %v1167_v5, 4  ;;  %v1604_v26 = vld [vmem:[#allocation2 + $0xb4] sm:$0xe]  ;;  %v1605_v27 = vld [vmem:[#allocation2 + $0xb8] sm:$0xf] }
  0x84   : > { %v6043_v13 = vcombine.low %v1752_v59, %v1755_v8  ;;  %v6027_v15 = vrot.slane %v1601_v52, 9  ;;  %v5994_v17 = vcombine.low %v1142_v2, %v1152_v12  ;;  %v1160_v18 = vor.u32 %v1159_v9, %v1156_v4  ;;  %v7234_v28 = vld [vmem:[%s8455_s2 + $0xc] sm:$0x3]  ;;  %v1606_v44 = vld [vmem:[#allocation2 + $0xbc] sm:$0x1] }
  0x85   : > { %v1175_v19 = vrot.slane %v1173_v11, 5  ;;  %v1758_v20 = vrot.slane %v1602_v58, 5  ;;  %v1170_v22 = vor.u32 %v1169_v14, %v1165_v10  ;;  %v1761_v23 = vrot.slane %v1603_v63, 5  ;;  %6766 = vmatprep.subr.msk.bf16.mxu0 %vm569_vm0, %v7234_v28  ;;  %v2551_v45 = vld [vmem:[#allocation2 + $0xc] sm:$0xf] }
  0x86   : > { %6546 = vmatmul.mubr.msk.bf16.gmra.mxu0 %vm520_vm2, %v6043_v13  ;;  %v1178_v24 = vshrl.u32 %v811_v0, 16  ;;  %v1181_v25 = vshll.u32 %v811_v0, 16  ;;  %6512 = vmatmul.mubr.msk.bf16.gmra.mxu1 %vm520_vm2, %v5994_v17  ;;  %v1161_v29 = vrot.slane %v1160_v18, 4  ;;  %v1187_v32 = vshll.u32 %v812_v16, 16  ;;  %v2552_v49 = vld [vmem:[#allocation2 + $0x10] sm:$0xf] }
  0x87   : > { %v1759_v30 = vsel %vm7041_vm9, %v6027_v15, %v1758_v20  ;;  %v1760_v31 = vrot.slane %v1758_v20, 4  ;;  %v1171_v33 = vrot.slane %v1170_v22, 4  ;;  %v1191_v37 = vshrl.u32 %v812_v16, 16  ;;  %v2553_v55 = vld [vmem:[#allocation2 + $0x14] sm:$0x1]  ;;  %v6812_v5 = vld [vmem:[#allocation2 + $0xc] sm:$0xff]  }
  0x88   : > { %v1180_v34 = vrot.slane %v1178_v24, 4  ;;  %v1183_v36 = vrot.slane %v1181_v25, 5  ;;  %v1166_v38 = vsel %vm7034_vm8, %v1161_v29, %v1165_v10  ;;  %v1189_v41 = vrot.slane %v1187_v32, 5  ;;  %v2554_v61 = vld [vmem:[#allocation2 + $0x18] sm:$0xf] }
  0x89   : > { %v1762_v40 = vsel %vm7041_vm9, %v1760_v31, %v1761_v23  ;;  %v1197_v43 = vshll.u32 %v813_v21, 16  ;;  %v1176_v39 = vsel %vm7034_vm8, %v1171_v33, %v1175_v19  ;;  %v1193_v48 = vrot.slane %v1191_v37, 4  ;;  %v2555_v3 = vld [vmem:[#allocation2 + $0x1c] sm:$0xf]  ;;  %v2556_v14 = vld [vmem:[#allocation2 + $0x20] sm:$0x1] }
  0x8a   : > { %v6044_v46 = vcombine.low %v1759_v30, %v1762_v40  ;;  %v1184_v47 = vor.u32 %v1183_v36, %v1180_v34  ;;  %v5995_v42 = vcombine.low %v1166_v38, %v1176_v39  ;;  %v6028_v35 = vrot.slane %v1604_v26, 9  ;;  %v2557_v20 = vld [vmem:[#allocation2 + $0x24] sm:$0xf]  ;;  %v2558_v21 = vld [vmem:[#allocation2 + $0x28] sm:$0xf]  ;;  %v6813_v37 = vld [vmem:[#allocation2 + $0x18] sm:$0xff]  }
  0x8b   : > { %v1199_v50 = vrot.slane %v1197_v43, 5  ;;  %v1765_v51 = vrot.slane %v1605_v27, 5  ;;  %v1194_v53 = vor.u32 %v1193_v48, %v1189_v41  ;;  %v1768_v54 = vrot.slane %v1606_v44, 5  ;;  %v2560_v44 = vld [vmem:[#allocation2 + $0x30] sm:$0xf] }
  0x8c   : > { %6549 = vmatprep.mubr.msk.bf16.mxu0 %vm520_vm2, %v6044_v46  ;;  %v1185_v52 = vrot.slane %v1184_v47, 4  ;;  %v2600_v56 = vshrl.u32 %v2551_v45, 16  ;;  %6515 = vmatprep.mubr.msk.bf16.mxu1 %vm520_vm2, %v5995_v42  ;;  %v2603_v59 = vshll.u32 %v2551_v45, 16  ;;  %v2609_v60 = vshll.u32 %v2552_v49, 16 }
  0x8d   : > { %v1766_v57 = vsel %vm7041_vm9, %v6028_v35, %v1765_v51  ;;  %v1767_v58 = vrot.slane %v1765_v51, 4  ;;  %v1195_v63 = vrot.slane %v1194_v53, 4  ;;  %v2613_v2 = vshrl.u32 %v2552_v49, 16  ;;  %v6814_v49 = vld [vmem:[#allocation2 + $0x24] sm:$0xff]  }
  0x8e   : > { %v1190_v62 = vsel %vm7034_vm8, %v1185_v52, %v1189_v41  ;;  %v2602_v0 = vrot.slane %v2600_v56, 4  ;;  %v2605_v8 = vrot.slane %v2603_v59, 5  ;;  %v2611_v9 = vrot.slane %v2609_v60, 5  ;;  %v2559_v41 = vld [vmem:[#allocation2 + $0x2c] sm:$0x1] }
  0x8f   : > { %v1769_v4 = vsel %vm7041_vm9, %v1767_v58, %v1768_v54  ;;  %v2619_v10 = vshll.u32 %v2553_v55, 16  ;;  %v1200_v11 = vsel %vm7034_vm8, %v1195_v63, %v1199_v50  ;;  %v2615_v13 = vrot.slane %v2613_v2, 4  ;;  %v2561_v50 = vld [vmem:[#allocation2 + $0x34] sm:$0xf]  ;;  %v2562_v54 = vld [vmem:[#allocation2 + $0x38] sm:$0x1] }
  0x90   : > { %v6045_v12 = vcombine.low %v1766_v57, %v1769_v4  ;;  %v2624_v15 = vshrl.u32 %v2554_v61, 16  ;;  %v5996_v16 = vcombine.low %v1190_v62, %v1200_v11  ;;  %v2606_v17 = vor.u32 %v2605_v8, %v2602_v0  ;;  %v2563_v59 = vld [vmem:[#allocation2 + $0x3c] sm:$0xf] }
  0x91   : > { %v2621_v18 = vrot.slane %v2619_v10, 5  ;;  %v2627_v19 = vshll.u32 %v2554_v61, 16  ;;  %v2616_v22 = vor.u32 %v2615_v13, %v2611_v9  ;;  %v2633_v24 = vshll.u32 %v2555_v3, 16  ;;  %v2566_v13 = vld [vmem:[#allocation2 + $0x48] sm:$0xf] }
  0x92   : > { %6550 = vmatmul.mubr.msk.bf16.gmra.mxu0 %vm520_vm2, %v6045_v12  ;;  %v2626_v23 = vrot.slane %v2624_v15, 4  ;;  %v2637_v25 = vshrl.u32 %v2555_v3, 16  ;;  %6516 = vmatmul.mubr.msk.bf16.gmra.mxu1 %vm520_vm2, %v5996_v16  ;;  %v2607_v26 = vrot.slane %v2606_v17, 4  ;;  %v2643_v29 = vshll.u32 %v2556_v14, 16  ;;  %v2565_v12 = vld [vmem:[#allocation2 + $0x44] sm:$0x1] }
  0x93   : > { %v2629_v27 = vrot.slane %v2627_v19, 5  ;;  %v3648_v30 = vsel %vm569_vm0, %v7222_v6, 0  ;;  %6555 = vmatprep.mubr.msk.bf16.mxu1 %vm520_vm2, %v6812_v5  ;;  %v2617_v31 = vrot.slane %v2616_v22, 4  ;;  %v2635_v32 = vrot.slane %v2633_v24, 5  ;;  %v2564_v5 = vld [vmem:[#allocation2 + $0x40] sm:$0xf] }
  0x94   : > { %v2639_v33 = vrot.slane %v2637_v25, 4  ;;  %v4071_v34 = vsel %vm569_vm0, %v7234_v28, 0  ;;  %v2612_v36 = vsel %vm7034_vm8, %v2607_v26, %v2611_v9  ;;  %v2645_v40 = vrot.slane %v2643_v29, 5 }
  0x95   : > { %v2630_v38 = vor.u32 %v2629_v27, %v2626_v23  ;;  %v2648_v43 = vshrl.u32 %v2557_v20, 16  ;;  %v2622_v6 = vsel %vm7034_vm8, %v2617_v31, %v2621_v18  ;;  %v2651_v39 = vshll.u32 %v2557_v20, 16  ;;  %v6815_v23 = vld [vmem:[#allocation2 + $0x30] sm:$0xff]   ;;  %v2567_v27 = vld [vmem:[#allocation2 + $0x4c] sm:$0xf]  ;;  %v6816_v31 = vld [vmem:[#allocation2 + $0x3c] sm:$0xff]  }
  0x96   : > { %v2640_v45 = vor.u32 %v2639_v33, %v2635_v32  ;;  %v2657_v46 = vshll.u32 %v2558_v21, 16  ;;  %v6096_v47 = vcombine.low %v2612_v36, %v2622_v6  ;;  %v2661_v28 = vshrl.u32 %v2558_v21, 16 }
  0x97   : > { %v2631_v48 = vrot.slane %v2630_v38, 4  ;;  %v2650_v42 = vrot.slane %v2648_v43, 4  ;;  %v2653_v51 = vrot.slane %v2651_v39, 5  ;;  %v2667_v53 = vshll.u32 %v2559_v41, 16  ;;  %v2568_v43 = vld [vmem:[#allocation2 + $0x50] sm:$0x1] }
  0x98   : > { %v2641_v35 = vrot.slane %v2640_v45, 4  ;;  %v2659_v52 = vrot.slane %v2657_v46, 5  ;;  %6589 = vmatprep.mubr.msk.bf16.mxu0 %vm520_vm2, %v6096_v47  ;;  %v2663_v56 = vrot.slane %v2661_v28, 4  ;;  %v2672_v57 = vshrl.u32 %v2560_v44, 16 }
  0x99   : > { %v2636_v55 = vsel %vm7034_vm8, %v2631_v48, %v2635_v32  ;;  %v2675_v58 = vshll.u32 %v2560_v44, 16  ;;  %v2654_v61 = vor.u32 %v2653_v51, %v2650_v42  ;;  %v2669_v62 = vrot.slane %v2667_v53, 5  ;;  %v2569_v48 = vld [vmem:[#allocation2 + $0x54] sm:$0xf] }
  0x9a   : > { %v2646_v60 = vsel %vm7034_vm8, %v2641_v35, %v2645_v40  ;;  %v2681_v63 = vshll.u32 %v2561_v50, 16  ;;  %6556 = vmatmul.mubr.msk.bf16.vlgmr.msra.gmra.mxu1 %vm520_vm2, %v6813_v37  ;;  %v2664_v2 = vor.u32 %v2663_v56, %v2659_v52  ;;  %v2674_v3 = vrot.slane %v2672_v57, 4  ;;  %v2570_v35 = vld [vmem:[#allocation2 + $0x58] sm:$0xf] }
  0x9b   : > { %v6097_v0 = vcombine.low %v2636_v55, %v2646_v60  ;;  %v2677_v4 = vrot.slane %v2675_v58, 5  ;;  %6622 = vmatpush3.bf16.msra.mxu1 %v3648_v30  ;;  %6559 = vmatprep.mubr.msk.bf16.mxu1 %vm520_vm2, %v6814_v49  ;;  %v2655_v8 = vrot.slane %v2654_v61, 4  ;;  %v2685_v10 = vshrl.u32 %v2561_v50, 16  ;;  %v2571_v55 = vld [vmem:[#allocation2 + $0x5c] sm:$0x1]  ;;  %v6817_v61 = vld [vmem:[#allocation2 + $0x48] sm:$0xff]  }
  0x9c   : > { %v2683_v9 = vrot.slane %v2681_v63, 5  ;;  %v2691_v11 = vshll.u32 %v2562_v54, 16  ;;  %v2665_v14 = vrot.slane %v2664_v2, 4  ;;  %v2696_v16 = vshrl.u32 %v2563_v59, 16  ;;  %v2572_v60 = vld [vmem:[#allocation2 + $0x60] sm:$0xf] }
  0x9d   : > { %6590 = vmatmul.mubr.msk.bf16.vlgmr.msra.gmra.mxu0 %vm520_vm2, %v6097_v0  ;;  %v2678_v15 = vor.u32 %v2677_v4, %v2674_v3  ;;  %v2699_v17 = vshll.u32 %v2563_v59, 16  ;;  %v2660_v18 = vsel %vm7034_vm8, %v2655_v8, %v2659_v52  ;;  %v2687_v19 = vrot.slane %v2685_v10, 4  ;;  %v2573_v3 = vld [vmem:[#allocation2 + $0x64] sm:$0xf]  ;;  %v6818_v8 = vld [vmem:[#allocation2 + $0x54] sm:$0xff]  }
  0x9e   : > { %6656 = vmatpush3.bf16.msra.mxu0 %v4071_v34  ;;  %v2693_v20 = vrot.slane %v2691_v11, 5  ;;  %v2705_v21 = vshll.u32 %v2564_v5, 16  ;;  %v2670_v22 = vsel %vm7034_vm8, %v2665_v14, %v2669_v62  ;;  %v2698_v25 = vrot.slane %v2696_v16, 4 }
  0x9f   : > { %v2679_v24 = vrot.slane %v2678_v15, 4  ;;  %v2701_v26 = vrot.slane %v2699_v17, 5  ;;  %v6098_v29 = vcombine.low %v2660_v18, %v2670_v22  ;;  %v2688_v30 = vor.u32 %v2687_v19, %v2683_v9  ;;  %v2574_v18 = vld [vmem:[#allocation2 + $0x68] sm:$0x1] }
  0xa0   : > { %v2707_v32 = vrot.slane %v2705_v21, 5  ;;  %v2709_v33 = vshrl.u32 %v2564_v5, 16  ;;  %v2715_v37 = vshll.u32 %v2565_v12, 16  ;;  %v2720_v38 = vshrl.u32 %v2566_v13, 16 }
  0xa1   : > { %v2684_v34 = vsel %vm7034_vm8, %v2679_v24, %v2683_v9  ;;  %v2702_v36 = vor.u32 %v2701_v26, %v2698_v25  ;;  %6593 = vmatprep.mubr.msk.bf16.mxu0 %vm520_vm2, %v6098_v29  ;;  %v2689_v40 = vrot.slane %v2688_v30, 4  ;;  %v2723_v44 = vshll.u32 %v2566_v13, 16  ;;  %v2576_v25 = vld [vmem:[#allocation2 + $0x70] sm:$0xf] }
  0xa2   : > { %v2711_v41 = vrot.slane %v2709_v33, 4  ;;  %v2729_v6 = vshll.u32 %v2567_v27, 16  ;;  %6560 = vmatmul.mubr.msk.bf16.gmra.mxu1 %vm520_vm2, %v6815_v23  ;;  %v2717_v39 = vrot.slane %v2715_v37, 5  ;;  %v2722_v46 = vrot.slane %v2720_v38, 4  ;;  %v6819_v38 = vld [vmem:[#allocation2 + $0x60] sm:$0xff]  }
  0xa3   : > { %v2703_v45 = vrot.slane %v2702_v36, 4  ;;  %v2733_v47 = vshrl.u32 %v2567_v27, 16  ;;  %v2694_v49 = vsel %vm7034_vm8, %v2689_v40, %v2693_v20  ;;  %6563 = vmatprep.mubr.msk.bf16.mxu1 %vm520_vm2, %v6816_v31  ;;  %v2725_v28 = vrot.slane %v2723_v44, 5  ;;  %v2575_v20 = vld [vmem:[#allocation2 + $0x6c] sm:$0xf] }
  0xa4   : > { %v2712_v42 = vor.u32 %v2711_v41, %v2707_v32  ;;  %v2731_v50 = vrot.slane %v2729_v6, 5  ;;  %v6099_v51 = vcombine.low %v2684_v34, %v2694_v49  ;;  %v2739_v54 = vshll.u32 %v2568_v43, 16  ;;  %v2577_v36 = vld [vmem:[#allocation2 + $0x74] sm:$0x1]  ;;  %v2578_v44 = vld [vmem:[#allocation2 + $0x78] sm:$0xf] }
  0xa5   : > { %v2708_v52 = vsel %vm7034_vm8, %v2703_v45, %v2707_v32  ;;  %v2735_v53 = vrot.slane %v2733_v47, 4  ;;  %v2726_v57 = vor.u32 %v2725_v28, %v2722_v46  ;;  %v2744_v58 = vshrl.u32 %v2569_v48, 16  ;;  %v2579_v47 = vld [vmem:[#allocation2 + $0x7c] sm:$0xf] }
  0xa6   : > { %v2713_v56 = vrot.slane %v2712_v42, 4  ;;  %v2747_v59 = vshll.u32 %v2569_v48, 16  ;;  %6594 = vmatmul.mubr.msk.bf16.gmra.mxu0 %vm520_vm2, %v6099_v51  ;;  %v2741_v63 = vrot.slane %v2739_v54, 5  ;;  %v2753_v0 = vshll.u32 %v2570_v35, 16  ;;  %v6820_v42 = vld [vmem:[#allocation2 + $0x6c] sm:$0xff]  }
  0xa7   : > { %v2736_v62 = vor.u32 %v2735_v53, %v2731_v50  ;;  %v2757_v2 = vshrl.u32 %v2570_v35, 16  ;;  %v2727_v5 = vrot.slane %v2726_v57, 4  ;;  %v2746_v9 = vrot.slane %v2744_v58, 4 }
  0xa8   : > { %v2718_v4 = vsel %vm7034_vm8, %v2713_v56, %v2717_v39  ;;  %v2749_v10 = vrot.slane %v2747_v59, 5  ;;  %v2755_v13 = vrot.slane %v2753_v0, 5  ;;  %v2763_v17 = vshll.u32 %v2571_v55, 16  ;;  %v2580_v56 = vld [vmem:[#allocation2 + $0x80] sm:$0x1] }
  0xa9   : > { %v6100_v11 = vcombine.low %v2708_v52, %v2718_v4  ;;  %v2737_v12 = vrot.slane %v2736_v62, 4  ;;  %v2759_v14 = vrot.slane %v2757_v2, 4  ;;  %v2732_v15 = vsel %vm7034_vm8, %v2727_v5, %v2731_v50 }
  0xaa   : > { %v2750_v16 = vor.u32 %v2749_v10, %v2746_v9  ;;  %v2768_v19 = vshrl.u32 %v2572_v60, 16  ;;  %6564 = vmatmul.mubr.msk.bf16.gmra.mxu1 %vm520_vm2, %v6817_v61  ;;  %v2771_v23 = vshll.u32 %v2572_v60, 16  ;;  %v2777_v24 = vshll.u32 %v2573_v3, 16  ;;  %v6821_v9 = vld [vmem:[#allocation2 + $0x78] sm:$0xff]  }
  0xab   : > { %6597 = vmatprep.mubr.msk.bf16.mxu0 %vm520_vm2, %v6100_v11  ;;  %v2742_v21 = vsel %vm7034_vm8, %v2737_v12, %v2741_v63  ;;  %v2760_v22 = vor.u32 %v2759_v14, %v2755_v13  ;;  %6567 = vmatprep.mubr.msk.bf16.mxu1 %vm520_vm2, %v6818_v8  ;;  %v2765_v29 = vrot.slane %v2763_v17, 5  ;;  %v2781_v34 = vshrl.u32 %v2573_v3, 16  ;;  %v2581_v63 = vld [vmem:[#allocation2 + $0x84] sm:$0xf]  ;;  %v2582_v12 = vld [vmem:[#allocation2 + $0x88] sm:$0xf] }
  0xac   : > { %v6101_v26 = vcombine.low %v2732_v15, %v2742_v21  ;;  %v2751_v27 = vrot.slane %v2750_v16, 4  ;;  %v2770_v30 = vrot.slane %v2768_v19, 4  ;;  %v2773_v32 = vrot.slane %v2771_v23, 5  ;;  %v6822_v17 = vld [vmem:[#allocation2 + $0x84] sm:$0xff]   ;;  %v2584_v19 = vld [vmem:[#allocation2 + $0x90] sm:$0xf] }
  0xad   : > { %v2761_v31 = vrot.slane %v2760_v22, 4  ;;  %v2779_v33 = vrot.slane %v2777_v24, 5  ;;  %v2787_v40 = vshll.u32 %v2574_v18, 16  ;;  %v2792_v41 = vshrl.u32 %v2575_v20, 16  ;;  %v2583_v18 = vld [vmem:[#allocation2 + $0x8c] sm:$0x1] }
  0xae   : > { %v2756_v37 = vsel %vm7034_vm8, %v2751_v27, %v2755_v13  ;;  %v2795_v43 = vshll.u32 %v2575_v20, 16  ;;  %6598 = vmatmul.mubr.msk.bf16.gmra.mxu0 %vm520_vm2, %v6101_v26  ;;  %v2774_v45 = vor.u32 %v2773_v32, %v2770_v30  ;;  %v2783_v39 = vrot.slane %v2781_v34, 4  ;;  %v394_v24 = vld [vmem:[%s7314_s14] sm:$0xf]  ;;  %v395_v30 = vld [vmem:[%s7314_s14 + $0x4] sm:$0xf] }
  0xaf   : > { %v2766_v6 = vsel %vm7034_vm8, %v2761_v31, %v2765_v29  ;;  %v2801_v46 = vshll.u32 %v2576_v25, 16  ;;  %v2789_v49 = vrot.slane %v2787_v40, 5  ;;  %v2794_v28 = vrot.slane %v2792_v41, 4  ;;  %401 = vst.msk [vmem:[#allocation2 + $0xc0] sm:$0xf] %vm344_vm1, %v394_v24 }
  0xb0   : > { %v6102_v48 = vcombine.low %v2756_v37, %v2766_v6  ;;  %v2797_v50 = vrot.slane %v2795_v43, 5  ;;  %v2775_v35 = vrot.slane %v2774_v45, 4  ;;  %v2784_v51 = vor.u32 %v2783_v39, %v2779_v33  ;;  %402 = vst.msk [vmem:[#allocation2 + $0xc4] sm:$0xf] %vm344_vm1, %v395_v30  ;;  %v396_v37 = vld [vmem:[%s7314_s14 + $0x8] sm:$0x1] }
  0xb1   : > { %v2803_v52 = vrot.slane %v2801_v46, 5  ;;  %v2805_v53 = vshrl.u32 %v2576_v25, 16  ;;  %v2811_v55 = vshll.u32 %v2577_v36, 16  ;;  %v2816_v57 = vshrl.u32 %v2578_v44, 16  ;;  %v2585_v36 = vld [vmem:[#allocation2 + $0x94] sm:$0xf] }
  0xb2   : > { %6601 = vmatprep.mubr.msk.bf16.mxu0 %vm520_vm2, %v6102_v48  ;;  %v2798_v54 = vor.u32 %v2797_v50, %v2794_v28  ;;  %v2819_v58 = vshll.u32 %v2578_v44, 16  ;;  %6568 = vmatmul.mubr.msk.bf16.gmra.mxu1 %vm520_vm2, %v6819_v38  ;;  %v2780_v59 = vsel %vm7034_vm8, %v2775_v35, %v2779_v33  ;;  %v2785_v60 = vrot.slane %v2784_v51, 4  ;;  %v2586_v44 = vld [vmem:[#allocation2 + $0x98] sm:$0x1]  ;;  %v2587_v6 = vld [vmem:[#allocation2 + $0x9c] sm:$0xf] }
  0xb3   : > { %v2807_v61 = vrot.slane %v2805_v53, 4  ;;  %v2825_v62 = vshll.u32 %v2579_v47, 16  ;;  %6571 = vmatprep.mubr.msk.bf16.mxu1 %vm520_vm2, %v6820_v42  ;;  %v2813_v2 = vrot.slane %v2811_v55, 5  ;;  %v2818_v3 = vrot.slane %v2816_v57, 4  ;;  %403 = vst.msk [vmem:[#allocation2 + $0xc8] sm:$0x1] %vm347_vm5, %v396_v37 }
  0xb4   : > { %v2799_v0 = vrot.slane %v2798_v54, 4  ;;  %v2821_v4 = vrot.slane %v2819_v58, 5  ;;  %v2790_v5 = vsel %vm7034_vm8, %v2785_v60, %v2789_v49  ;;  %v2829_v11 = vshrl.u32 %v2579_v47, 16  ;;  %v2588_v48 = vld [vmem:[#allocation2 + $0xa0] sm:$0xf]  ;;  %v6823_v57 = vld [vmem:[#allocation2 + $0x90] sm:$0xff]  }
  0xb5   : > { %v2808_v8 = vor.u32 %v2807_v61, %v2803_v52  ;;  %v2827_v10 = vrot.slane %v2825_v62, 5  ;;  %v6103_v13 = vcombine.low %v2780_v59, %v2790_v5  ;;  %v2835_v16 = vshll.u32 %v2580_v56, 16  ;;  %v7339_v54 = vld [vmem:[%s8455_s2 + $0xe] sm:$0x3]  ;;  %v2589_v60 = vld [vmem:[#allocation2 + $0xa4] sm:$0x1] }
  0xb6   : > { %v2804_v14 = vsel %vm7034_vm8, %v2799_v0, %v2803_v52  ;;  %v2822_v15 = vor.u32 %v2821_v4, %v2818_v3  ;;  %v2831_v21 = vrot.slane %v2829_v11, 4  ;;  %v2840_v22 = vshrl.u32 %v2581_v63, 16  ;;  %6767 = vmatprep.subr.msk.bf16.mxu1 %vm569_vm0, %v7339_v54  ;;  %v6824_v0 = vld [vmem:[#allocation2 + $0x9c] sm:$0xff]   ;;  %v2593_v24 = vld [vmem:[#allocation2 + $0xb4] sm:$0xf] }
  0xb7   : > { %v2809_v20 = vrot.slane %v2808_v8, 4  ;;  %v2843_v23 = vshll.u32 %v2581_v63, 16  ;;  %6602 = vmatmul.mubr.msk.bf16.gmra.mxu0 %vm520_vm2, %v6103_v13  ;;  %v2837_v26 = vrot.slane %v2835_v16, 5  ;;  %v2849_v27 = vshll.u32 %v2582_v12, 16  ;;  %v2594_v30 = vld [vmem:[#allocation2 + $0xb8] sm:$0xf] }
  0xb8   : > { %v2823_v25 = vrot.slane %v2822_v15, 4  ;;  %v2853_v29 = vshrl.u32 %v2582_v12, 16  ;;  %v2832_v32 = vor.u32 %v2831_v21, %v2827_v10  ;;  %v2842_v33 = vrot.slane %v2840_v22, 4 }
  0xb9   : > { %v2814_v31 = vsel %vm7034_vm8, %v2809_v20, %v2813_v2  ;;  %v2845_v34 = vrot.slane %v2843_v23, 5  ;;  %v2851_v41 = vrot.slane %v2849_v27, 5  ;;  %v2859_v46 = vshll.u32 %v2583_v18, 16 }
  0xba   : > { %v6104_v38 = vcombine.low %v2804_v14, %v2814_v31  ;;  %v2828_v40 = vsel %vm7034_vm8, %v2823_v25, %v2827_v10  ;;  %v2855_v43 = vrot.slane %v2853_v29, 4  ;;  %6572 = vmatmul.mubr.msk.bf16.gmra.mxu1 %vm520_vm2, %v6821_v9  ;;  %v2833_v45 = vrot.slane %v2832_v32, 4  ;;  %v2590_v9 = vld [vmem:[#allocation2 + $0xa8] sm:$0xf]  ;;  %v2591_v14 = vld [vmem:[#allocation2 + $0xac] sm:$0xf] }
  0xbb   : > { %v2846_v39 = vor.u32 %v2845_v34, %v2842_v33  ;;  %v2864_v47 = vshrl.u32 %v2584_v19, 16  ;;  %6575 = vmatprep.mubr.msk.bf16.mxu1 %vm520_vm2, %v6822_v17  ;;  %v2867_v42 = vshll.u32 %v2584_v19, 16  ;;  %v2873_v28 = vshll.u32 %v2585_v36, 16  ;;  %v2592_v19 = vld [vmem:[#allocation2 + $0xb0] sm:$0x1] }
  0xbc   : > { %6605 = vmatprep.mubr.msk.bf16.mxu0 %vm520_vm2, %v6104_v38  ;;  %v2856_v49 = vor.u32 %v2855_v43, %v2851_v41  ;;  %v2877_v50 = vshrl.u32 %v2585_v36, 16  ;;  %v2838_v35 = vsel %vm7034_vm8, %v2833_v45, %v2837_v26  ;;  %v2861_v52 = vrot.slane %v2859_v46, 5  ;;  %v7358_v43 = vld [vmem:[%s8455_s2 + $0x10] sm:$0x3] }
  0xbd   : > { %v2847_v51 = vrot.slane %v2846_v39, 4  ;;  %v2866_v53 = vrot.slane %v2864_v47, 4  ;;  %v6105_v55 = vcombine.low %v2828_v40, %v2838_v35  ;;  %v2869_v58 = vrot.slane %v2867_v42, 5  ;;  %v2596_v47 = vld [vmem:[#allocation2 + $0xc0] sm:$0xf]  ;;  %6768 = vmatprep.subr.msk.bf16.mxu0 %vm569_vm0, %v7358_v43  ;;  %v6826_v42 = vld [vmem:[#allocation2 + $0xb4] sm:$0xff]  }
  0xbe   : > { %v2857_v56 = vrot.slane %v2856_v49, 4  ;;  %v2875_v59 = vrot.slane %v2873_v28, 5  ;;  %v2879_v62 = vrot.slane %v2877_v50, 4  ;;  %v2883_v63 = vshll.u32 %v2586_v44, 16  ;;  %v6825_v44 = vld [vmem:[#allocation2 + $0xa8] sm:$0xff]  }
  0xbf   : > { %v2852_v61 = vsel %vm7034_vm8, %v2847_v51, %v2851_v41  ;;  %v2888_v2 = vshrl.u32 %v2587_v6, 16  ;;  %6606 = vmatmul.mubr.msk.bf16.gmra.mxu0 %vm520_vm2, %v6105_v55  ;;  %v2870_v4 = vor.u32 %v2869_v58, %v2866_v53  ;;  %v2891_v5 = vshll.u32 %v2587_v6, 16  ;;  %v2595_v41 = vld [vmem:[#allocation2 + $0xbc] sm:$0x1]  ;;  %v2597_v35 = vld [vmem:[#allocation2 + $0xc4] sm:$0xf] }
  0xc0   : > { %v2862_v3 = vsel %vm7034_vm8, %v2857_v56, %v2861_v52  ;;  %v2897_v8 = vshll.u32 %v2588_v48, 16  ;;  %v2880_v11 = vor.u32 %v2879_v62, %v2875_v59  ;;  %v2885_v12 = vrot.slane %v2883_v63, 5 }
  0xc1   : > { %v6106_v10 = vcombine.low %v2852_v61, %v2862_v3  ;;  %v2890_v13 = vrot.slane %v2888_v2, 4  ;;  %v2871_v15 = vrot.slane %v2870_v4, 4  ;;  %v2893_v16 = vrot.slane %v2891_v5, 5  ;;  %v2598_v3 = vld [vmem:[#allocation2 + $0xc8] sm:$0x1] }
  0xc2   : > { %v2899_v17 = vrot.slane %v2897_v8, 5  ;;  %v2901_v18 = vshrl.u32 %v2588_v48, 16  ;;  %6576 = vmatmul.mubr.msk.bf16.gmra.mxu1 %vm520_vm2, %v6823_v57  ;;  %v2881_v20 = vrot.slane %v2880_v11, 4  ;;  %v2907_v21 = vshll.u32 %v2589_v60, 16  ;;  %v3341_v8 = vld [vmem:[#allocation2 + $0xc] sm:$0xe] }
  0xc3   : > { %6609 = vmatprep.mubr.msk.bf16.mxu0 %vm520_vm2, %v6106_v10  ;;  %v2912_v22 = vshrl.u32 %v2590_v9, 16  ;;  %v2915_v23 = vshll.u32 %v2590_v9, 16  ;;  %v2876_v25 = vsel %vm7034_vm8, %v2871_v15, %v2875_v59  ;;  %6579 = vmatprep.mubr.msk.bf16.mxu1 %vm520_vm2, %v6824_v0  ;;  %v2894_v26 = vor.u32 %v2893_v16, %v2890_v13  ;;  %v3342_v9 = vld [vmem:[#allocation2 + $0x10] sm:$0xf]  ;;  %v3344_v15 = vld [vmem:[#allocation2 + $0x18] sm:$0xe] }
  0xc4   : > { %v2903_v27 = vrot.slane %v2901_v18, 4  ;;  %v2921_v29 = vshll.u32 %v2591_v14, 16  ;;  %v2886_v31 = vsel %vm7034_vm8, %v2881_v20, %v2885_v12  ;;  %v2909_v32 = vrot.slane %v2907_v21, 5  ;;  %v6827_v21 = vld [vmem:[#allocation2 + $0xc0] sm:$0xff]  }
  0xc5   : > { %v2914_v33 = vrot.slane %v2912_v22, 4  ;;  %v2917_v34 = vrot.slane %v2915_v23, 5  ;;  %v6107_v36 = vcombine.low %v2876_v25, %v2886_v31  ;;  %v2895_v37 = vrot.slane %v2894_v26, 4  ;;  %v3345_v25 = vld [vmem:[#allocation2 + $0x1c] sm:$0xf] }
  0xc6   : > { %v2904_v38 = vor.u32 %v2903_v27, %v2899_v17  ;;  %v2923_v40 = vrot.slane %v2921_v29, 5  ;;  %v2925_v45 = vshrl.u32 %v2591_v14, 16  ;;  %v2931_v39 = vshll.u32 %v2592_v19, 16  ;;  %v3343_v14 = vld [vmem:[#allocation2 + $0x14] sm:$0x1] }
  0xc7   : > { %v2918_v6 = vor.u32 %v2917_v34, %v2914_v33  ;;  %v2936_v46 = vshrl.u32 %v2593_v24, 16  ;;  %6610 = vmatmul.mubr.msk.bf16.gmra.mxu0 %vm520_vm2, %v6107_v36  ;;  %v2900_v48 = vsel %vm7034_vm8, %v2895_v37, %v2899_v17  ;;  %v2939_v28 = vshll.u32 %v2593_v24, 16  ;;  %v3346_v31 = vld [vmem:[#allocation2 + $0x20] sm:$0x1] }
  0xc8   : > { %v2905_v49 = vrot.slane %v2904_v38, 4  ;;  %v2945_v50 = vshll.u32 %v2594_v30, 16  ;;  %v2927_v52 = vrot.slane %v2925_v45, 4  ;;  %v2933_v53 = vrot.slane %v2931_v39, 5  ;;  %v3349_v45 = vld [vmem:[#allocation2 + $0x2c] sm:$0x1] }
  0xc9   : > { %v2919_v51 = vrot.slane %v2918_v6, 4  ;;  %v2938_v55 = vrot.slane %v2936_v46, 4  ;;  %v2941_v57 = vrot.slane %v2939_v28, 5  ;;  %v2949_v59 = vshrl.u32 %v2594_v30, 16  ;;  %v3348_v6 = vld [vmem:[#allocation2 + $0x28] sm:$0xf] }
  0xca   : > { %v2910_v56 = vsel %vm7034_vm8, %v2905_v49, %v2909_v32  ;;  %v2947_v58 = vrot.slane %v2945_v50, 5  ;;  %6580 = vmatmul.mubr.msk.bf16.gmra.mxu1 %vm520_vm2, %v6825_v44  ;;  %v2928_v62 = vor.u32 %v2927_v52, %v2923_v40  ;;  %v2955_v63 = vshll.u32 %v2595_v41, 16  ;;  %v3347_v32 = vld [vmem:[#allocation2 + $0x24] sm:$0xe]  ;;  %v3350_v49 = vld [vmem:[#allocation2 + $0x30] sm:$0xe] }
  0xcb   : > { %v6108_v60 = vcombine.low %v2900_v48, %v2910_v56  ;;  %v2924_v61 = vsel %vm7034_vm8, %v2919_v51, %v2923_v40  ;;  %6583 = vmatprep.mubr.msk.bf16.mxu1 %vm520_vm2, %v6826_v42  ;;  %v2942_v0 = vor.u32 %v2941_v57, %v2938_v55  ;;  %v2951_v2 = vrot.slane %v2949_v59, 4  ;;  %v3351_v42 = vld [vmem:[#allocation2 + $0x34] sm:$0xf]  ;;  %v3352_v51 = vld [vmem:[#allocation2 + $0x38] sm:$0x1] }
  0xcc   : > { %v2960_v4 = vshrl.u32 %v2596_v47, 16  ;;  %v2963_v5 = vshll.u32 %v2596_v47, 16  ;;  %v2929_v10 = vrot.slane %v2928_v62, 4  ;;  %v2957_v11 = vrot.slane %v2955_v63, 5  ;;  %v3354_v52 = vld [vmem:[#allocation2 + $0x40] sm:$0xf] }
  0xcd   : > { %6613 = vmatprep.mubr.msk.bf16.mxu0 %vm520_vm2, %v6108_v60  ;;  %v2969_v12 = vshll.u32 %v2597_v35, 16  ;;  %v2973_v13 = vshrl.u32 %v2597_v35, 16  ;;  %v2943_v16 = vrot.slane %v2942_v0, 4  ;;  %v2952_v17 = vor.u32 %v2951_v2, %v2947_v58  ;;  %v6828_v59 = vld [vmem:[#allocation2 + $0x18] sm:$0xff]   ;;  %v3355_v63 = vld [vmem:[#allocation2 + $0x44] sm:$0x1] }
  0xce   : > { %v2962_v18 = vrot.slane %v2960_v4, 4  ;;  %v2965_v19 = vrot.slane %v2963_v5, 5  ;;  %v2934_v20 = vsel %vm7034_vm8, %v2929_v10, %v2933_v53  ;;  %v2979_v24 = vshll.u32 %v2598_v3, 16  ;;  %v3353_v62 = vld [vmem:[#allocation2 + $0x3c] sm:$0xe] }
  0xcf   : > { %v2971_v22 = vrot.slane %v2969_v12, 5  ;;  %v2975_v23 = vrot.slane %v2973_v13, 4  ;;  %v6109_v26 = vcombine.low %v2924_v61, %v2934_v20  ;;  %v2948_v27 = vsel %vm7034_vm8, %v2943_v16, %v2947_v58  ;;  %v7393_v5 = vld [vmem:[#allocation2 + $0x4c] sm:$0xf]  ;;  %v7398_v12 = vld [vmem:[#allocation2 + $0x48] sm:$0xe] }
  0xd0   : > { %v2953_v29 = vrot.slane %v2952_v17, 4  ;;  %v2966_v30 = vor.u32 %v2965_v19, %v2962_v18  ;;  %v2981_v34 = vrot.slane %v2979_v24, 5  ;;  %v6128_v36 = vrot.slane %v3341_v8, 9  ;;  %v3358_v16 = vld [vmem:[#allocation2 + $0x50] sm:$0x1] }
  0xd1   : > { %v2976_v33 = vor.u32 %v2975_v23, %v2971_v22  ;;  %v3439_v37 = vrot.slane %v3342_v9, 5  ;;  %6614 = vmatmul.mubr.msk.bf16.gmra.mxu0 %vm520_vm2, %v6109_v26  ;;  %v3442_v41 = vrot.slane %v3343_v14, 5  ;;  %v6129_v44 = vrot.slane %v3344_v15, 9  ;;  %v7403_v20 = vld [vmem:[#allocation2 + $0x54] sm:$0xe] }
  0xd2   : > { %v2958_v38 = vsel %vm7034_vm8, %v2953_v29, %v2957_v11  ;;  %v2967_v40 = vrot.slane %v2966_v30, 4  ;;  %6584 = vmatmul.mubr.msk.bf16.gmra.mxu1 %vm520_vm2, %v6827_v21  ;;  %v3446_v50 = vrot.slane %v3345_v25, 5  ;;  %v3449_v35 = vrot.slane %v3346_v31, 5  ;;  %v7411_v23 = vld [vmem:[#allocation2 + $0x5c] sm:$0x1]  ;;  %v6829_v29 = vld [vmem:[#allocation2 + $0x24] sm:$0xff]  }
  0xd3   : > { %v6110_v39 = vcombine.low %v2948_v27, %v2958_v38  ;;  %v2977_v46 = vrot.slane %v2976_v33, 4  ;;  %v3440_v47 = vsel %vm7041_vm9, %v6128_v36, %v3439_v37  ;;  %v3441_v48 = vrot.slane %v3439_v37, 4  ;;  %v7413_v24 = vld [vmem:[#allocation2 + $0x64] sm:$0xf]  ;;  %v7427_v36 = vld [vmem:[#allocation2 + $0x70] sm:$0xf] }
  0xd4   : > { %v2972_v28 = vsel %vm7034_vm8, %v2967_v40, %v2971_v22  ;;  %v6130_v56 = vrot.slane %v3347_v32, 9  ;;  %v3447_v60 = vsel %vm7041_vm9, %v6129_v44, %v3446_v50  ;;  %v3448_v61 = vrot.slane %v3446_v50, 4  ;;  %v7409_v22 = vld [vmem:[#allocation2 + $0x58] sm:$0xf]  ;;  %v3364_v44 = vld [vmem:[#allocation2 + $0x68] sm:$0x1] }
  0xd5   : > { %6617 = vmatprep.mubr.msk.bf16.mxu0 %vm520_vm2, %v6110_v39  ;;  %v2982_v53 = vsel %vm7034_vm8, %v2977_v46, %v2981_v34  ;;  %v3443_v55 = vsel %vm7041_vm9, %v3441_v48, %v3442_v41  ;;  %v4861_v0 = vsel %vm569_vm0, %v7339_v54, 0  ;;  %v3453_v2 = vrot.slane %v3348_v6, 5  ;;  %v7425_v34 = vld [vmem:[#allocation2 + $0x60] sm:$0xe] }
  0xd6   : > { %v6111_v57 = vcombine.low %v2972_v28, %v2982_v53  ;;  %v6145_v58 = vcombine.low %v3440_v47, %v3443_v55  ;;  %v3456_v3 = vrot.slane %v3349_v45, 5  ;;  %v3460_v4 = vrot.slane %v3351_v42, 5  ;;  %v7435_v45 = vld [vmem:[#allocation2 + $0x6c] sm:$0xe]  ;;  %v7441_v42 = vld [vmem:[#allocation2 + $0x74] sm:$0x1] }
  0xd7   : > { %v3450_v8 = vsel %vm7041_vm9, %v3448_v61, %v3449_v35  ;;  %v6131_v9 = vrot.slane %v3350_v49, 9  ;;  %v3463_v10 = vrot.slane %v3352_v51, 5  ;;  %v3467_v11 = vrot.slane %v3354_v52, 5  ;;  %v7446_v52 = vld [vmem:[#allocation2 + $0x78] sm:$0xe] }
  0xd8   : > { %6623 = vmatprep.mubr.msk.bf16.mxu1 %vm520_vm2, %v6145_v58  ;;  %v6146_v13 = vcombine.low %v3447_v60, %v3450_v8  ;;  %v3454_v14 = vsel %vm7041_vm9, %v6130_v56, %v3453_v2  ;;  %v3455_v54 = vrot.slane %v3453_v2, 4  ;;  %v6132_v15 = vrot.slane %v3353_v62, 9  ;;  %v7448_v53 = vld [vmem:[#allocation2 + $0x7c] sm:$0xf]  ;;  %v3371_v8 = vld [vmem:[#allocation2 + $0x84] sm:$0xe] }
  0xd9   : > { %6618 = vmatmul.mubr.msk.bf16.gmra.mxu0 %vm520_vm2, %v6111_v57  ;;  %v3462_v17 = vrot.slane %v3460_v4, 4  ;;  %v3469_v18 = vrot.slane %v3467_v11, 4  ;;  %v3470_v19 = vrot.slane %v3355_v63, 5  ;;  %v5427_v25 = vsel %vm569_vm0, %v7358_v43, 0  ;;  %v6830_v43 = vld [vmem:[#allocation2 + $0x30] sm:$0xff]   ;;  %v6831_v2 = vld [vmem:[#allocation2 + $0x3c] sm:$0xff]  }
  0xda   : > { %6657 = vmatprep.mubr.msk.bf16.mxu0 %vm520_vm2, %v6828_v59  ;;  %6624 = vmatmul.mubr.msk.bf16.vlgmr.msra.gmra.mxu1 %vm520_vm2, %v6146_v13  ;;  %v3457_v21 = vsel %vm7041_vm9, %v3455_v54, %v3456_v3  ;;  %v3474_v27 = vrot.slane %v7393_v5, 5  ;;  %v3461_v30 = vsel %vm7041_vm9, %v6131_v9, %v3460_v4  ;;  %v3468_v32 = vsel %vm7041_vm9, %v6132_v15, %v3467_v11  ;;  %v7453_v57 = vld [vmem:[#allocation2 + $0x80] sm:$0x1]  ;;  %v3372_v9 = vld [vmem:[#allocation2 + $0x88] sm:$0xf] }
  0xdb   : > { %6690 = vmatpush3.bf16.msra.mxu1 %v4861_v0  ;;  %v6147_v26 = vcombine.low %v3454_v14, %v3457_v21  ;;  %v3464_v31 = vsel %vm7041_vm9, %v3462_v17, %v3463_v10  ;;  %v6133_v33 = vrot.slane %v7398_v12, 9  ;;  %v3471_v37 = vsel %vm7041_vm9, %v3469_v18, %v3470_v19  ;;  %v3373_v10 = vld [vmem:[#allocation2 + $0x8c] sm:$0x1]  ;;  %v3374_v19 = vld [vmem:[#allocation2 + $0x90] sm:$0xe] }
  0xdc   : > { %v3477_v38 = vrot.slane %v3358_v16, 5  ;;  %v6134_v40 = vrot.slane %v7403_v20, 9  ;;  %v3481_v41 = vrot.slane %v7409_v22, 5  ;;  %v3488_v6 = vrot.slane %v7413_v24, 5  ;;  %v6832_v11 = vld [vmem:[#allocation2 + $0x48] sm:$0xff]  }
  0xdd   : > { %6627 = vmatprep.mubr.msk.bf16.mxu1 %vm520_vm2, %v6147_v26  ;;  %v3495_v39 = vrot.slane %v7427_v36, 5  ;;  %v6148_v47 = vcombine.low %v3461_v30, %v3464_v31  ;;  %v3476_v48 = vrot.slane %v3474_v27, 4  ;;  %v3484_v49 = vrot.slane %v7411_v23, 5  ;;  %v3375_v20 = vld [vmem:[#allocation2 + $0x94] sm:$0xf] }
  0xde   : > { %v6149_v50 = vcombine.low %v3468_v32, %v3471_v37  ;;  %v6135_v35 = vrot.slane %v7425_v34, 9  ;;  %v3491_v51 = vrot.slane %v3364_v44, 5  ;;  %v3483_v56 = vrot.slane %v3481_v41, 4  ;;  %v3377_v32 = vld [vmem:[#allocation2 + $0x9c] sm:$0xe] }
  0xdf   : > { %v3502_v58 = vrot.slane %v7448_v53, 5  ;;  %v3490_v60 = vrot.slane %v3488_v6, 4  ;;  %v6136_v61 = vrot.slane %v7435_v45, 9  ;;  %v3497_v62 = vrot.slane %v3495_v39, 4 }
  0xe0   : > { %v3498_v63 = vrot.slane %v7441_v42, 5  ;;  %v3475_v3 = vsel %vm7041_vm9, %v6133_v33, %v3474_v27  ;;  %v3478_v4 = vsel %vm7041_vm9, %v3476_v48, %v3477_v38  ;;  %v6137_v12 = vrot.slane %v7446_v52, 9  ;;  %v3378_v38 = vld [vmem:[#allocation2 + $0xa0] sm:$0xf] }
  0xe1   : > { %6658 = vmatmul.mubr.msk.bf16.vlgmr.msra.gmra.mxu0 %vm520_vm2, %v6829_v29  ;;  %v3504_v13 = vrot.slane %v3502_v58, 4  ;;  %v3505_v14 = vrot.slane %v7453_v57, 5  ;;  %v3509_v15 = vrot.slane %v3372_v9, 5  ;;  %v3482_v16 = vsel %vm7041_vm9, %v6134_v40, %v3481_v41  ;;  %v3379_v40 = vld [vmem:[#allocation2 + $0xa4] sm:$0x1] }
  0xe2   : > { %6724 = vmatpush3.bf16.msra.mxu0 %v5427_v25  ;;  %6661 = vmatprep.mubr.msk.bf16.mxu0 %vm520_vm2, %v6830_v43  ;;  %v3485_v17 = vsel %vm7041_vm9, %v3483_v56, %v3484_v49  ;;  %v6150_v21 = vcombine.low %v3475_v3, %v3478_v4  ;;  %v6138_v22 = vrot.slane %v3371_v8, 9  ;;  %v3512_v23 = vrot.slane %v3373_v10, 5  ;;  %v3376_v25 = vld [vmem:[#allocation2 + $0x98] sm:$0x1]  ;;  %v3382_v57 = vld [vmem:[#allocation2 + $0xb0] sm:$0x1] }
  0xe3   : > { %v7438_v46 = vpop.f32.mrf.mxu0  ;;  %6628 = vmatmul.mubr.msk.bf16.gmra.mxu1 %vm520_vm2, %v6148_v47  ;;  %v7487_v26 = vsel %vm7041_vm9, %v6135_v35, %v3488_v6  ;;  %v7491_v27 = vsel %vm7041_vm9, %v3490_v60, %v3491_v51  ;;  %v3511_v29 = vrot.slane %v3509_v15, 4  ;;  %v3516_v31 = vrot.slane %v3375_v20, 5  ;;  %v6833_v35 = vld [vmem:[#allocation2 + $0x54] sm:$0xff]   ;;  %v6834_v4 = vld [vmem:[#allocation2 + $0x60] sm:$0xff]  }
  0xe4   : > { %v7443_v28 = vpop.f32.mrf.mxu1  ;;  %6631 = vmatprep.mubr.msk.bf16.mxu1 %vm520_vm2, %v6149_v50  ;;  %v6151_v33 = vcombine.low %v3482_v16, %v3485_v17  ;;  %v6139_v34 = vrot.slane %v3374_v19, 9  ;;  %v3519_v43 = vrot.slane %v3376_v25, 5  ;;  %v7502_v41 = vsel %vm7041_vm9, %v6136_v61, %v3495_v39  ;;  %v3380_v50 = vld [vmem:[#allocation2 + $0xa8] sm:$0xe]  ;;  %v3381_v39 = vld [vmem:[#allocation2 + $0xac] sm:$0xf] }
  0xe5   : > { %v7450_v55 = vpop.f32.mrf.mxu0  ;;  %v3518_v44 = vrot.slane %v3516_v31, 4  ;;  %v3523_v45 = vrot.slane %v3378_v38, 5  ;;  %v6152_v47 = vcombine.low %v7487_v26, %v7491_v27  ;;  %v7511_v48 = vsel %vm7041_vm9, %v3497_v62, %v3498_v63  ;;  %v3383_v3 = vld [vmem:[#allocation2 + $0xb4] sm:$0xe] }
  0xe6   : > { %v7456_v59 = vpop.f32.mrf.mxu1  ;;  %v6140_v36 = vrot.slane %v3377_v32, 9  ;;  %v3526_v42 = vrot.slane %v3379_v40, 5  ;;  %v7518_v51 = vsel %vm7041_vm9, %v6137_v12, %v3502_v58  ;;  %v7522_v52 = vsel %vm7041_vm9, %v3504_v13, %v3505_v14  ;;  %v3384_v12 = vld [vmem:[#allocation2 + $0xb8] sm:$0xf]  ;;  %v3385_v13 = vld [vmem:[#allocation2 + $0xbc] sm:$0x1] }
  0xe7   : > { %v7463_v0 = vpop.f32.mrf.mxu0  ;;  %v3525_v56 = vrot.slane %v3523_v45, 4  ;;  %v6141_v60 = vrot.slane %v3380_v50, 9  ;;  %v7529_v61 = vsel %vm7041_vm9, %v6138_v22, %v3509_v15  ;;  %v7533_v62 = vsel %vm7041_vm9, %v3511_v29, %v3512_v23  ;;  %v3387_v32 = vld [vmem:[#allocation2 + $0xc4] sm:$0xf]  ;;  %v3388_v40 = vld [vmem:[#allocation2 + $0xc8] sm:$0x1] }
  0xe8   : > { %v7470_v5 = vpop.f32.mrf.mxu1  ;;  %v3530_v63 = vrot.slane %v3381_v39, 5  ;;  %v6153_v8 = vcombine.low %v7502_v41, %v7511_v48  ;;  %v7541_v9 = vsel %vm7041_vm9, %v6139_v34, %v3516_v31  ;;  %v7545_v10 = vsel %vm7041_vm9, %v3518_v44, %v3519_v43  ;;  %v3386_v31 = vld [vmem:[#allocation2 + $0xc0] sm:$0xe]  ;;  %v397_v44 = vld [vmem:[%s7314_s14 + $0xc] sm:$0xf] }
  0xe9   : > { %v7475_v54 = vpop.f32.mrf.mxu0  ;;  %6662 = vmatmul.mubr.msk.bf16.gmra.mxu0 %vm520_vm2, %v6831_v2  ;;  %v3533_v2 = vrot.slane %v3382_v57, 5  ;;  %v6142_v14 = vrot.slane %v3383_v3, 9  ;;  %v7551_v15 = vsel %vm7041_vm9, %v6140_v36, %v3523_v45  ;;  %v7555_v16 = vsel %vm7041_vm9, %v3525_v56, %v3526_v42  ;;  %v398_v39 = vld [vmem:[%s7314_s14 + $0x10] sm:$0xf]  ;;  %404 = vst.msk [vmem:[#allocation2 + $0xcc] sm:$0xf] %vm344_vm1, %v397_v44 }
  0xea   : > { %v7481_v18 = vpop.f32.mrf.mxu1  ;;  %6665 = vmatprep.mubr.msk.bf16.mxu0 %vm520_vm2, %v6832_v11  ;;  %v3532_v19 = vrot.slane %v3530_v63, 4  ;;  %v3537_v20 = vrot.slane %v3384_v12, 5  ;;  %v7567_v25 = vsel %vm7041_vm9, %v6141_v60, %v3530_v63  ;;  %v3540_v29 = vrot.slane %v3385_v13, 5  ;;  %v4330_v56 = vld [vmem:[#allocation2 + $0x18] sm:$0xf] }
  0xeb   : > { %v7483_v24 = vpop.f32.mrf.mxu0  ;;  %6632 = vmatmul.mubr.msk.bf16.gmra.mxu1 %vm520_vm2, %v6150_v21  ;;  %v6143_v41 = vrot.slane %v3386_v31, 9  ;;  %v3544_v42 = vrot.slane %v3387_v32, 5  ;;  %v3547_v50 = vrot.slane %v3388_v40, 5  ;;  %405 = vst.msk [vmem:[#allocation2 + $0xd0] sm:$0xf] %vm344_vm1, %v398_v39  ;;  %v4379_v3 = vshrl.u32 %v4330_v56, 16 }
  0xec   : > { %v7493_v30 = vpop.f32.mrf.mxu1  ;;  %6635 = vmatprep.mubr.msk.bf16.mxu1 %vm520_vm2, %v6151_v33  ;;  %v7571_v33 = vsel %vm7041_vm9, %v3532_v19, %v3533_v2  ;;  %v7577_v43 = vsel %vm7041_vm9, %v6142_v14, %v3537_v20  ;;  %v3539_v38 = vrot.slane %v3537_v20, 4  ;;  %v4331_v63 = vld [vmem:[#allocation2 + $0x1c] sm:$0xf]  ;;  %v4332_v2 = vld [vmem:[#allocation2 + $0x20] sm:$0x1]  ;;  %v4382_v12 = vshll.u32 %v4330_v56, 16 }
  0xed   : > { %v7495_v37 = vpop.f32.mrf.mxu0  ;;  %v7609_v19 = vsel %vm7041_vm9, %v6143_v41, %v3544_v42  ;;  %v3546_v20 = vrot.slane %v3544_v42, 4  ;;  %v5120_v31 = vld [vmem:[#allocation2 + $0x18] sm:$0xe]  ;;  %v5121_v32 = vld [vmem:[#allocation2 + $0x1c] sm:$0xf]  ;;  %v4381_v26 = vrot.slane %v4379_v3, 4 }
  0xee   : > { %v7504_v6 = vpop.f32.mrf.mxu1  ;;  %v7596_v60 = vsel %vm7041_vm9, %v3539_v38, %v3540_v29  ;;  %v4388_v29 = vshll.u32 %v4331_v63, 16  ;;  %v4384_v27 = vrot.slane %v4382_v12, 5  ;;  %v4398_v40 = vshll.u32 %v4332_v2, 16  ;;  %v5122_v44 = vld [vmem:[#allocation2 + $0x20] sm:$0x1]  ;;  %v6836_v39 = vld [vmem:[#allocation2 + $0x78] sm:$0xff]  }
  0xef   : > { %v7513_v49 = vpop.f32.mrf.mxu0  ;;  %v7618_v41 = vsel %vm7041_vm9, %v3546_v20, %v3547_v50  ;;  %v6243_v14 = vrot.slane %v5120_v31, 9  ;;  %v5218_v57 = vrot.slane %v5121_v32, 5  ;;  %v4333_v48 = vld [vmem:[#allocation2 + $0x24] sm:$0xf]  ;;  %v4334_v12 = vld [vmem:[#allocation2 + $0x28] sm:$0xf] }
  0xf0   : > { %v7524_v53 = vpop.f32.mrf.mxu1  ;;  %v4390_v42 = vrot.slane %v4388_v29, 5  ;;  %v4385_v3 = vor.u32 %v4384_v27, %v4381_v26  ;;  %v4400_v2 = vrot.slane %v4398_v40, 5  ;;  %v4335_v22 = vld [vmem:[#allocation2 + $0x2c] sm:$0x1]  ;;  %v5221_v29 = vrot.slane %v5122_v44, 5 }
  0xf1   : > { %8462 = vst [vmem:[#allocation4_spill] sm:$0xff] %v7524_v53  ;;  %v7535_v58 = vpop.f32.mrf.mxu0  ;;  %6666 = vmatmul.mubr.msk.bf16.gmra.mxu0 %vm520_vm2, %v6833_v35  ;;  %v7628_v50 = vsel %vm7041_vm9, %v6243_v14, %v5218_v57  ;;  %v5220_v20 = vrot.slane %v5218_v57, 4  ;;  %v4403_v31 = vshrl.u32 %v4333_v48, 16  ;;  %v5123_v32 = vld [vmem:[#allocation2 + $0x24] sm:$0xe]  ;;  %v4412_v26 = vshll.u32 %v4334_v12, 16 }
  0xf2   : > { %v7547_v11 = vpop.f32.mrf.mxu1  ;;  %6669 = vmatprep.mubr.msk.bf16.mxu0 %vm520_vm2, %v6834_v4  ;;  %v6835_v4 = vld [vmem:[#allocation2 + $0x6c] sm:$0xff]   ;;  %v4416_v40 = vshrl.u32 %v4334_v12, 16  ;;  %v4422_v57 = vshll.u32 %v4335_v22, 16 }
  0xf3   : > { %8463 = vst [vmem:[#allocation5_spill] sm:$0xff] %v7547_v11  ;;  %v7557_v17 = vpop.f32.mrf.mxu0  ;;  %6636 = vmatmul.mubr.msk.bf16.gmra.mxu1 %vm520_vm2, %v6152_v47  ;;  %v4392_v47 = vshrl.u32 %v4331_v63, 16  ;;  %v4405_v14 = vrot.slane %v4403_v31, 4  ;;  %v6244_v31 = vrot.slane %v5123_v32, 9 }
  0xf4   : > { %v7563_v23 = vpop.f32.mrf.mxu1  ;;  %6639 = vmatprep.mubr.msk.bf16.mxu1 %vm520_vm2, %v6153_v8  ;;  %v4406_v8 = vshll.u32 %v4333_v48, 16  ;;  %v4418_v12 = vrot.slane %v4416_v40, 4 }
  0xf5   : > { %8464 = vst [vmem:[#allocation6_spill] sm:$0xff] %v7563_v23  ;;  %v7573_v34 = vpop.f32.mrf.mxu0  ;;  %v4394_v63 = vrot.slane %v4392_v47, 4  ;;  %v7637_v47 = vsel %vm7041_vm9, %v5220_v20, %v5221_v29  ;;  %v8470_v20 = vcombine.low %v7518_v51, %v7522_v52  ;;  %v4424_v29 = vrot.slane %v4422_v57, 5  ;;  %v4336_v23 = vld [vmem:[#allocation2 + $0x30] sm:$0xf] }
  0xf6   : > { %v7585_v36 = vpop.f32.mrf.mxu1  ;;  %v4427_v57 = vshrl.u32 %v4336_v23, 16 }
  0xf7   : > { %8465 = vst [vmem:[#allocation7_spill] sm:$0xff] %v7585_v36  ;;  %v7592_v35 = vpop.f32.mrf.mxu0  ;;  %v4395_v36 = vor.u32 %v4394_v63, %v4390_v42  ;;  %v4408_v63 = vrot.slane %v4406_v8, 5 }
  0xf8   : > { %v7603_v13 = vpop.f32.mrf.mxu1 }
  0xf9   : > { %8466 = vst [vmem:[#allocation8_spill] sm:$0xff] %v7603_v13  ;;  %v7612_v38 = vpop.f32.mrf.mxu0  ;;  %v4386_v13 = vrot.slane %v4385_v3, 4  ;;  %6670 = vmatmul.mubr.msk.bf16.gmra.mxu0 %vm520_vm2, %v6835_v4  ;;  %v4396_v48 = vrot.slane %v4395_v36, 4  ;;  %v8472_v36 = vcombine.low %v7529_v61, %v7533_v62  ;;  %v4409_v51 = vor.u32 %v4408_v63, %v4405_v14  ;;  %v6837_v4 = vld [vmem:[#allocation2 + $0x84] sm:$0xff]   ;;  %v6838_v61 = vld [vmem:[#allocation2 + $0x90] sm:$0xff]  }
  0xfa   : > { %v7614_v56 = vpop.f32.mrf.mxu1  ;;  %6673 = vmatprep.mubr.msk.bf16.mxu0 %vm520_vm2, %v6836_v39  ;;  %v4414_v39 = vrot.slane %v4412_v26, 5  ;;  %v4429_v63 = vrot.slane %v4427_v57, 4 }
  0xfb   : > { %8467 = vst [vmem:[#allocation9_spill] sm:$0xff] %v7614_v56  ;;  %v7620_v45 = vpop.f32.mrf.mxu0  ;;  %v4391_v3 = vsel %vm7034_vm8, %v4386_v13, %v4390_v42  ;;  %6640 = vmatmul.mubr.msk.bf16.gmra.mxu1 %vm520_vm2, %v8470_v20  ;;  %v4401_v42 = vsel %vm7034_vm8, %v4396_v48, %v4400_v2  ;;  %v4337_v20 = vld [vmem:[#allocation2 + $0x34] sm:$0xf]  ;;  %v4338_v48 = vld [vmem:[#allocation2 + $0x38] sm:$0x1] }
  0xfc   : > { %v7624_v21 = vpop.f32.mrf.mxu1  ;;  %6643 = vmatprep.mubr.msk.bf16.mxu1 %vm520_vm2, %v8472_v36  ;;  %v7662_v40 = vcombine.low %v4391_v3, %v4401_v42  ;;  %v4419_v32 = vor.u32 %v4418_v12, %v4414_v39  ;;  %v4410_v36 = vrot.slane %v4409_v51, 4  ;;  %v4436_v14 = vshll.u32 %v4337_v20, 16  ;;  %v5126_v51 = vld [vmem:[#allocation2 + $0x30] sm:$0xe] }
  0xfd   : > { %8468 = vst [vmem:[#allocation10_spill] sm:$0xff] %v7624_v21  ;;  %v7630_v56 = vpop.f32.mrf.mxu0  ;;  %v5125_v21 = vld [vmem:[#allocation2 + $0x2c] sm:$0x1] }
  0xfe   : > { %v7633_v27 = vpop.f32.mrf.mxu1  ;;  %v5228_v8 = vrot.slane %v5125_v21, 5  ;;  %v4420_v21 = vrot.slane %v4419_v32, 4 }
  0xff   : > { %8469 = vst [vmem:[#allocation11_spill] sm:$0xff] %v7633_v27  ;;  %v7640_v44 = vpop.f32.mrf.mxu0  ;;  %v5124_v27 = vld [vmem:[#allocation2 + $0x28] sm:$0xf] }
 0x100   : > { %v7650_v22 = vpop.f32.mrf.mxu1  ;;  %v5225_v52 = vrot.slane %v5124_v27, 5  ;;  %v4425_v32 = vsel %vm7034_vm8, %v4420_v21, %v4424_v29  ;;  %v8474_v29 = vcombine.low %v7541_v9, %v7545_v10  ;;  %v4340_v9 = vld [vmem:[#allocation2 + $0x40] sm:$0xf] }
 0x101   : > { %8471 = vst [vmem:[#allocation12_spill] sm:$0xff] %v7650_v22  ;;  %v7656_v13 = vpop.f32.mrf.mxu0  ;;  %v4430_v22 = vshll.u32 %v4336_v23, 16  ;;  %v4415_v23 = vsel %vm7034_vm8, %v4410_v36, %v4414_v39  ;;  %6674 = vmatmul.mubr.msk.bf16.gmra.mxu0 %vm520_vm2, %v6837_v4  ;;  %v5128_v39 = vld [vmem:[#allocation2 + $0x38] sm:$0x1]  ;;  %v4446_v4 = vshll.u32 %v4338_v48, 16  ;;  %v6839_v10 = vld [vmem:[#allocation2 + $0x9c] sm:$0xff]  }
 0x102   : > { %v7660_v26 = vpop.f32.mrf.mxu1  ;;  %v7666_v11 = vsel %vm7041_vm9, %v6244_v31, %v5225_v52  ;;  %v5227_v2 = vrot.slane %v5225_v52, 4  ;;  %v4438_v31 = vrot.slane %v4436_v14, 5  ;;  %v5127_v52 = vld [vmem:[#allocation2 + $0x34] sm:$0xf]  ;;  %6677 = vmatprep.mubr.msk.bf16.mxu0 %vm520_vm2, %v6838_v61  ;;  %v7683_v36 = vcombine.low %v4415_v23, %v4425_v32  ;;  %v6840_v23 = vld [vmem:[#allocation2 + $0xa8] sm:$0xff]  }
 0x103   : > { %8473 = vst [vmem:[#allocation13_spill] sm:$0xff] %v7660_v26  ;;  %v6523_v62 = vpop.f32.mrf.mxu0  ;;  %v4432_v53 = vrot.slane %v4430_v22, 5  ;;  %v4440_v26 = vshrl.u32 %v4337_v20, 16  ;;  %6644 = vmatmul.mubr.msk.bf16.gmra.mxu1 %vm520_vm2, %v8474_v29  ;;  %v4339_v22 = vld [vmem:[#allocation2 + $0x3c] sm:$0xf]  ;;  %v8475_v61 = vcombine.low %v7551_v15, %v7555_v16  ;;  %v4448_v48 = vrot.slane %v4446_v4, 5 }
 0x104   : > { %v6489_v27 = vpop.f32.mrf.mxu1  ;;  %v7673_v12 = vsel %vm7041_vm9, %v5227_v2, %v5228_v8  ;;  %v5130_v4 = vld [vmem:[#allocation2 + $0x40] sm:$0xf] }
 0x105   : > { %v1497_v3 = vadd.f32 %v6489_v27, %v7438_v46  ;;  %v1905_v42 = vpop.f32.mrf.mxu0  ;;  %v4433_v20 = vor.u32 %v4432_v53, %v4429_v63  ;;  %v4442_v57 = vrot.slane %v4440_v26, 4  ;;  %v6245_v26 = vrot.slane %v5126_v51, 9  ;;  %6647 = vmatprep.mubr.msk.bf16.mxu1 %vm520_vm2, %v8475_v61 }
 0x106   : > { %v1336_v46 = vpop.f32.mrf.mxu1  ;;  %v5232_v63 = vrot.slane %v5127_v52, 5 }
 0x107   : > { %v7681_v8 = vadd.f32 %v6523_v62, %v1497_v3  ;;  %v1495_v2 = vadd.f32 %v1336_v46, %v7450_v55  ;;  %v6524_v14 = vpop.f32.mrf.mxu0  ;;  %v4434_v21 = vrot.slane %v4433_v20, 4  ;;  %v4443_v53 = vor.u32 %v4442_v57, %v4438_v31 }
 0x108   : > { %v6490_v27 = vpop.f32.mrf.mxu1  ;;  %v5235_v3 = vrot.slane %v5128_v39, 5  ;;  %v7701_v15 = vsel %vm7041_vm9, %v6245_v26, %v5232_v63  ;;  %v5234_v16 = vrot.slane %v5232_v63, 4  ;;  %v4451_v57 = vshrl.u32 %v4339_v22, 16  ;;  %v4342_v26 = vld [vmem:[#allocation2 + $0x48] sm:$0xf] }
 0x109   : > { %v7694_v62 = vadd.f32 %v1905_v42, %v1495_v2  ;;  %v1498_v55 = vadd.f32 %v6490_v27, %v7463_v0  ;;  %v1908_v46 = vpop.f32.mrf.mxu0  ;;  %v4439_v51 = vsel %vm7034_vm8, %v4434_v21, %v4438_v31  ;;  %v4444_v52 = vrot.slane %v4443_v53, 4  ;;  %v4341_v42 = vld [vmem:[#allocation2 + $0x44] sm:$0x1]  ;;  %v5129_v2 = vld [vmem:[#allocation2 + $0x3c] sm:$0xe]  ;;  %6678 = vmatmul.mubr.msk.bf16.gmra.mxu0 %vm520_vm2, %v6839_v10 }
 0x10a   : > { %v1339_v32 = vpop.f32.mrf.mxu1  ;;  %v4454_v39 = vshll.u32 %v4339_v22, 16  ;;  %v7710_v31 = vsel %vm7041_vm9, %v5234_v16, %v5235_v3  ;;  %v4460_v27 = vshll.u32 %v4340_v9, 16  ;;  %v4464_v21 = vshrl.u32 %v4340_v9, 16  ;;  %v5131_v53 = vld [vmem:[#allocation2 + $0x44] sm:$0x1]  ;;  %6681 = vmatprep.mubr.msk.bf16.mxu0 %vm520_vm2, %v6840_v23 }
 0x10b   : > { %v7703_v20 = vadd.f32 %v6524_v14, %v1498_v55  ;;  %v1496_v0 = vadd.f32 %v1339_v32, %v7475_v54  ;;  %v4449_v29 = vsel %vm7034_vm8, %v4444_v52, %v4448_v48  ;;  %v4453_v22 = vrot.slane %v4451_v57, 4  ;;  %v4345_v54 = vld [vmem:[#allocation2 + $0x54] sm:$0xf] }
 0x10c   : > { %v7714_v14 = vcombine.low %v4439_v51, %v4449_v29  ;;  %v6527_v61 = vpop.f32.mrf.mxu0  ;;  %v4456_v55 = vrot.slane %v4454_v39, 5  ;;  %v4462_v48 = vrot.slane %v4460_v27, 5  ;;  %v4466_v32 = vrot.slane %v4464_v21, 4  ;;  %v6493_v9 = vpop.f32.mrf.mxu1  ;;  %v4343_v21 = vld [vmem:[#allocation2 + $0x4c] sm:$0xf] }
 0x10d   : > { %v7712_v63 = vadd.f32 %v1908_v46, %v1496_v0  ;;  %v4470_v3 = vshll.u32 %v4341_v42, 16  ;;  %v6246_v52 = vrot.slane %v5129_v2, 9  ;;  %v5239_v16 = vrot.slane %v5130_v4, 5 }
 0x10e   : > { %v5242_v46 = vrot.slane %v5131_v53, 5  ;;  %v4475_v0 = vshrl.u32 %v4342_v26, 16  ;;  %v8476_v51 = vcombine.low %v7567_v25, %v7571_v33  ;;  %v1501_v57 = vadd.f32 %v6493_v9, %v7483_v24  ;;  %v1921_v27 = vpop.f32.mrf.mxu0  ;;  %v1352_v25 = vpop.f32.mrf.mxu1  ;;  %v6841_v53 = vld [vmem:[#allocation2 + $0xb4] sm:$0xff]   ;;  %v4344_v9 = vld [vmem:[#allocation2 + $0x50] sm:$0x1] }
 0x10f   : > { %v4457_v10 = vor.u32 %v4456_v55, %v4453_v22  ;;  %v4467_v29 = vor.u32 %v4466_v32, %v4462_v48  ;;  %v4472_v39 = vrot.slane %v4470_v3, 5  ;;  %v8477_v23 = vcombine.low %v7577_v43, %v7596_v60  ;;  %v6842_v43 = vld [vmem:[#allocation2 + $0xc0] sm:$0xff]  }
 0x110   : > { %6648 = vmatmul.mubr.msk.bf16.gmra.mxu1 %vm520_vm2, %v8476_v51  ;;  %v7731_v42 = vsel %vm7041_vm9, %v6246_v52, %v5239_v16  ;;  %v5241_v2 = vrot.slane %v5239_v16, 4  ;;  %v4477_v33 = vrot.slane %v4475_v0, 4  ;;  %v4478_v4 = vshll.u32 %v4342_v26, 16  ;;  %v6528_v3 = vpop.f32.mrf.mxu0  ;;  %v6494_v52 = vpop.f32.mrf.mxu1  ;;  %v5132_v0 = vld [vmem:[#allocation2 + $0x48] sm:$0xe] }
 0x111   : > { %6651 = vmatprep.mubr.msk.bf16.mxu1 %vm520_vm2, %v8477_v23  ;;  %v7733_v24 = vadd.f32 %v6527_v61, %v1501_v57  ;;  %v4458_v22 = vrot.slane %v4457_v10, 4  ;;  %v4468_v55 = vrot.slane %v4467_v29, 4  ;;  %v1499_v32 = vadd.f32 %v1352_v25, %v7495_v37  ;;  %v5133_v10 = vld [vmem:[#allocation2 + $0x4c] sm:$0xf]  ;;  %v5134_v29 = vld [vmem:[#allocation2 + $0x50] sm:$0x1]  ;;  %6682 = vmatmul.mubr.msk.bf16.gmra.mxu0 %vm520_vm2, %v6841_v53 }
 0x112   : > { %v7738_v60 = vsel %vm7041_vm9, %v5241_v2, %v5242_v46  ;;  %v4480_v51 = vrot.slane %v4478_v4, 5  ;;  %v4484_v16 = vshll.u32 %v4343_v21, 16  ;;  %v4488_v23 = vshrl.u32 %v4343_v21, 16  ;;  %v1355_v25 = vpop.f32.mrf.mxu1  ;;  %6685 = vmatprep.mubr.msk.bf16.mxu0 %vm520_vm2, %v6842_v43 }
 0x113   : > { %v4463_v26 = vsel %vm7034_vm8, %v4458_v22, %v4462_v48  ;;  %v4473_v61 = vsel %vm7034_vm8, %v4468_v55, %v4472_v39  ;;  %v7746_v57 = vadd.f32 %v1921_v27, %v1499_v32  ;;  %v1502_v2 = vadd.f32 %v6494_v52, %v7513_v49  ;;  %v1924_v39 = vpop.f32.mrf.mxu0  ;;  %v4346_v49 = vld [vmem:[#allocation2 + $0x58] sm:$0xf] }
 0x114   : > { %v7748_v46 = vcombine.low %v4463_v26, %v4473_v61  ;;  %v4481_v21 = vor.u32 %v4480_v51, %v4477_v33  ;;  %v4486_v4 = vrot.slane %v4484_v16, 5  ;;  %v1500_v48 = vadd.f32 %v1355_v25, %v7535_v58  ;;  %v4347_v51 = vld [vmem:[#allocation2 + $0x5c] sm:$0x1]  ;;  %v5135_v16 = vld [vmem:[#allocation2 + $0x54] sm:$0xe] }
 0x115   : > { %v4490_v22 = vrot.slane %v4488_v23, 4  ;;  %v4494_v55 = vshll.u32 %v4344_v9, 16  ;;  %v6247_v37 = vrot.slane %v5132_v0, 9  ;;  %v7754_v27 = vadd.f32 %v6528_v3, %v1502_v2  ;;  %v6843_v23 = vld [vmem:[#allocation2 + $0xcc] sm:$0xff]  }
 0x116   : > { %v4482_v32 = vrot.slane %v4481_v21, 4  ;;  %v5246_v26 = vrot.slane %v5133_v10, 5  ;;  %v5249_v61 = vrot.slane %v5134_v29, 5  ;;  %v8478_v33 = vcombine.low %v7609_v19, %v7618_v41  ;;  %v6531_v10 = vpop.f32.mrf.mxu0  ;;  %v5136_v21 = vld [vmem:[#allocation2 + $0x58] sm:$0xf] }
 0x117   : > { %v7760_v53 = vadd.f32 %v1924_v39, %v1500_v48  ;;  %v4491_v58 = vor.u32 %v4490_v22, %v4486_v4  ;;  %v4496_v52 = vrot.slane %v4494_v55, 5  ;;  %v4499_v9 = vshrl.u32 %v4345_v54, 16 }
 0x118   : > { %6652 = vmatmul.mubr.msk.bf16.gmra.mxu1 %vm520_vm2, %v8478_v33  ;;  %v4487_v3 = vsel %vm7034_vm8, %v4482_v32, %v4486_v4  ;;  %v7768_v43 = vsel %vm7041_vm9, %v6247_v37, %v5246_v26  ;;  %v5248_v19 = vrot.slane %v5246_v26, 4  ;;  %v4502_v41 = vshll.u32 %v4345_v54, 16  ;;  %v5137_v4 = vld [vmem:[#allocation2 + $0x5c] sm:$0x1]  ;;  %v4348_v33 = vld [vmem:[#allocation2 + $0x60] sm:$0xf] }
 0x119   : > { %6691 = vmatprep.mubr.msk.bf16.mxu1 %vm520_vm2, %v7662_v40  ;;  %v4492_v0 = vrot.slane %v4491_v58, 4  ;;  %v4501_v29 = vrot.slane %v4499_v9, 4  ;;  %v4508_v2 = vshll.u32 %v4346_v49, 16  ;;  %v4512_v25 = vshrl.u32 %v4346_v49, 16  ;;  %v6497_v40 = vpop.f32.mrf.mxu1  ;;  %v1937_v49 = vpop.f32.mrf.mxu0  ;;  %6686 = vmatmul.mubr.msk.bf16.gmra.mxu0 %vm520_vm2, %v6843_v23 }
 0x11a   : > { %v7772_v48 = vsel %vm7041_vm9, %v5248_v19, %v5249_v61  ;;  %v4504_v39 = vrot.slane %v4502_v41, 5  ;;  %v4518_v22 = vshll.u32 %v4347_v51, 16  ;;  %v6248_v55 = vrot.slane %v5135_v16, 9 }
 0x11b   : > { %v4497_v37 = vsel %vm7034_vm8, %v4492_v0, %v4496_v52  ;;  %v1505_v32 = vadd.f32 %v6497_v40, %v7557_v17  ;;  %v4510_v26 = vrot.slane %v4508_v2, 5  ;;  %v4514_v9 = vrot.slane %v4512_v25, 4  ;;  %v1368_v41 = vpop.f32.mrf.mxu1  ;;  %v6532_v54 = vpop.f32.mrf.mxu0  ;;  %v4349_v25 = vld [vmem:[#allocation2 + $0x64] sm:$0xf] }
 0x11c   : > { %v7779_v58 = vcombine.low %v4487_v3, %v4497_v37  ;;  %v4505_v61 = vor.u32 %v4504_v39, %v4501_v29  ;;  %v4520_v19 = vrot.slane %v4518_v22, 5  ;;  %v5253_v16 = vrot.slane %v5136_v21, 5 }
 0x11d   : > { %v7782_v51 = vadd.f32 %v6531_v10, %v1505_v32  ;;  %v5256_v52 = vrot.slane %v5137_v4, 5  ;;  %v1503_v0 = vadd.f32 %v1368_v41, %v7573_v34  ;;  %v8479_v17 = vcombine.low %v7628_v50, %v7637_v47  ;;  %v6498_v29 = vpop.f32.mrf.mxu1  ;;  %v4350_v4 = vld [vmem:[#allocation2 + $0x68] sm:$0x1] }
 0x11e   : > { %v4506_v3 = vrot.slane %v4505_v61, 4  ;;  %v4515_v2 = vor.u32 %v4514_v9, %v4510_v26  ;;  %v4523_v40 = vshrl.u32 %v4348_v33, 16  ;;  %v4526_v39 = vshll.u32 %v4348_v33, 16  ;;  %v5138_v61 = vld [vmem:[#allocation2 + $0x60] sm:$0xe] }
 0x11f   : > { %6725 = vmatprep.mubr.msk.bf16.mxu0 %vm520_vm2, %v8479_v17  ;;  %v7793_v23 = vsel %vm7041_vm9, %v6248_v55, %v5253_v16  ;;  %v5255_v34 = vrot.slane %v5253_v16, 4  ;;  %v7795_v10 = vadd.f32 %v1937_v49, %v1503_v0  ;;  %v1506_v50 = vadd.f32 %v6498_v29, %v7592_v35  ;;  %v1371_v22 = vpop.f32.mrf.mxu1  ;;  %v1940_v35 = vpop.f32.mrf.mxu0  ;;  %v5140_v0 = vld [vmem:[#allocation2 + $0x68] sm:$0x1]  ;;  %v4351_v17 = vld [vmem:[#allocation2 + $0x6c] sm:$0xf] }
 0x120   : > { %6692 = vmatmul.mubr.msk.bf16.vlgmr.msra.gmra.mxu1 %vm520_vm2, %v7683_v36  ;;  %v4511_v47 = vsel %vm7034_vm8, %v4506_v3, %v4510_v26  ;;  %v4516_v21 = vrot.slane %v4515_v2, 4  ;;  %v4525_v37 = vrot.slane %v4523_v40, 4  ;;  %v4528_v36 = vrot.slane %v4526_v39, 5 }
 0x121   : > { %6695 = vmatprep.mubr.msk.bf16.mxu1 %vm520_vm2, %v7714_v14  ;;  %v7804_v55 = vsel %vm7041_vm9, %v5255_v34, %v5256_v52  ;;  %v7806_v32 = vadd.f32 %v6532_v54, %v1506_v50  ;;  %v1504_v49 = vadd.f32 %v1371_v22, %v7612_v38  ;;  %v4532_v33 = vshll.u32 %v4349_v25, 16  ;;  %v5139_v14 = vld [vmem:[#allocation2 + $0x64] sm:$0xf]  ;;  %v4352_v34 = vld [vmem:[#allocation2 + $0x70] sm:$0xf] }
 0x122   : > { %v4521_v26 = vsel %vm7034_vm8, %v4516_v21, %v4520_v19  ;;  %v6265_v9 = vcombine.low %v7793_v23, %v7804_v55  ;;  %v4529_v41 = vor.u32 %v4528_v36, %v4525_v37  ;;  %v4536_v16 = vshrl.u32 %v4349_v25, 16  ;;  %v6535_v21 = vpop.f32.mrf.mxu0  ;;  %v4353_v22 = vld [vmem:[#allocation2 + $0x74] sm:$0x1]  ;;  %v5149_v55 = vld [vmem:[#allocation2 + $0x8c] sm:$0x1] }
 0x123   : > { %v7813_v52 = vcombine.low %v4511_v47, %v4521_v26  ;;  %v7815_v54 = vadd.f32 %v1940_v35, %v1504_v49  ;;  %v4534_v3 = vrot.slane %v4532_v33, 5  ;;  %v4542_v38 = vshll.u32 %v4350_v4, 16  ;;  %v6501_v35 = vpop.f32.mrf.mxu1  ;;  %v5141_v33 = vld [vmem:[#allocation2 + $0x6c] sm:$0xe]  ;;  %v5142_v26 = vld [vmem:[#allocation2 + $0x70] sm:$0xf] }
 0x124   : > { %v4530_v2 = vrot.slane %v4529_v41, 4  ;;  %v4538_v29 = vrot.slane %v4536_v16, 4  ;;  %v6249_v40 = vrot.slane %v5138_v61, 9  ;;  %v5260_v39 = vrot.slane %v5139_v14, 5  ;;  %v1953_v41 = vpop.f32.mrf.mxu0 }
 0x125   : > { %v8480_v19 = vcombine.low %v7666_v11, %v7673_v12  ;;  %v4544_v50 = vrot.slane %v4542_v38, 5  ;;  %v5263_v25 = vrot.slane %v5140_v0, 5  ;;  %v4547_v47 = vshrl.u32 %v4351_v17, 16  ;;  %v5143_v38 = vld [vmem:[#allocation2 + $0x74] sm:$0x1] }
 0x126   : > { %v4550_v37 = vshll.u32 %v4351_v17, 16  ;;  %v8481_v36 = vcombine.low %v7701_v15, %v7710_v31  ;;  %v4535_v4 = vsel %vm7034_vm8, %v4530_v2, %v4534_v3  ;;  %v4539_v49 = vor.u32 %v4538_v29, %v4534_v3  ;;  %v1384_v2 = vpop.f32.mrf.mxu1 }
 0x127   : > { %6726 = vmatmul.mubr.msk.bf16.vlgmr.msra.gmra.mxu0 %vm520_vm2, %v8480_v19  ;;  %v7829_v11 = vsel %vm7041_vm9, %v6249_v40, %v5260_v39  ;;  %v5262_v12 = vrot.slane %v5260_v39, 4  ;;  %v1509_v61 = vadd.f32 %v6501_v35, %v7620_v45  ;;  %v4549_v14 = vrot.slane %v4547_v47, 4  ;;  %v6536_v39 = vpop.f32.mrf.mxu0  ;;  %v4354_v19 = vld [vmem:[#allocation2 + $0x78] sm:$0xf] }
 0x128   : > { %6729 = vmatprep.mubr.msk.bf16.mxu0 %vm520_vm2, %v8481_v36  ;;  %6696 = vmatmul.mubr.msk.bf16.gmra.mxu1 %vm520_vm2, %v7748_v46  ;;  %v4552_v15 = vrot.slane %v4550_v37, 5  ;;  %v4556_v31 = vshll.u32 %v4352_v34, 16  ;;  %v4540_v16 = vrot.slane %v4539_v49, 4  ;;  %v4560_v17 = vshrl.u32 %v4352_v34, 16  ;;  %v6502_v36 = vpop.f32.mrf.mxu1 }
 0x129   : > { %6699 = vmatprep.mubr.msk.bf16.mxu1 %vm520_vm2, %v7779_v58  ;;  %v7838_v0 = vsel %vm7041_vm9, %v5262_v12, %v5263_v25  ;;  %v4566_v3 = vshll.u32 %v4353_v22, 16  ;;  %v7842_v46 = vadd.f32 %v6535_v21, %v1509_v61  ;;  %v6250_v25 = vrot.slane %v5141_v33, 9 }
 0x12a   : > { %v4553_v29 = vor.u32 %v4552_v15, %v4549_v14  ;;  %v4558_v40 = vrot.slane %v4556_v31, 5  ;;  %v4545_v58 = vsel %vm7034_vm8, %v4540_v16, %v4544_v50  ;;  %v4562_v47 = vrot.slane %v4560_v17, 4  ;;  %v1387_v61 = vpop.f32.mrf.mxu1  ;;  %v4355_v14 = vld [vmem:[#allocation2 + $0x7c] sm:$0xf] }
 0x12b   : > { %v4568_v37 = vrot.slane %v4566_v3, 5  ;;  %v6217_v34 = vcombine.low %v4535_v4, %v4545_v58  ;;  %v5267_v49 = vrot.slane %v5142_v26, 5  ;;  %v5270_v12 = vrot.slane %v5143_v38, 5  ;;  %v4356_v26 = vld [vmem:[#allocation2 + $0x80] sm:$0x1] }
 0x12c   : > { %v4554_v22 = vrot.slane %v4553_v29, 4  ;;  %v4563_v35 = vor.u32 %v4562_v47, %v4558_v40  ;;  %v1507_v45 = vadd.f32 %v1384_v2, %v7630_v56  ;;  %v1510_v21 = vadd.f32 %v6502_v36, %v7640_v44  ;;  %v1956_v44 = vpop.f32.mrf.mxu0  ;;  %v5144_v38 = vld [vmem:[#allocation2 + $0x78] sm:$0xe]  ;;  %v5145_v2 = vld [vmem:[#allocation2 + $0x7c] sm:$0xf] }
 0x12d   : > { %v4571_v15 = vshrl.u32 %v4354_v19, 16  ;;  %v8482_v31 = vcombine.low %v7731_v42, %v7738_v60  ;;  %v7856_v4 = vsel %vm7041_vm9, %v6250_v25, %v5267_v49  ;;  %v5269_v33 = vrot.slane %v5267_v49, 4  ;;  %v399_v58 = vld [vmem:[%s7314_s14 + $0x14] sm:$0x1]  ;;  %v4357_v47 = vld [vmem:[#allocation2 + $0x84] sm:$0xf] }
 0x12e   : > { %v4559_v50 = vsel %vm7034_vm8, %v4554_v22, %v4558_v40  ;;  %v1508_v56 = vadd.f32 %v1387_v61, %v7656_v13  ;;  %v8483_v16 = vcombine.low %v7768_v43, %v7772_v48  ;;  %v4564_v42 = vrot.slane %v4563_v35, 4  ;;  %v5146_v40 = vld [vmem:[#allocation2 + $0x80] sm:$0x1]  ;;  %406 = vst.msk [vmem:[#allocation2 + $0xd4] sm:$0x1] %vm347_vm5, %v399_v58  ;;  %v6539_v49 = vpop.f32.mrf.mxu0 }
 0x12f   : > { %6730 = vmatmul.mubr.msk.bf16.gmra.mxu0 %vm520_vm2, %v8482_v31  ;;  %v7863_v60 = vadd.f32 %v1953_v41, %v1507_v45  ;;  %v7865_v17 = vadd.f32 %v6536_v39, %v1510_v21  ;;  %v4573_v3 = vrot.slane %v4571_v15, 4  ;;  %v7871_v13 = vsel %vm7041_vm9, %v5269_v33, %v5270_v12  ;;  %v4358_v12 = vld [vmem:[#allocation2 + $0x88] sm:$0xf]  ;;  %v6505_v15 = vpop.f32.mrf.mxu1 }
 0x130   : > { %6733 = vmatprep.mubr.msk.bf16.mxu0 %vm520_vm2, %v8483_v16  ;;  %6700 = vmatmul.mubr.msk.bf16.gmra.mxu1 %vm520_vm2, %v7813_v52  ;;  %v7873_v29 = vadd.f32 %v1956_v44, %v1508_v56  ;;  %v4574_v43 = vshll.u32 %v4354_v19, 16  ;;  %v4580_v48 = vshll.u32 %v4355_v14, 16  ;;  %v4569_v41 = vsel %vm7034_vm8, %v4564_v42, %v4568_v37  ;;  %v1969_v56 = vpop.f32.mrf.mxu0  ;;  %v4359_v16 = vld [vmem:[#allocation2 + $0x8c] sm:$0x1] }
 0x131   : > { %6703 = vmatprep.mubr.msk.bf16.mxu1 %vm520_vm2, %v6217_v34  ;;  %v6267_v45 = vcombine.low %v7856_v4, %v7871_v13  ;;  %v4584_v39 = vshrl.u32 %v4355_v14, 16  ;;  %v4590_v52 = vshll.u32 %v4356_v26, 16  ;;  %v6218_v25 = vcombine.low %v4559_v50, %v4569_v41 }
 0x132   : > { %v4576_v36 = vrot.slane %v4574_v43, 5  ;;  %v4582_v22 = vrot.slane %v4580_v48, 5  ;;  %v6251_v19 = vrot.slane %v5144_v38, 9  ;;  %v5274_v34 = vrot.slane %v5145_v2, 5  ;;  %v5147_v38 = vld [vmem:[#allocation2 + $0x84] sm:$0xe]  ;;  %v1400_v43 = vpop.f32.mrf.mxu1  ;;  %v6540_v58 = vpop.f32.mrf.mxu0 }
 0x133   : > { %v4586_v35 = vrot.slane %v4584_v39, 4  ;;  %v4592_v21 = vrot.slane %v4590_v52, 5  ;;  %v5277_v61 = vrot.slane %v5146_v40, 5  ;;  %v1513_v31 = vadd.f32 %v6505_v15, %v7443_v28  ;;  %v5148_v40 = vld [vmem:[#allocation2 + $0x88] sm:$0xf] }
 0x134   : > { %v4577_v37 = vor.u32 %v4576_v36, %v4573_v3  ;;  %v4595_v33 = vshrl.u32 %v4357_v47, 16  ;;  %v4598_v14 = vshll.u32 %v4357_v47, 16  ;;  %v5275_v50 = vsel %vm7041_vm9, %v6251_v19, %v5274_v34 }
 0x135   : > { %v4587_v44 = vor.u32 %v4586_v35, %v4582_v22  ;;  %v5276_v26 = vrot.slane %v5274_v34, 4  ;;  %v4604_v42 = vshll.u32 %v4358_v12, 16  ;;  %v7889_v2 = vadd.f32 %v6539_v49, %v1513_v31 }
 0x136   : > { %v4578_v3 = vrot.slane %v4577_v37, 4  ;;  %v4597_v28 = vrot.slane %v4595_v33, 4  ;;  %v4600_v48 = vrot.slane %v4598_v14, 5  ;;  %v8484_v41 = vcombine.low %v7829_v11, %v7838_v0 }
 0x137   : > { %6734 = vmatmul.mubr.msk.bf16.gmra.mxu0 %vm520_vm2, %v6265_v9  ;;  %v4588_v39 = vrot.slane %v4587_v44, 4  ;;  %v5278_v52 = vsel %vm7041_vm9, %v5276_v26, %v5277_v61  ;;  %v4606_v47 = vrot.slane %v4604_v42, 5  ;;  %v4608_v23 = vshrl.u32 %v4358_v12, 16  ;;  %v6506_v9 = vpop.f32.mrf.mxu1  ;;  %v4360_v61 = vld [vmem:[#allocation2 + $0x90] sm:$0xf]  ;;  %v1972_v44 = vpop.f32.mrf.mxu0 }
 0x138   : > { %6737 = vmatprep.mubr.msk.bf16.mxu0 %vm520_vm2, %v8484_v41  ;;  %6704 = vmatmul.mubr.msk.bf16.gmra.mxu1 %vm520_vm2, %v6218_v25  ;;  %v4583_v36 = vsel %vm7034_vm8, %v4578_v3, %v4582_v22  ;;  %v6268_v19 = vcombine.low %v5275_v50, %v5278_v52  ;;  %v4601_v49 = vor.u32 %v4600_v48, %v4597_v28  ;;  %v4614_v35 = vshll.u32 %v4359_v16, 16  ;;  %v4362_v3 = vld [vmem:[#allocation2 + $0x98] sm:$0x1] }
 0x139   : > { %v4593_v11 = vsel %vm7034_vm8, %v4588_v39, %v4592_v21  ;;  %v4610_v0 = vrot.slane %v4608_v23, 4  ;;  %v6252_v34 = vrot.slane %v5147_v38, 9  ;;  %v5281_v15 = vrot.slane %v5148_v40, 5  ;;  %v1403_v37 = vpop.f32.mrf.mxu1  ;;  %v4361_v38 = vld [vmem:[#allocation2 + $0x94] sm:$0xf] }
 0x13a   : > { %v6219_v31 = vcombine.low %v4583_v36, %v4593_v11  ;;  %v4602_v12 = vrot.slane %v4601_v49, 4  ;;  %v4616_v33 = vrot.slane %v4614_v35, 5  ;;  %v5284_v14 = vrot.slane %v5149_v55, 5  ;;  %v5152_v23 = vld [vmem:[#allocation2 + $0x98] sm:$0x1]  ;;  %v6543_v55 = vpop.f32.mrf.mxu0 }
 0x13b   : > { %v4611_v25 = vor.u32 %v4610_v0, %v4606_v47  ;;  %v7904_v22 = vsel %vm7041_vm9, %v6252_v34, %v5281_v15  ;;  %v5283_v50 = vrot.slane %v5281_v15, 4  ;;  %v1511_v26 = vadd.f32 %v1400_v43, %v7456_v59  ;;  %v5150_v59 = vld [vmem:[#allocation2 + $0x90] sm:$0xe]  ;;  %v5151_v43 = vld [vmem:[#allocation2 + $0x94] sm:$0xf]  ;;  %v6509_v4 = vpop.f32.mrf.mxu1 }
 0x13c   : > { %6707 = vmatprep.mubr.msk.bf16.mxu1 %vm520_vm2, %v6219_v31  ;;  %v4607_v21 = vsel %vm7034_vm8, %v4602_v12, %v4606_v47  ;;  %v1514_v16 = vadd.f32 %v6506_v9, %v7470_v5  ;;  %v1512_v42 = vadd.f32 %v1403_v37, %v7481_v18  ;;  %v4619_v28 = vshrl.u32 %v4360_v61, 16  ;;  %v1985_v0 = vpop.f32.mrf.mxu0  ;;  %v4364_v31 = vld [vmem:[#allocation2 + $0xa0] sm:$0xf] }
 0x13d   : > { %v4612_v48 = vrot.slane %v4611_v25, 4  ;;  %v5285_v40 = vsel %vm7041_vm9, %v5283_v50, %v5284_v14  ;;  %v7914_v41 = vadd.f32 %v1969_v56, %v1511_v26  ;;  %v4622_v39 = vshll.u32 %v4360_v61, 16  ;;  %v1416_v12 = vpop.f32.mrf.mxu1  ;;  %v4365_v25 = vld [vmem:[#allocation2 + $0xa4] sm:$0x1] }
 0x13e   : > { %v6269_v5 = vcombine.low %v7904_v22, %v5285_v40  ;;  %v7921_v18 = vadd.f32 %v6540_v58, %v1514_v16  ;;  %v7923_v52 = vadd.f32 %v1972_v44, %v1512_v42  ;;  %v4621_v47 = vrot.slane %v4619_v28, 4  ;;  %v4363_v58 = vld [vmem:[#allocation2 + $0x9c] sm:$0xf]  ;;  %v6544_v22 = vpop.f32.mrf.mxu0 }
 0x13f   : > { %6738 = vmatmul.mubr.msk.bf16.gmra.mxu0 %vm520_vm2, %v6267_v45  ;;  %v4617_v56 = vsel %vm7034_vm8, %v4612_v48, %v4616_v33  ;;  %v4624_v9 = vrot.slane %v4622_v39, 5  ;;  %v4628_v36 = vshll.u32 %v4361_v38, 16  ;;  %v4632_v49 = vshrl.u32 %v4361_v38, 16  ;;  %v5153_v42 = vld [vmem:[#allocation2 + $0x9c] sm:$0xe]  ;;  %v6510_v38 = vpop.f32.mrf.mxu1 }
 0x140   : > { %6741 = vmatprep.mubr.msk.bf16.mxu0 %vm520_vm2, %v6268_v19  ;;  %v6220_v13 = vcombine.low %v4607_v21, %v4617_v56  ;;  %v4638_v45 = vshll.u32 %v4362_v3, 16  ;;  %v6253_v35 = vrot.slane %v5150_v59, 9  ;;  %v5288_v11 = vrot.slane %v5151_v43, 5  ;;  %v5154_v39 = vld [vmem:[#allocation2 + $0xa0] sm:$0xf] }
 0x141   : > { %v4625_v34 = vor.u32 %v4624_v9, %v4621_v47  ;;  %v4630_v15 = vrot.slane %v4628_v36, 5  ;;  %v4634_v37 = vrot.slane %v4632_v49, 4  ;;  %v5291_v61 = vrot.slane %v5152_v23, 5  ;;  %v5155_v59 = vld [vmem:[#allocation2 + $0xa4] sm:$0x1] }
 0x142   : > { %6708 = vmatmul.mubr.msk.bf16.gmra.mxu1 %vm520_vm2, %v6220_v13  ;;  %v4640_v19 = vrot.slane %v4638_v45, 5  ;;  %v5289_v33 = vsel %vm7041_vm9, %v6253_v35, %v5288_v11  ;;  %v5290_v14 = vrot.slane %v5288_v11, 4  ;;  %v1517_v44 = vadd.f32 %v6509_v4, %v7493_v30  ;;  %v1988_v4 = vpop.f32.mrf.mxu0  ;;  %v1419_v11 = vpop.f32.mrf.mxu1 }
 0x143   : > { %v4626_v50 = vrot.slane %v4625_v34, 4  ;;  %v4635_v26 = vor.u32 %v4634_v37, %v4630_v15  ;;  %v4643_v21 = vshrl.u32 %v4363_v58, 16  ;;  %v4646_v16 = vshll.u32 %v4363_v58, 16  ;;  %v4366_v58 = vld [vmem:[#allocation2 + $0xa8] sm:$0xf] }
 0x144   : > { %v5292_v3 = vsel %vm7041_vm9, %v5290_v14, %v5291_v61  ;;  %v7934_v28 = vadd.f32 %v6543_v55, %v1517_v44  ;;  %v4652_v48 = vshll.u32 %v4364_v31, 16  ;;  %v4656_v40 = vshrl.u32 %v4364_v31, 16  ;;  %v8485_v14 = vld [vmem:[#allocation4_spill] sm:$0xff] }
 0x145   : > { %v4631_v30 = vsel %vm7034_vm8, %v4626_v50, %v4630_v15  ;;  %v4636_v43 = vrot.slane %v4635_v26, 4  ;;  %v6270_v47 = vcombine.low %v5289_v33, %v5292_v3  ;;  %v4645_v23 = vrot.slane %v4643_v21, 4  ;;  %v8486_v26 = vld [vmem:[#allocation5_spill] sm:$0xff] }
 0x146   : > { %v4648_v56 = vrot.slane %v4646_v16, 5  ;;  %v4654_v9 = vrot.slane %v4652_v48, 5  ;;  %v4658_v36 = vrot.slane %v4656_v40, 4  ;;  %v4662_v49 = vshll.u32 %v4365_v25, 16  ;;  %v4368_v16 = vld [vmem:[#allocation2 + $0xb0] sm:$0x1]  ;;  %v6547_v3 = vpop.f32.mrf.mxu0 }
 0x147   : > { %6742 = vmatmul.mubr.msk.bf16.gmra.mxu0 %vm520_vm2, %v6269_v5  ;;  %v4641_v55 = vsel %vm7034_vm8, %v4636_v43, %v4640_v19  ;;  %v6254_v13 = vrot.slane %v5153_v42, 9  ;;  %v5295_v45 = vrot.slane %v5154_v39, 5  ;;  %v5298_v35 = vrot.slane %v5155_v59, 5  ;;  %v4367_v19 = vld [vmem:[#allocation2 + $0xac] sm:$0xf]  ;;  %v6513_v59 = vpop.f32.mrf.mxu1 }
 0x148   : > { %6745 = vmatprep.mubr.msk.bf16.mxu0 %vm520_vm2, %v6270_v47  ;;  %v6221_v34 = vcombine.low %v4631_v30, %v4641_v55  ;;  %v4649_v15 = vor.u32 %v4648_v56, %v4645_v23  ;;  %v4659_v37 = vor.u32 %v4658_v36, %v4654_v9  ;;  %v4664_v61 = vrot.slane %v4662_v49, 5  ;;  %v5158_v56 = vld [vmem:[#allocation2 + $0xb0] sm:$0x1]  ;;  %v7960_v36 = vpop.f32.mrf.mxu0 }
 0x149   : > { %v5296_v5 = vsel %vm7041_vm9, %v6254_v13, %v5295_v45  ;;  %v5297_v31 = vrot.slane %v5295_v45, 4  ;;  %v1515_v33 = vadd.f32 %v1416_v12, %v7504_v6  ;;  %v1518_v44 = vadd.f32 %v6510_v38, %v8485_v14  ;;  %v5156_v12 = vld [vmem:[#allocation2 + $0xa8] sm:$0xe]  ;;  %v5157_v38 = vld [vmem:[#allocation2 + $0xac] sm:$0xf]  ;;  %v1432_v13 = vpop.f32.mrf.mxu1 }
 0x14a   : > { %6711 = vmatprep.mubr.msk.bf16.mxu1 %vm520_vm2, %v6221_v34  ;;  %v4650_v25 = vrot.slane %v4649_v15, 4  ;;  %v4660_v50 = vrot.slane %v4659_v37, 4  ;;  %v1516_v21 = vadd.f32 %v1419_v11, %v8486_v26  ;;  %v4667_v42 = vshrl.u32 %v4366_v58, 16  ;;  %v7963_v34 = vpop.f32.mrf.mxu0 }
 0x14b   : > { %v5299_v48 = vsel %vm7041_vm9, %v5297_v31, %v5298_v35  ;;  %v7950_v40 = vadd.f32 %v1985_v0, %v1515_v33  ;;  %v7952_v39 = vadd.f32 %v6544_v22, %v1518_v44  ;;  %v4670_v6 = vshll.u32 %v4366_v58, 16  ;;  %v4369_v58 = vld [vmem:[#allocation2 + $0xb4] sm:$0xf]  ;;  %v4370_v31 = vld [vmem:[#allocation2 + $0xb8] sm:$0xf]  ;;  %v6514_v33 = vpop.f32.mrf.mxu1 }
 0x14c   : > { %v4655_v30 = vsel %vm7034_vm8, %v4650_v25, %v4654_v9  ;;  %v4665_v43 = vsel %vm7034_vm8, %v4660_v50, %v4664_v61  ;;  %v6271_v47 = vcombine.low %v5296_v5, %v5299_v48  ;;  %v7958_v23 = vadd.f32 %v1988_v4, %v1516_v21  ;;  %v8487_v61 = vld [vmem:[#allocation6_spill] sm:$0xff]  ;;  %v4371_v50 = vld [vmem:[#allocation2 + $0xbc] sm:$0x1]  ;;  %v5159_v48 = vld [vmem:[#allocation2 + $0xb4] sm:$0xe] }
 0x14d   : > { %v6222_v0 = vcombine.low %v4655_v30, %v4665_v43  ;;  %v4669_v49 = vrot.slane %v4667_v42, 4  ;;  %v4672_v22 = vrot.slane %v4670_v6, 5  ;;  %v4676_v55 = vshll.u32 %v4367_v19, 16  ;;  %v5160_v30 = vld [vmem:[#allocation2 + $0xb8] sm:$0xf] }
 0x14e   : > { %v4680_v45 = vshrl.u32 %v4367_v19, 16  ;;  %v4686_v35 = vshll.u32 %v4368_v16, 16  ;;  %v6255_v11 = vrot.slane %v5156_v12, 9  ;;  %v5302_v9 = vrot.slane %v5157_v38, 5  ;;  %v5161_v43 = vld [vmem:[#allocation2 + $0xbc] sm:$0x1] }
 0x14f   : > { %6746 = vmatmul.mubr.msk.bf16.gmra.mxu0 %vm520_vm2, %v6271_v47  ;;  %6712 = vmatmul.mubr.msk.bf16.gmra.mxu1 %vm520_vm2, %v6222_v0  ;;  %v4673_v4 = vor.u32 %v4672_v22, %v4669_v49  ;;  %v4678_v15 = vrot.slane %v4676_v55, 5  ;;  %v5305_v37 = vrot.slane %v5158_v56, 5  ;;  %v1521_v5 = vadd.f32 %v6513_v59, %v8487_v61  ;;  %v2004_v47 = vpop.f32.mrf.mxu0 }
 0x150   : > { %v4682_v14 = vrot.slane %v4680_v45, 4  ;;  %v4688_v44 = vrot.slane %v4686_v35, 5  ;;  %v5303_v19 = vsel %vm7041_vm9, %v6255_v11, %v5302_v9  ;;  %v5304_v25 = vrot.slane %v5302_v9, 4 }
 0x151   : > { %v4674_v26 = vrot.slane %v4673_v4, 4  ;;  %v7969_v21 = vadd.f32 %v6547_v3, %v1521_v5  ;;  %v4691_v16 = vshrl.u32 %v4369_v58, 16  ;;  %v4694_v42 = vshll.u32 %v4369_v58, 16  ;;  %v1435_v3 = vpop.f32.mrf.mxu1 }
 0x152   : > { %v4683_v6 = vor.u32 %v4682_v14, %v4678_v15  ;;  %v5306_v12 = vsel %vm7041_vm9, %v5304_v25, %v5305_v37  ;;  %v4700_v38 = vshll.u32 %v4370_v31, 16  ;;  %v4704_v59 = vshrl.u32 %v4370_v31, 16  ;;  %v6551_v25 = vpop.f32.mrf.mxu0 }
 0x153   : > { %v4679_v56 = vsel %vm7034_vm8, %v4674_v26, %v4678_v15  ;;  %v6272_v0 = vcombine.low %v5303_v19, %v5306_v12  ;;  %v4693_v49 = vrot.slane %v4691_v16, 4  ;;  %v4696_v22 = vrot.slane %v4694_v42, 5  ;;  %v8488_v15 = vld [vmem:[#allocation7_spill] sm:$0xff]  ;;  %v4372_v19 = vld [vmem:[#allocation2 + $0xc0] sm:$0xf] }
 0x154   : > { %v4684_v55 = vrot.slane %v4683_v6, 4  ;;  %v4702_v45 = vrot.slane %v4700_v38, 5  ;;  %v4706_v35 = vrot.slane %v4704_v59, 4  ;;  %v4710_v11 = vshll.u32 %v4371_v50, 16  ;;  %v6517_v6 = vpop.f32.mrf.mxu1  ;;  %v8490_v38 = vld [vmem:[#allocation8_spill] sm:$0xff] }
 0x155   : > { %6749 = vmatprep.mubr.msk.bf16.mxu0 %vm520_vm2, %v6272_v0  ;;  %v4697_v9 = vor.u32 %v4696_v22, %v4693_v49  ;;  %v6256_v58 = vrot.slane %v5159_v48, 9  ;;  %v5309_v4 = vrot.slane %v5160_v30, 5  ;;  %v5312_v37 = vrot.slane %v5161_v43, 5  ;;  %v4373_v43 = vld [vmem:[#allocation2 + $0xc4] sm:$0xf] }
 0x156   : > { %v4689_v61 = vsel %vm7034_vm8, %v4684_v55, %v4688_v44  ;;  %v4707_v5 = vor.u32 %v4706_v35, %v4702_v45  ;;  %v4712_v31 = vrot.slane %v4710_v11, 5  ;;  %v1519_v14 = vadd.f32 %v1432_v13, %v8488_v15  ;;  %v8491_v44 = vld [vmem:[#allocation9_spill] sm:$0xff]  ;;  %v4374_v0 = vld [vmem:[#allocation2 + $0xc8] sm:$0x1]  ;;  %v7986_v13 = vpop.f32.mrf.mxu0  ;;  %v7993_v11 = vpop.f32.mrf.mxu1 }
 0x157   : > { %v6223_v26 = vcombine.low %v4679_v56, %v4689_v61  ;;  %v4698_v16 = vrot.slane %v4697_v9, 4  ;;  %v5310_v50 = vsel %vm7041_vm9, %v6256_v58, %v5309_v4  ;;  %v5311_v42 = vrot.slane %v5309_v4, 4  ;;  %v5163_v35 = vld [vmem:[#allocation2 + $0xc4] sm:$0xf]  ;;  %v5164_v4 = vld [vmem:[#allocation2 + $0xc8] sm:$0x1] }
 0x158   : > { %v4708_v12 = vrot.slane %v4707_v5, 4  ;;  %v7982_v48 = vadd.f32 %v7960_v36, %v1519_v14  ;;  %v1522_v59 = vadd.f32 %v6514_v33, %v8490_v38  ;;  %v1520_v30 = vadd.f32 %v1435_v3, %v8491_v44  ;;  %v5162_v36 = vld [vmem:[#allocation2 + $0xc0] sm:$0xe]  ;;  %v6518_v14 = vpop.f32.mrf.mxu1 }
 0x159   : > { %6715 = vmatprep.mubr.msk.bf16.mxu1 %vm520_vm2, %v6223_v26  ;;  %v4703_v56 = vsel %vm7034_vm8, %v4698_v16, %v4702_v45  ;;  %v5313_v49 = vsel %vm7041_vm9, %v5311_v42, %v5312_v37  ;;  %v4715_v22 = vshrl.u32 %v4372_v19, 16  ;;  %v4718_v55 = vshll.u32 %v4372_v19, 16  ;;  %v8002_v45 = vpop.f32.mrf.mxu0 }
 0x15a   : > { %8489 = vst [vmem:[#allocation4_spill] sm:$0xff] %v7982_v48  ;;  %v4713_v33 = vsel %vm7034_vm8, %v4708_v12, %v4712_v31  ;;  %v6273_v3 = vcombine.low %v5310_v50, %v5313_v49  ;;  %v7998_v9 = vadd.f32 %v7963_v34, %v1522_v59  ;;  %v8000_v58 = vadd.f32 %v2004_v47, %v1520_v30  ;;  %v4375_v50 = vld [vmem:[#allocation2 + $0xcc] sm:$0xf]  ;;  %v4376_v59 = vld [vmem:[#allocation2 + $0xd0] sm:$0xf]  ;;  %v1451_v44 = vpop.f32.mrf.mxu1 }
 0x15b   : > { %v6224_v61 = vcombine.low %v4703_v56, %v4713_v33  ;;  %v4717_v37 = vrot.slane %v4715_v22, 4  ;;  %v4720_v5 = vrot.slane %v4718_v55, 5  ;;  %v4724_v15 = vshll.u32 %v4373_v43, 16  ;;  %v8494_v12 = vld [vmem:[#allocation10_spill] sm:$0xff]  ;;  %v2020_v30 = vpop.f32.mrf.mxu0 }
 0x15c   : > { %8492 = vst [vmem:[#allocation5_spill] sm:$0xff] %v7998_v9  ;;  %8493 = vst [vmem:[#allocation6_spill] sm:$0xff] %v8000_v58  ;;  %6750 = vmatmul.mubr.msk.bf16.gmra.mxu0 %vm520_vm2, %v6273_v3  ;;  %v4728_v19 = vshrl.u32 %v4373_v43, 16  ;;  %v4734_v26 = vshll.u32 %v4374_v0, 16  ;;  %v6257_v16 = vrot.slane %v5162_v36, 9  ;;  %v5316_v31 = vrot.slane %v5163_v35, 5 }
 0x15d   : > { %6716 = vmatmul.mubr.msk.bf16.gmra.mxu1 %vm520_vm2, %v6224_v61  ;;  %v4721_v34 = vor.u32 %v4720_v5, %v4717_v37  ;;  %v4726_v47 = vrot.slane %v4724_v15, 5  ;;  %v5319_v42 = vrot.slane %v5164_v4, 5  ;;  %v1525_v38 = vadd.f32 %v6517_v6, %v8494_v12  ;;  %v5165_v0 = vld [vmem:[#allocation2 + $0xcc] sm:$0xe]  ;;  %v4377_v35 = vld [vmem:[#allocation2 + $0xd4] sm:$0x1]  ;;  %v6557_v61 = vpop.f32.mrf.mxu1 }
 0x15e   : > { %v4730_v56 = vrot.slane %v4728_v19, 4  ;;  %v4736_v49 = vrot.slane %v4734_v26, 5  ;;  %v5317_v22 = vsel %vm7041_vm9, %v6257_v16, %v5316_v31  ;;  %v5318_v43 = vrot.slane %v5316_v31, 4  ;;  %v5166_v15 = vld [vmem:[#allocation2 + $0xd0] sm:$0xf] }
 0x15f   : > { %v4722_v55 = vrot.slane %v4721_v34, 4  ;;  %v8009_v36 = vadd.f32 %v6551_v25, %v1525_v38  ;;  %v4739_v33 = vshrl.u32 %v4375_v50, 16  ;;  %v4742_v3 = vshll.u32 %v4375_v50, 16  ;;  %v5167_v19 = vld [vmem:[#allocation2 + $0xd4] sm:$0x1]  ;;  %v6591_v25 = vpop.f32.mrf.mxu0  ;;  %v2328_v12 = vpop.f32.mrf.mxu1 }
 0x160   : > { %v4731_v4 = vor.u32 %v4730_v56, %v4726_v47  ;;  %v5320_v6 = vsel %vm7041_vm9, %v5318_v43, %v5319_v42  ;;  %v4748_v37 = vshll.u32 %v4376_v59, 16  ;;  %v4752_v5 = vshrl.u32 %v4376_v59, 16 }
 0x161   : > { %8495 = vst [vmem:[#allocation7_spill] sm:$0xff] %v8009_v36  ;;  %v4727_v26 = vsel %vm7034_vm8, %v4722_v55, %v4726_v47  ;;  %v6274_v16 = vcombine.low %v5317_v22, %v5320_v6  ;;  %v4741_v31 = vrot.slane %v4739_v33, 4  ;;  %v4744_v34 = vrot.slane %v4742_v3, 5  ;;  %v3118_v9 = vpop.f32.mrf.mxu0  ;;  %v6558_v48 = vpop.f32.mrf.mxu1  ;;  %v8496_v33 = vld [vmem:[#allocation11_spill] sm:$0xff] }
 0x162   : > { %v4732_v38 = vrot.slane %v4731_v4, 4  ;;  %v4750_v36 = vrot.slane %v4748_v37, 5  ;;  %v4754_v50 = vrot.slane %v4752_v5, 4  ;;  %v4758_v58 = vshll.u32 %v4377_v35, 16 }
 0x163   : > { %6753 = vmatprep.mubr.msk.bf16.mxu0 %vm520_vm2, %v6274_v16  ;;  %v4745_v56 = vor.u32 %v4744_v34, %v4741_v31  ;;  %v6258_v42 = vrot.slane %v5165_v0, 9  ;;  %v5323_v43 = vrot.slane %v5166_v15, 5  ;;  %v5326_v59 = vrot.slane %v5167_v19, 5  ;;  %v6592_v5 = vpop.f32.mrf.mxu0  ;;  %v2331_v0 = vpop.f32.mrf.mxu1  ;;  %v8497_v16 = vld [vmem:[#allocation12_spill] sm:$0xff] }
 0x164   : > { %v4737_v47 = vsel %vm7034_vm8, %v4732_v38, %v4736_v49  ;;  %v4755_v22 = vor.u32 %v4754_v50, %v4750_v36  ;;  %v4760_v55 = vrot.slane %v4758_v58, 5  ;;  %v1523_v3 = vadd.f32 %v7993_v11, %v8496_v33  ;;  %v8498_v49 = vld [vmem:[#allocation13_spill] sm:$0xff] }
 0x165   : > { %v6225_v4 = vcombine.low %v4727_v26, %v4737_v47  ;;  %v4746_v6 = vrot.slane %v4745_v56, 4  ;;  %v5324_v35 = vsel %vm7041_vm9, %v6258_v42, %v5323_v43  ;;  %v5325_v37 = vrot.slane %v5323_v43, 4  ;;  %v3121_v50 = vpop.f32.mrf.mxu0  ;;  %v6561_v56 = vpop.f32.mrf.mxu1 }
 0x166   : > { %v4756_v15 = vrot.slane %v4755_v22, 4  ;;  %v8023_v19 = vadd.f32 %v7986_v13, %v1523_v3  ;;  %v1526_v31 = vadd.f32 %v6518_v14, %v8497_v16  ;;  %v1524_v34 = vadd.f32 %v1451_v44, %v8498_v49 }
 0x167   : > { %6719 = vmatprep.mubr.msk.bf16.mxu1 %vm520_vm2, %v6225_v4  ;;  %v4751_v11 = vsel %vm7034_vm8, %v4746_v6, %v4750_v36  ;;  %v5327_v58 = vsel %vm7041_vm9, %v5325_v37, %v5326_v59  ;;  %v2489_v26 = vadd.f32 %v6557_v61, %v7681_v8  ;;  %v2487_v38 = vadd.f32 %v2328_v12, %v7694_v62  ;;  %v2344_v61 = vpop.f32.mrf.mxu1 }
 0x168   : > { %v4761_v13 = vsel %vm7034_vm8, %v4756_v15, %v4760_v55  ;;  %v6275_v14 = vcombine.low %v5324_v35, %v5327_v58  ;;  %v8037_v44 = vadd.f32 %v8002_v45, %v1526_v31  ;;  %v8039_v42 = vadd.f32 %v2020_v30, %v1524_v34  ;;  %v6595_v30 = vpop.f32.mrf.mxu0 }
 0x169   : > { %v6226_v43 = vcombine.low %v4751_v11, %v4761_v13  ;;  %v8041_v36 = vadd.f32 %v6591_v25, %v2489_v26  ;;  %v8043_v7 = vadd.f32 %v3118_v9, %v2487_v38  ;;  %v2490_v8 = vadd.f32 %v6558_v48, %v7703_v20  ;;  %v6562_v25 = vpop.f32.mrf.mxu1 }
 0x16a   : > { %6754 = vmatmul.mubr.msk.bf16.gmra.mxu0 %vm520_vm2, %v6275_v14  ;;  %v2488_v62 = vadd.f32 %v2331_v0, %v7712_v63  ;;  %v2493_v1 = vadd.f32 %v6561_v56, %v7733_v24  ;;  %v2491_v12 = vadd.f32 %v2344_v61, %v7746_v57  ;;  %v2494_v20 = vadd.f32 %v6562_v25, %v7754_v27  ;;  %v3134_v48 = vpop.f32.mrf.mxu0 }
 0x16b   : > { %6720 = vmatmul.mubr.msk.bf16.gmra.mxu1 %vm520_vm2, %v6226_v43  ;;  %v8051_v45 = vadd.f32 %v6592_v5, %v2490_v8  ;;  %v2347_v47 = vpop.f32.mrf.mxu1 }
 0x16c   : > { %v8053_v59 = vadd.f32 %v3121_v50, %v2488_v62  ;;  %v8055_v9 = vadd.f32 %v6595_v30, %v2493_v1  ;;  %v8058_v22 = vadd.f32 %v3134_v48, %v2491_v12  ;;  %v2492_v63 = vadd.f32 %v2347_v47, %v7760_v53  ;;  %v6596_v24 = vpop.f32.mrf.mxu0 }
 0x16d   : > { %v6565_v57 = vpop.f32.mrf.mxu1  ;;  %v8061_v55 = vadd.f32 %v6596_v24, %v2494_v20 }
 0x16e   : > { %v2497_v33 = vadd.f32 %v6565_v57, %v7782_v51  ;;  %v3137_v3 = vpop.f32.mrf.mxu0 }
 0x16f   : > { %v2360_v4 = vpop.f32.mrf.mxu1  ;;  %v8064_v6 = vadd.f32 %v3137_v3, %v2492_v63 }
 0x170   : > { %v2495_v35 = vadd.f32 %v2360_v4, %v7795_v10  ;;  %v6599_v37 = vpop.f32.mrf.mxu0 }
 0x171   : > { %v6566_v27 = vpop.f32.mrf.mxu1  ;;  %v8067_v5 = vadd.f32 %v6599_v37, %v2497_v33 }
 0x172   : > { %v2498_v0 = vadd.f32 %v6566_v27, %v7806_v32  ;;  %v3150_v15 = vpop.f32.mrf.mxu0 }
 0x173   : > { %v2363_v53 = vpop.f32.mrf.mxu1  ;;  %v8070_v16 = vadd.f32 %v3150_v15, %v2495_v35 }
 0x174   : > { %v2496_v31 = vadd.f32 %v2363_v53, %v7815_v54  ;;  %v6600_v49 = vpop.f32.mrf.mxu0 }
 0x175   : > { %v6569_v51 = vpop.f32.mrf.mxu1  ;;  %v8073_v34 = vadd.f32 %v6600_v49, %v2498_v0 }
 0x176   : > { %v2501_v11 = vadd.f32 %v6569_v51, %v7842_v46  ;;  %v3153_v58 = vpop.f32.mrf.mxu0 }
 0x177   : > { %v2376_v10 = vpop.f32.mrf.mxu1  ;;  %v8076_v26 = vadd.f32 %v3153_v58, %v2496_v31 }
 0x178   : > { %v2499_v38 = vadd.f32 %v2376_v10, %v7863_v60  ;;  %v6603_v32 = vpop.f32.mrf.mxu0 }
 0x179   : > { %v6570_v50 = vpop.f32.mrf.mxu1  ;;  %v8080_v13 = vadd.f32 %v6603_v32, %v2501_v11 }
 0x17a   : > { %v2502_v56 = vadd.f32 %v6570_v50, %v7865_v17  ;;  %v3166_v54 = vpop.f32.mrf.mxu0  ;;  %v8508_v50 = vld [vmem:[#allocation4_spill] sm:$0xff] }
 0x17b   : > { %v2379_v14 = vpop.f32.mrf.mxu1  ;;  %v8083_v8 = vadd.f32 %v3166_v54, %v2499_v38 }
 0x17c   : > { %v2500_v43 = vadd.f32 %v2379_v14, %v7873_v29  ;;  %v6604_v46 = vpop.f32.mrf.mxu0  ;;  %v8510_v14 = vld [vmem:[#allocation5_spill] sm:$0xff] }
 0x17d   : > { %v6573_v61 = vpop.f32.mrf.mxu1  ;;  %v8086_v1 = vadd.f32 %v6604_v46, %v2502_v56 }
 0x17e   : > { %v2505_v62 = vadd.f32 %v6573_v61, %v7889_v2  ;;  %v3169_v60 = vpop.f32.mrf.mxu0 }
 0x17f   : > { %8499 = vst [vmem:[#allocation8_spill] sm:$0xff] %v8086_v1  ;;  %v2392_v12 = vpop.f32.mrf.mxu1  ;;  %v8089_v25 = vadd.f32 %v3169_v60, %v2500_v43 }
 0x180   : > { %v2503_v30 = vadd.f32 %v2392_v12, %v7914_v41  ;;  %v6607_v20 = vpop.f32.mrf.mxu0 }
 0x181   : > { %8500 = vst [vmem:[#allocation9_spill] sm:$0xff] %v8089_v25  ;;  %v6574_v17 = vpop.f32.mrf.mxu1  ;;  %v8092_v47 = vadd.f32 %v6607_v20, %v2505_v62 }
 0x182   : > { %v2506_v48 = vadd.f32 %v6574_v17, %v7921_v18  ;;  %v3182_v63 = vpop.f32.mrf.mxu0 }
 0x183   : > { %8501 = vst [vmem:[#allocation10_spill] sm:$0xff] %v8092_v47  ;;  %v2395_v29 = vpop.f32.mrf.mxu1  ;;  %v8095_v57 = vadd.f32 %v3182_v63, %v2503_v30 }
 0x184   : > { %v2504_v24 = vadd.f32 %v2395_v29, %v7923_v52  ;;  %v6608_v33 = vpop.f32.mrf.mxu0 }
 0x185   : > { %8502 = vst [vmem:[#allocation11_spill] sm:$0xff] %v8095_v57  ;;  %v6577_v2 = vpop.f32.mrf.mxu1  ;;  %v8098_v4 = vadd.f32 %v6608_v33, %v2506_v48 }
 0x186   : > { %v2509_v3 = vadd.f32 %v6577_v2, %v7934_v28  ;;  %v3185_v35 = vpop.f32.mrf.mxu0 }
 0x187   : > { %8503 = vst [vmem:[#allocation12_spill] sm:$0xff] %v8098_v4  ;;  %v2408_v41 = vpop.f32.mrf.mxu1  ;;  %v8101_v27 = vadd.f32 %v3185_v35, %v2504_v24 }
 0x188   : > { %v2507_v37 = vadd.f32 %v2408_v41, %v7950_v40  ;;  %v6611_v0 = vpop.f32.mrf.mxu0 }
 0x189   : > { %8504 = vst [vmem:[#allocation13_spill] sm:$0xff] %v8101_v27  ;;  %v6578_v18 = vpop.f32.mrf.mxu1  ;;  %v8104_v53 = vadd.f32 %v6611_v0, %v2509_v3 }
 0x18a   : > { %v2510_v15 = vadd.f32 %v6578_v18, %v7952_v39  ;;  %v3198_v31 = vpop.f32.mrf.mxu0 }
 0x18b   : > { %8505 = vst [vmem:[#allocation14_spill] sm:$0xff] %v8104_v53  ;;  %v2411_v52 = vpop.f32.mrf.mxu1  ;;  %v8107_v51 = vadd.f32 %v3198_v31, %v2507_v37 }
 0x18c   : > { %v2508_v49 = vadd.f32 %v2411_v52, %v7958_v23  ;;  %v6612_v11 = vpop.f32.mrf.mxu0  ;;  %v8511_v23 = vld [vmem:[#allocation6_spill] sm:$0xff] }
 0x18d   : > { %8506 = vst [vmem:[#allocation15_spill] sm:$0xff] %v8107_v51  ;;  %v6581_v28 = vpop.f32.mrf.mxu1  ;;  %v8110_v10 = vadd.f32 %v6612_v11, %v2510_v15 }
 0x18e   : > { %v2513_v58 = vadd.f32 %v6581_v28, %v7969_v21  ;;  %v3201_v38 = vpop.f32.mrf.mxu0  ;;  %v8512_v21 = vld [vmem:[#allocation7_spill] sm:$0xff] }
 0x18f   : > { %8507 = vst [vmem:[#allocation16_spill] sm:$0xff] %v8110_v10  ;;  %v2424_v40 = vpop.f32.mrf.mxu1  ;;  %v8113_v56 = vadd.f32 %v3201_v38, %v2508_v49 }
 0x190   : > { %v2511_v32 = vadd.f32 %v2424_v40, %v8508_v50 }
 0x191   : > { %8509 = vst [vmem:[#allocation4_spill] sm:$0xff] %v8113_v56  ;;  %v6582_v39 = vpop.f32.mrf.mxu1  ;;  %v6615_v61 = vpop.f32.mrf.mxu0 }
 0x192   : > { %v2514_v54 = vadd.f32 %v6582_v39, %v8510_v14  ;;  %v8117_v62 = vadd.f32 %v6615_v61, %v2513_v58 }
 0x193   : > { %v2427_v43 = vpop.f32.mrf.mxu1  ;;  %v3214_v60 = vpop.f32.mrf.mxu0 }
 0x194   : > { %v2512_v46 = vadd.f32 %v2427_v43, %v8511_v23  ;;  %v8120_v17 = vadd.f32 %v3214_v60, %v2511_v32 }
 0x195   : > { %v6585_v12 = vpop.f32.mrf.mxu1  ;;  %v6616_v48 = vpop.f32.mrf.mxu0 }
 0x196   : > { %v2517_v30 = vadd.f32 %v6585_v12, %v8512_v21  ;;  %v8123_v63 = vadd.f32 %v6616_v48, %v2514_v54 }
 0x197   : > { %v2440_v20 = vpop.f32.mrf.mxu1  ;;  %v3217_v2 = vpop.f32.mrf.mxu0 }
 0x198   : > { %v2515_v29 = vadd.f32 %v2440_v20, %v8023_v19  ;;  %v8126_v3 = vadd.f32 %v3217_v2, %v2512_v46 }
 0x199   : > { %v6586_v24 = vpop.f32.mrf.mxu1  ;;  %v6619_v35 = vpop.f32.mrf.mxu0 }
 0x19a   : > { %v2518_v33 = vadd.f32 %v6586_v24, %v8037_v44  ;;  %v8129_v18 = vadd.f32 %v6619_v35, %v2517_v30 }
 0x19b   : > { %v2443_v41 = vpop.f32.mrf.mxu1  ;;  %v3230_v15 = vpop.f32.mrf.mxu0 }
 0x19c   : > { %v2516_v37 = vadd.f32 %v2443_v41, %v8039_v42  ;;  %v8133_v52 = vadd.f32 %v3230_v15, %v2515_v29 }
 0x19d   : > { %v8131_v0 = vpop.f32.mrf.mxu1  ;;  %v6620_v31 = vpop.f32.mrf.mxu0 }
 0x19e   : > { %v8137_v49 = vadd.f32 %v6620_v31, %v2518_v33 }
 0x19f   : > { %v8135_v19 = vpop.f32.mrf.mxu1  ;;  %v3233_v44 = vpop.f32.mrf.mxu0 }
 0x1a0   : > { %v8141_v11 = vadd.f32 %v3233_v44, %v2516_v37 }
 0x1a1   : > { %v8139_v28 = vpop.f32.mrf.mxu1  ;;  %v8145_v42 = vpop.f32.mrf.mxu0 }
 0x1a3   : > { %v8143_v58 = vpop.f32.mrf.mxu1  ;;  %v8147_v40 = vpop.f32.mrf.mxu0 }
 0x1a5   : > { %v8149_v38 = vpop.f32.mrf.mxu1  ;;  %v8151_v50 = vpop.f32.mrf.mxu0 }
 0x1a7   : > { %v8153_v32 = vpop.f32.mrf.mxu1  ;;  %v8155_v39 = vpop.f32.mrf.mxu0 }
 0x1a9   : > { %v8157_v14 = vpop.f32.mrf.mxu1  ;;  %v8159_v54 = vpop.f32.mrf.mxu0 }
 0x1ab   : > { %v8161_v43 = vpop.f32.mrf.mxu1  ;;  %v8163_v61 = vpop.f32.mrf.mxu0 }
 0x1ad   : > { %v8165_v23 = vpop.f32.mrf.mxu1  ;;  %v8167_v46 = vpop.f32.mrf.mxu0 }
 0x1af   : > { %v8169_v12 = vpop.f32.mrf.mxu1  ;;  %v8171_v60 = vpop.f32.mrf.mxu0 }
 0x1b1   : > { %v8173_v21 = vpop.f32.mrf.mxu1  ;;  %v8175_v30 = vpop.f32.mrf.mxu0 }
 0x1b3   : > { %v8177_v20 = vpop.f32.mrf.mxu1  ;;  %v8179_v48 = vpop.f32.mrf.mxu0 }
 0x1b5   : > { %v8181_v29 = vpop.f32.mrf.mxu1  ;;  %v8183_v24 = vpop.f32.mrf.mxu0 }
 0x1b7   : > { %v8185_v2 = vpop.f32.mrf.mxu1  ;;  %v8187_v33 = vpop.f32.mrf.mxu0 }
 0x1b9   : > { %v8189_v41 = vpop.f32.mrf.mxu1  ;;  %v8191_v35 = vpop.f32.mrf.mxu0 }
 0x1ba   : > { %8513 = vst [vmem:[#allocation5_spill] sm:$0xff] %v8189_v41 }
 0x1bb   : > { %v8193_v37 = vpop.f32.mrf.mxu1  ;;  %v8195_v15 = vpop.f32.mrf.mxu0 }
 0x1bc   : > { %8514 = vst [vmem:[#allocation6_spill] sm:$0xff] %v8193_v37  ;;  %8515 = vst [vmem:[#allocation7_spill] sm:$0xff] %v8195_v15 }
 0x1bd   : > { %v8197_v31 = vpop.f32.mrf.mxu1  ;;  %v8199_v44 = vpop.f32.mrf.mxu0 }
 0x1be   : > { %8516 = vst [vmem:[#allocation17_spill] sm:$0xff] %v8197_v31  ;;  %8517 = vst [vmem:[#allocation18_spill] sm:$0xff] %v8199_v44 }
 0x1bf   : > { %v8201_v56 = vpop.f32.mrf.mxu1  ;;  %v8203_v10 = vpop.f32.mrf.mxu0 }
 0x1c0   : > { %8518 = vst [vmem:[#allocation19_spill] sm:$0xff] %v8201_v56  ;;  %8519 = vst [vmem:[#allocation20_spill] sm:$0xff] %v8203_v10 }
 0x1c1   : > { %v8205_v51 = vpop.f32.mrf.mxu1  ;;  %v8207_v53 = vpop.f32.mrf.mxu0 }
 0x1c2   : > { %8520 = vst [vmem:[#allocation21_spill] sm:$0xff] %v8205_v51  ;;  %8521 = vst [vmem:[#allocation22_spill] sm:$0xff] %v8207_v53 }
 0x1c3   : > { %v8209_v27 = vpop.f32.mrf.mxu1  ;;  %v8211_v4 = vpop.f32.mrf.mxu0 }
 0x1c4   : > { %8522 = vst [vmem:[#allocation23_spill] sm:$0xff] %v8209_v27  ;;  %8523 = vst [vmem:[#allocation24_spill] sm:$0xff] %v8211_v4 }
 0x1c5   : > { %v8213_v57 = vpop.f32.mrf.mxu1  ;;  %v8215_v47 = vpop.f32.mrf.mxu0 }
 0x1c6   : > { %8524 = vst [vmem:[#allocation25_spill] sm:$0xff] %v8213_v57  ;;  %8525 = vst [vmem:[#allocation26_spill] sm:$0xff] %v8215_v47 }
 0x1c7   : > { %v8217_v37 = vpop.f32.mrf.mxu1  ;;  %v8219_v31 = vpop.f32.mrf.mxu0 }
 0x1c8   : > { %8526 = vst [vmem:[#allocation27_spill] sm:$0xff] %v8217_v37  ;;  %8527 = vst [vmem:[#allocation28_spill] sm:$0xff] %v8219_v31 }
 0x1c9   : > { %v8221_v44 = vpop.f32.mrf.mxu1  ;;  %v8223_v56 = vpop.f32.mrf.mxu0 }
 0x1ca   : > { %8528 = vst [vmem:[#allocation29_spill] sm:$0xff] %v8221_v44  ;;  %8529 = vst [vmem:[#allocation30_spill] sm:$0xff] %v8223_v56 }
 0x1cb   : > { %v8225_v10 = vpop.f32.mrf.mxu1  ;;  %v8227_v51 = vpop.f32.mrf.mxu0 }
 0x1cc   : > { %8530 = vst [vmem:[#allocation31_spill] sm:$0xff] %v8225_v10  ;;  %8531 = vst [vmem:[#allocation32_spill] sm:$0xff] %v8227_v51 }
 0x1cd   : > { %v8230_v4 = vpop.f32.mrf.mxu0 }
 0x1ce   : > { %8532 = vst [vmem:[#allocation33_spill] sm:$0xff] %v8230_v4 }
 0x1cf   : > { %v8233_v25 = vpop.f32.mrf.mxu0 }
 0x1d0   : > { %v6649_v53 = vpop.f32.mrf.mxu1  ;;  %8533 = vst [vmem:[#allocation34_spill] sm:$0xff] %v8233_v25 }
 0x1d1   : > { %v3869_v27 = vadd.f32 %v6649_v53, %v8117_v62  ;;  %v6683_v44 = vpop.f32.mrf.mxu0 }
 0x1d2   : > { %v3780_v57 = vpop.f32.mrf.mxu1 }
 0x1d3   : > { %v3867_v47 = vadd.f32 %v3780_v57, %v8120_v17  ;;  %v8236_v56 = vadd.f32 %v6683_v44, %v3869_v27  ;;  %v4203_v51 = vpop.f32.mrf.mxu0  ;;  %v3845_v27 = vadd.f32 %v8131_v0, %v8041_v36  ;;  %v3846_v36 = vadd.f32 %v8139_v28, %v8051_v45 }
 0x1d4   : > { %v6650_v37 = vpop.f32.mrf.mxu1  ;;  %v3849_v45 = vadd.f32 %v8149_v38, %v8055_v9  ;;  %v3850_v9 = vadd.f32 %v8157_v14, %v8061_v55 }
 0x1d5   : > { %v3870_v31 = vadd.f32 %v6650_v37, %v8123_v63  ;;  %v8239_v1 = vadd.f32 %v4203_v51, %v3867_v47  ;;  %v6684_v62 = vpop.f32.mrf.mxu0  ;;  %v3843_v51 = vadd.f32 %v8135_v19, %v8043_v7  ;;  %v3844_v7 = vadd.f32 %v8143_v58, %v8053_v59  ;;  %v8275_v59 = vld [vmem:[%s8456_s3] ss:$0 sm:$0xff] }
 0x1d6   : > { %v3783_v15 = vpop.f32.mrf.mxu1 }
 0x1d7   : > { %v3868_v10 = vadd.f32 %v3783_v15, %v8126_v3  ;;  %v8242_v57 = vadd.f32 %v6684_v62, %v3870_v31  ;;  %v4206_v25 = vpop.f32.mrf.mxu0 }
 0x1d8   : > { %v6653_v41 = vpop.f32.mrf.mxu1 }
 0x1d9   : > { %v3873_v53 = vadd.f32 %v6653_v41, %v8129_v18  ;;  %v8247_v37 = vadd.f32 %v4206_v25, %v3868_v10  ;;  %v6687_v15 = vpop.f32.mrf.mxu0 }
 0x1da   : > { %v3796_v4 = vpop.f32.mrf.mxu1 }
 0x1db   : > { %v3871_v17 = vadd.f32 %v3796_v4, %v8133_v52  ;;  %v8252_v18 = vadd.f32 %v6687_v15, %v3873_v53  ;;  %v4219_v31 = vpop.f32.mrf.mxu0  ;;  %v4268_v52 = vadd.f32 %v8145_v42, %v3845_v27  ;;  %v4269_v42 = vadd.f32 %v8151_v50, %v3846_v36 }
 0x1dc   : > { %v6654_v63 = vpop.f32.mrf.mxu1  ;;  %v4272_v15 = vadd.f32 %v8159_v54, %v3849_v45 }
 0x1dd   : > { %v3874_v3 = vadd.f32 %v6654_v63, %v8137_v49  ;;  %v8258_v25 = vadd.f32 %v4219_v31, %v3871_v17  ;;  %v6688_v10 = vpop.f32.mrf.mxu0  ;;  %v4266_v49 = vadd.f32 %v8147_v40, %v3843_v51  ;;  %v3847_v17 = vadd.f32 %v8153_v32, %v8058_v22 }
 0x1de   : > { %v3799_v47 = vpop.f32.mrf.mxu1  ;;  %v4267_v63 = vadd.f32 %v8155_v39, %v3844_v7 }
 0x1df   : > { %v3872_v41 = vadd.f32 %v3799_v47, %v8141_v11  ;;  %v8263_v19 = vadd.f32 %v6688_v10, %v3874_v3  ;;  %v4222_v44 = vpop.f32.mrf.mxu0  ;;  %v4270_v51 = vadd.f32 %v8163_v61, %v3847_v17  ;;  %v4273_v61 = vadd.f32 %v8167_v46, %v3850_v9 }
 0x1e0   : > { %v6693_v4 = vpop.f32.mrf.mxu1 }
 0x1e1   : > { %v5058_v11 = vadd.f32 %v6693_v4, %v4268_v52  ;;  %v8268_v28 = vadd.f32 %v4222_v44, %v3872_v41  ;;  %v3848_v41 = vadd.f32 %v8161_v43, %v8064_v6  ;;  %v3853_v6 = vadd.f32 %v8165_v23, %v8067_v5 }
 0x1e2   : > { %v4897_v0 = vpop.f32.mrf.mxu1 }
 0x1e3   : > { %v5056_v62 = vadd.f32 %v4897_v0, %v4266_v49  ;;  %v4271_v7 = vadd.f32 %v8171_v60, %v3848_v41  ;;  %v4276_v45 = vadd.f32 %v8175_v30, %v3853_v6  ;;  %v3855_v41 = vadd.f32 %v8185_v2, %v8083_v8 }
 0x1e4   : > { %v6694_v53 = vpop.f32.mrf.mxu1 }
 0x1e5   : > { %v5059_v27 = vadd.f32 %v6694_v53, %v4269_v42 }
 0x1e6   : > { %v4900_v58 = vpop.f32.mrf.mxu1 }
 0x1e7   : > { %v6727_v40 = vpop.f32.mrf.mxu0  ;;  %v5057_v47 = vadd.f32 %v4900_v58, %v4267_v63 }
 0x1e8   : > { %v5624_v50 = vadd.f32 %v6727_v40, %v5058_v11  ;;  %v6697_v3 = vpop.f32.mrf.mxu1  ;;  %v3851_v11 = vadd.f32 %v8169_v12, %v8070_v16 }
 0x1e9   : > { %v5463_v38 = vpop.f32.mrf.mxu0  ;;  %v5062_v4 = vadd.f32 %v6697_v3, %v4272_v15  ;;  %v3857_v15 = vadd.f32 %v8181_v29, %v8080_v13 }
 0x1ea   : > { %v5727_v22 = vadd.f32 %v8275_v59, %v5624_v50  ;;  %v5622_v32 = vadd.f32 %v5463_v38, %v5056_v62  ;;  %v4913_v39 = vpop.f32.mrf.mxu1  ;;  %v3854_v62 = vadd.f32 %v8173_v21, %v8073_v34  ;;  %v4274_v63 = vadd.f32 %v8179_v48, %v3851_v11 }
 0x1eb   : > { %v6728_v55 = vpop.f32.mrf.mxu0  ;;  %v5060_v49 = vadd.f32 %v4913_v39, %v4270_v51  ;;  %v3852_v50 = vadd.f32 %v8177_v20, %v8076_v26 }
 0x1ec   : > { %v5759_v14 = vmax.f32 %v5727_v22, 0.0  ;;  %v5725_v54 = vadd.f32 %v8275_v59, %v5622_v32  ;;  %v5625_v31 = vadd.f32 %v6728_v55, %v5059_v27  ;;  %v6698_v52 = vpop.f32.mrf.mxu1  ;;  %v4277_v3 = vadd.f32 %v8183_v24, %v3854_v62  ;;  %v8541_v62 = vld [vmem:[#allocation17_spill] sm:$0xff] }
 0x1ed   : > { %v5466_v43 = vpop.f32.mrf.mxu0  ;;  %v5063_v42 = vadd.f32 %v6698_v52, %v4273_v61  ;;  %v4275_v51 = vadd.f32 %v8187_v33, %v3852_v50  ;;  %v8542_v50 = vld [vmem:[#allocation20_spill] sm:$0xff] }
 0x1ee   : > { %5792 = vst.msk [vmem:[%s8289_s27 + $0x10] sm:$0xff] %vm5789_vm10, %v5759_v14  ;;  %v5757_v36 = vmax.f32 %v5725_v54, 0.0  ;;  %v5728_v10 = vadd.f32 %v8275_v59, %v5625_v31  ;;  %v5623_v0 = vadd.f32 %v5466_v43, %v5057_v47  ;;  %v4916_v46 = vpop.f32.mrf.mxu1  ;;  %v4280_v54 = vadd.f32 %v8191_v35, %v3857_v15  ;;  %v8534_v31 = vld [vmem:[#allocation8_spill] sm:$0xff] }
 0x1ef   : > { %v6731_v44 = vpop.f32.mrf.mxu0  ;;  %v5061_v58 = vadd.f32 %v4916_v46, %v4271_v7 }
 0x1f0   : > { %5790 = vst.msk [vmem:[%s8289_s27] sm:$0xff] %vm5789_vm10, %v5757_v36  ;;  %v5760_v5 = vmax.f32 %v5728_v10, 0.0  ;;  %v5726_v23 = vadd.f32 %v8275_v59, %v5623_v0  ;;  %v5628_v53 = vadd.f32 %v6731_v44, %v5062_v4  ;;  %v6701_v60 = vpop.f32.mrf.mxu1  ;;  %v8535_v4 = vld [vmem:[#allocation5_spill] sm:$0xff]  ;;  %v8536_v36 = vld [vmem:[#allocation7_spill] sm:$0xff] }
 0x1f1   : > { %v5479_v17 = vpop.f32.mrf.mxu0  ;;  %v5066_v38 = vadd.f32 %v6701_v60, %v4276_v45  ;;  %v3858_v61 = vadd.f32 %v8535_v4, %v8534_v31  ;;  %v4278_v10 = vadd.f32 %v8536_v36, %v3855_v41  ;;  %v8537_v0 = vld [vmem:[#allocation9_spill] sm:$0xff]  ;;  %v8540_v45 = vld [vmem:[#allocation10_spill] sm:$0xff]  ;;  %v8550_v31 = vld [vmem:[#allocation23_spill] sm:$0xff] }
 0x1f2   : > { %5793 = vst.msk [vmem:[%s8289_s27 + $0x18] sm:$0xff] %vm5789_vm10, %v5760_v5  ;;  %v5758_v16 = vmax.f32 %v5726_v23, 0.0  ;;  %v5731_v12 = vadd.f32 %v8275_v59, %v5628_v53  ;;  %v5626_v40 = vadd.f32 %v5479_v17, %v5060_v49  ;;  %v4929_v30 = vpop.f32.mrf.mxu1  ;;  %v8538_v49 = vld [vmem:[#allocation6_spill] sm:$0xff]  ;;  %v3861_v17 = vadd.f32 %v8541_v62, %v8540_v45 }
 0x1f3   : > { %v6732_v27 = vpop.f32.mrf.mxu0  ;;  %v5064_v47 = vadd.f32 %v4929_v30, %v4274_v63  ;;  %v3856_v7 = vadd.f32 %v8538_v49, %v8537_v0  ;;  %v8539_v53 = vld [vmem:[#allocation18_spill] sm:$0xff]  ;;  %v8543_v30 = vld [vmem:[#allocation11_spill] sm:$0xff] }
 0x1f4   : > { %5791 = vst.msk [vmem:[%s8289_s27 + $0x8] sm:$0xff] %vm5789_vm10, %v5758_v16  ;;  %v5763_v34 = vmax.f32 %v5731_v12, 0.0  ;;  %v5729_v21 = vadd.f32 %v8275_v59, %v5626_v40  ;;  %v5629_v9 = vadd.f32 %v6732_v27, %v5063_v42  ;;  %v6702_v48 = vpop.f32.mrf.mxu1  ;;  %v4281_v42 = vadd.f32 %v8539_v53, %v3858_v61 }
 0x1f5   : > { %v5482_v22 = vpop.f32.mrf.mxu0  ;;  %v5067_v14 = vadd.f32 %v6702_v48, %v4277_v3  ;;  %v4279_v27 = vadd.f32 %v8542_v50, %v3856_v7  ;;  %v8554_v50 = vld [vmem:[#allocation25_spill] sm:$0xff] }
 0x1f6   : > { %5796 = vst.msk [vmem:[%s8289_s27 + $0x30] sm:$0xff] %vm5789_vm10, %v5763_v34  ;;  %v5761_v26 = vmax.f32 %v5729_v21, 0.0  ;;  %v5732_v20 = vadd.f32 %v8275_v59, %v5629_v9  ;;  %v5627_v32 = vadd.f32 %v5482_v22, %v5061_v58  ;;  %v4932_v24 = vpop.f32.mrf.mxu1  ;;  %v8544_v34 = vld [vmem:[#allocation19_spill] sm:$0xff] }
 0x1f7   : > { %v6735_v55 = vpop.f32.mrf.mxu0  ;;  %v5065_v52 = vadd.f32 %v4932_v24, %v4275_v51  ;;  %v3859_v21 = vadd.f32 %v8544_v34, %v8543_v30 }
 0x1f8   : > { %5794 = vst.msk [vmem:[%s8289_s27 + $0x20] sm:$0xff] %vm5789_vm10, %v5761_v26  ;;  %v5764_v13 = vmax.f32 %v5732_v20, 0.0  ;;  %v5730_v29 = vadd.f32 %v8275_v59, %v5627_v32  ;;  %v5632_v39 = vadd.f32 %v6735_v55, %v5066_v38  ;;  %v6705_v33 = vpop.f32.mrf.mxu1  ;;  %v8545_v26 = vld [vmem:[#allocation22_spill] sm:$0xff]  ;;  %v8546_v32 = vld [vmem:[#allocation12_spill] sm:$0xff] }
 0x1f9   : > { %v5495_v6 = vpop.f32.mrf.mxu0  ;;  %v5070_v23 = vadd.f32 %v6705_v33, %v4280_v54  ;;  %v4284_v20 = vadd.f32 %v8545_v26, %v3861_v17  ;;  %v8549_v54 = vld [vmem:[#allocation13_spill] sm:$0xff] }
 0x1fa   : > { %5797 = vst.msk [vmem:[%s8289_s27 + $0x38] sm:$0xff] %vm5789_vm10, %v5764_v13  ;;  %v5762_v8 = vmax.f32 %v5730_v29, 0.0  ;;  %v5735_v2 = vadd.f32 %v8275_v59, %v5632_v39  ;;  %v5630_v43 = vadd.f32 %v5495_v6, %v5064_v47  ;;  %v4945_v35 = vpop.f32.mrf.mxu1  ;;  %v8547_v47 = vld [vmem:[#allocation21_spill] sm:$0xff]  ;;  %v8548_v39 = vld [vmem:[#allocation24_spill] sm:$0xff]  ;;  %v3860_v4 = vadd.f32 %v8550_v31, %v8549_v54 }
 0x1fb   : > { %v6736_v11 = vpop.f32.mrf.mxu0  ;;  %v5068_v63 = vadd.f32 %v4945_v35, %v4278_v10  ;;  %v3862_v51 = vadd.f32 %v8547_v47, %v8546_v32  ;;  %v8557_v32 = vld [vmem:[#allocation30_spill] sm:$0xff]  ;;  %v8561_v31 = vld [vmem:[#allocation4_spill] sm:$0xff] }
 0x1fc   : > { %5795 = vst.msk [vmem:[%s8289_s27 + $0x28] sm:$0xff] %vm5789_vm10, %v5762_v8  ;;  %v5767_v44 = vmax.f32 %v5735_v2, 0.0  ;;  %v5733_v46 = vadd.f32 %v8275_v59, %v5630_v43  ;;  %v5633_v5 = vadd.f32 %v6736_v11, %v5067_v14  ;;  %v6706_v16 = vpop.f32.mrf.mxu1  ;;  %v4282_v14 = vadd.f32 %v8548_v39, %v3859_v21 }
 0x1fd   : > { %v5498_v60 = vpop.f32.mrf.mxu0  ;;  %v5071_v48 = vadd.f32 %v6706_v16, %v4281_v42 }
 0x1fe   : > { %5800 = vst.msk [vmem:[%s8289_s27 + $0x50] sm:$0xff] %vm5789_vm10, %v5767_v44  ;;  %v5765_v12 = vmax.f32 %v5733_v46, 0.0  ;;  %v5736_v40 = vadd.f32 %v8275_v59, %v5633_v5  ;;  %v5631_v58 = vadd.f32 %v5498_v60, %v5065_v52  ;;  %v4948_v38 = vpop.f32.mrf.mxu1  ;;  %v8551_v52 = vld [vmem:[#allocation26_spill] sm:$0xff]  ;;  %v8552_v44 = vld [vmem:[#allocation28_spill] sm:$0xff] }
 0x1ff   : > { %v6739_v9 = vpop.f32.mrf.mxu0  ;;  %v5069_v29 = vadd.f32 %v4948_v38, %v4279_v27  ;;  %v4285_v36 = vadd.f32 %v8551_v52, %v3862_v51  ;;  %v4283_v46 = vadd.f32 %v8552_v44, %v3860_v4  ;;  %v8555_v38 = vld [vmem:[#allocation15_spill] sm:$0xff]  ;;  %v8558_v51 = vld [vmem:[#allocation16_spill] sm:$0xff] }
 0x200   : > { %5798 = vst.msk [vmem:[%s8289_s27 + $0x40] sm:$0xff] %vm5789_vm10, %v5765_v12  ;;  %v5768_v3 = vmax.f32 %v5736_v40, 0.0  ;;  %v5734_v15 = vadd.f32 %v8275_v59, %v5631_v58  ;;  %v5636_v22 = vadd.f32 %v6739_v9, %v5070_v23  ;;  %v8562_v4 = vld [vmem:[#allocation31_spill] sm:$0xff] }
 0x201   : > { %v5511_v41 = vpop.f32.mrf.mxu0 }
 0x202   : > { %5801 = vst.msk [vmem:[%s8289_s27 + $0x58] sm:$0xff] %vm5789_vm10, %v5768_v3  ;;  %v5766_v55 = vmax.f32 %v5734_v15, 0.0  ;;  %v5739_v24 = vadd.f32 %v8275_v59, %v5636_v22  ;;  %v5634_v13 = vadd.f32 %v5511_v41, %v5068_v63  ;;  %v6709_v6 = vpop.f32.mrf.mxu1  ;;  %v8553_v63 = vld [vmem:[#allocation14_spill] sm:$0xff]  ;;  %v8556_v3 = vld [vmem:[#allocation27_spill] sm:$0xff]  ;;  %v8559_v41 = vld [vmem:[#allocation29_spill] sm:$0xff] }
 0x203   : > { %v6740_v61 = vpop.f32.mrf.mxu0  ;;  %v5074_v43 = vadd.f32 %v6709_v6, %v4284_v20  ;;  %v3865_v27 = vadd.f32 %v8554_v50, %v8553_v63  ;;  %v3863_v15 = vadd.f32 %v8556_v3, %v8555_v38 }
 0x204   : > { %5799 = vst.msk [vmem:[%s8289_s27 + $0x48] sm:$0xff] %vm5789_vm10, %v5766_v55  ;;  %v5771_v33 = vmax.f32 %v5739_v24, 0.0  ;;  %v5737_v8 = vadd.f32 %v8275_v59, %v5634_v13  ;;  %v5637_v2 = vadd.f32 %v6740_v61, %v5071_v48  ;;  %v4961_v0 = vpop.f32.mrf.mxu1  ;;  %v3866_v55 = vadd.f32 %v8559_v41, %v8558_v51 }
 0x205   : > { %v5514_v10 = vpop.f32.mrf.mxu0  ;;  %v5072_v35 = vadd.f32 %v4961_v0, %v4282_v14  ;;  %v4288_v47 = vadd.f32 %v8557_v32, %v3865_v27  ;;  %v8560_v14 = vld [vmem:[#allocation32_spill] sm:$0xff]  ;;  %v3864_v61 = vadd.f32 %v8562_v4, %v8561_v31 }
 0x206   : > { %5804 = vst.msk [vmem:[%s8289_s27 + $0x70] sm:$0xff] %vm5789_vm10, %v5771_v33  ;;  %v5769_v49 = vmax.f32 %v5737_v8, 0.0  ;;  %v5740_v7 = vadd.f32 %v8275_v59, %v5637_v2  ;;  %v5635_v11 = vadd.f32 %v5514_v10, %v5069_v29  ;;  %v6710_v23 = vpop.f32.mrf.mxu1  ;;  %v4286_v54 = vadd.f32 %v8560_v14, %v3863_v15 }
 0x207   : > { %v6743_v5 = vpop.f32.mrf.mxu0  ;;  %v5075_v62 = vadd.f32 %v6710_v23, %v4285_v36 }
 0x208   : > { %5802 = vst.msk [vmem:[%s8289_s27 + $0x60] sm:$0xff] %vm5789_vm10, %v5769_v49  ;;  %v5772_v53 = vmax.f32 %v5740_v7, 0.0  ;;  %v5738_v42 = vadd.f32 %v8275_v59, %v5635_v11  ;;  %v5640_v45 = vadd.f32 %v6743_v5, %v5074_v43  ;;  %v4964_v60 = vpop.f32.mrf.mxu1  ;;  %v8563_v43 = vld [vmem:[#allocation33_spill] sm:$0xff]  ;;  %v8564_v7 = vld [vmem:[#allocation34_spill] sm:$0xff] }
 0x209   : > { %v5527_v17 = vpop.f32.mrf.mxu0  ;;  %v5073_v58 = vadd.f32 %v4964_v60, %v4283_v46  ;;  %v4289_v52 = vadd.f32 %v8563_v43, %v3866_v55  ;;  %v4287_v11 = vadd.f32 %v8564_v7, %v3864_v61 }
 0x20a   : > { %5805 = vst.msk [vmem:[%s8289_s27 + $0x78] sm:$0xff] %vm5789_vm10, %v5772_v53  ;;  %v5770_v16 = vmax.f32 %v5738_v42, 0.0  ;;  %v5743_v12 = vadd.f32 %v8275_v59, %v5640_v45  ;;  %v5638_v40 = vadd.f32 %v5527_v17, %v5072_v35 }
 0x20b   : > { %v6744_v30 = vpop.f32.mrf.mxu0 }
 0x20c   : > { %5803 = vst.msk [vmem:[%s8289_s27 + $0x68] sm:$0xff] %vm5789_vm10, %v5770_v16  ;;  %v5775_v34 = vmax.f32 %v5743_v12, 0.0  ;;  %v5741_v21 = vadd.f32 %v8275_v59, %v5638_v40  ;;  %v5641_v9 = vadd.f32 %v6744_v30, %v5075_v62 }
 0x20d   : > { %v5530_v22 = vpop.f32.mrf.mxu0 }
 0x20e   : > { %5808 = vst.msk [vmem:[%s8289_s27 + $0x90] sm:$0xff] %vm5789_vm10, %v5775_v34  ;;  %v5773_v48 = vmax.f32 %v5741_v21, 0.0  ;;  %v5744_v26 = vadd.f32 %v8275_v59, %v5641_v9  ;;  %v5639_v20 = vadd.f32 %v5530_v22, %v5073_v58 }
 0x20f   : > { %v6747_v24 = vpop.f32.mrf.mxu0  ;;  %v6713_v39 = vpop.f32.mrf.mxu1 }
 0x210   : > { %5806 = vst.msk [vmem:[%s8289_s27 + $0x80] sm:$0xff] %vm5789_vm10, %v5773_v48  ;;  %v5776_v13 = vmax.f32 %v5744_v26, 0.0  ;;  %v5742_v29 = vadd.f32 %v8275_v59, %v5639_v20  ;;  %v5078_v6 = vadd.f32 %v6713_v39, %v4288_v47 }
 0x211   : > { %v5543_v33 = vpop.f32.mrf.mxu0  ;;  %v4977_v2 = vpop.f32.mrf.mxu1 }
 0x212   : > { %5809 = vst.msk [vmem:[%s8289_s27 + $0x98] sm:$0xff] %vm5789_vm10, %v5776_v13  ;;  %v5774_v8 = vmax.f32 %v5742_v29, 0.0  ;;  %v5644_v36 = vadd.f32 %v6747_v24, %v5078_v6  ;;  %v5076_v10 = vadd.f32 %v4977_v2, %v4286_v54 }
 0x213   : > { %v6714_v0 = vpop.f32.mrf.mxu1  ;;  %v6748_v49 = vpop.f32.mrf.mxu0 }
 0x214   : > { %5807 = vst.msk [vmem:[%s8289_s27 + $0x88] sm:$0xff] %vm5789_vm10, %v5774_v8  ;;  %v5747_v35 = vadd.f32 %v8275_v59, %v5644_v36  ;;  %v5642_v44 = vadd.f32 %v5543_v33, %v5076_v10  ;;  %v5079_v46 = vadd.f32 %v6714_v0, %v4289_v52 }
 0x215   : > { %v4980_v5 = vpop.f32.mrf.mxu1  ;;  %v5546_v62 = vpop.f32.mrf.mxu0 }
 0x216   : > { %v5779_v23 = vmax.f32 %v5747_v35, 0.0  ;;  %v5745_v53 = vadd.f32 %v8275_v59, %v5642_v44  ;;  %v5645_v42 = vadd.f32 %v6748_v49, %v5079_v46  ;;  %v5077_v45 = vadd.f32 %v4980_v5, %v4287_v11 }
 0x218   : > { %5812 = vst.msk [vmem:[%s8289_s27 + $0xb0] sm:$0xff] %vm5789_vm10, %v5779_v23  ;;  %v5777_v17 = vmax.f32 %v5745_v53, 0.0  ;;  %v5748_v60 = vadd.f32 %v8275_v59, %v5645_v42  ;;  %v5643_v16 = vadd.f32 %v5546_v62, %v5077_v45 }
 0x21a   : > { %5810 = vst.msk [vmem:[%s8289_s27 + $0xa0] sm:$0xff] %vm5789_vm10, %v5777_v17  ;;  %v5780_v12 = vmax.f32 %v5748_v60, 0.0  ;;  %v5746_v40 = vadd.f32 %v8275_v59, %v5643_v16 }
 0x21c   : > { %5813 = vst.msk [vmem:[%s8289_s27 + $0xb8] sm:$0xff] %vm5789_vm10, %v5780_v12  ;;  %v5778_v58 = vmax.f32 %v5746_v40, 0.0  ;;  %v6751_v63 = vpop.f32.mrf.mxu0 }
 0x21d   : > { %v6717_v50 = vpop.f32.mrf.mxu1 }
 0x21e   : > { %5811 = vst.msk [vmem:[%s8289_s27 + $0xa8] sm:$0xff] %vm5789_vm10, %v5778_v58  ;;  %v5082_v27 = vadd.f32 %v6717_v50, %v8236_v56  ;;  %v5559_v30 = vpop.f32.mrf.mxu0 }
 0x21f   : > { %v4993_v34 = vpop.f32.mrf.mxu1 }
 0x220   : > { %v5648_v21 = vadd.f32 %v6751_v63, %v5082_v27  ;;  %v5080_v9 = vadd.f32 %v4993_v34, %v8239_v1  ;;  %v6752_v3 = vpop.f32.mrf.mxu0 }
 0x221   : > { %v6718_v38 = vpop.f32.mrf.mxu1 }
 0x222   : > { %v5751_v15 = vadd.f32 %v8275_v59, %v5648_v21  ;;  %v5646_v22 = vadd.f32 %v5559_v30, %v5080_v9  ;;  %v5083_v48 = vadd.f32 %v6718_v38, %v8242_v57  ;;  %v5562_v51 = vpop.f32.mrf.mxu0 }
 0x223   : > { %v4996_v26 = vpop.f32.mrf.mxu1 }
 0x224   : > { %v5783_v20 = vmax.f32 %v5751_v15, 0.0  ;;  %v5749_v56 = vadd.f32 %v8275_v59, %v5646_v22  ;;  %v5649_v32 = vadd.f32 %v6752_v3, %v5083_v48  ;;  %v5081_v47 = vadd.f32 %v4996_v26, %v8247_v37 }
 0x226   : > { %5816 = vst.msk [vmem:[%s8289_s27 + $0xd0] sm:$0xff] %vm5789_vm10, %v5783_v20  ;;  %v5781_v1 = vmax.f32 %v5749_v56, 0.0  ;;  %v5752_v41 = vadd.f32 %v8275_v59, %v5649_v32  ;;  %v5647_v55 = vadd.f32 %v5562_v51, %v5081_v47 }
 0x228   : > { %5814 = vst.msk [vmem:[%s8289_s27 + $0xc0] sm:$0xff] %vm5789_vm10, %v5781_v1  ;;  %v5784_v24 = vmax.f32 %v5752_v41, 0.0  ;;  %v5750_v57 = vadd.f32 %v8275_v59, %v5647_v55 }
 0x22a   : > { %5817 = vst.msk [vmem:[%s8289_s27 + $0xd8] sm:$0xff] %vm5789_vm10, %v5784_v24  ;;  %v5782_v13 = vmax.f32 %v5750_v57, 0.0  ;;  %v6755_v29 = vpop.f32.mrf.mxu0 }
 0x22b   : > { %v6721_v39 = vpop.f32.mrf.mxu1 }
 0x22c   : > { %5815 = vst.msk [vmem:[%s8289_s27 + $0xc8] sm:$0xff] %vm5789_vm10, %v5782_v13  ;;  %v5086_v37 = vadd.f32 %v6721_v39, %v8252_v18  ;;  %v5575_v14 = vpop.f32.mrf.mxu0 }
 0x22d   : > { %v5009_v54 = vpop.f32.mrf.mxu1 }
 0x22e   : > { %v5652_v31 = vadd.f32 %v6755_v29, %v5086_v37  ;;  %v5084_v4 = vadd.f32 %v5009_v54, %v8258_v25  ;;  %v6756_v6 = vpop.f32.mrf.mxu0 }
 0x22f   : > { %v6722_v61 = vpop.f32.mrf.mxu1 }
 0x230   : > { %v5755_v33 = vadd.f32 %v8275_v59, %v5652_v31  ;;  %v5650_v8 = vadd.f32 %v5575_v14, %v5084_v4  ;;  %v5087_v2 = vadd.f32 %v6722_v61, %v8263_v19  ;;  %v5578_v0 = vpop.f32.mrf.mxu0 }
 0x231   : > { %v5012_v43 = vpop.f32.mrf.mxu1 }
 0x232   : > { %v5787_v52 = vmax.f32 %v5755_v33, 0.0  ;;  %v5753_v18 = vadd.f32 %v8275_v59, %v5650_v8  ;;  %v5653_v36 = vadd.f32 %v6756_v6, %v5087_v2  ;;  %v5085_v10 = vadd.f32 %v5012_v43, %v8268_v28 }
 0x234   : > { %5820 = vst.msk [vmem:[%s8289_s27 + $0xf0] sm:$0xff] %vm5789_vm10, %v5787_v52  ;;  %v5785_v25 = vmax.f32 %v5753_v18, 0.0  ;;  %v5756_v49 = vadd.f32 %v8275_v59, %v5653_v36  ;;  %v5651_v7 = vadd.f32 %v5578_v0, %v5085_v10 }
 0x236   : > { %5818 = vst.msk [vmem:[%s8289_s27 + $0xe0] sm:$0xff] %vm5789_vm10, %v5785_v25  ;;  %v5788_v11 = vmax.f32 %v5756_v49, 0.0  ;;  %v5754_v19 = vadd.f32 %v8275_v59, %v5651_v7 }
 0x238   : > { %5821 = vst.msk [vmem:[%s8289_s27 + $0xf8] sm:$0xff] %vm5789_vm10, %v5788_v11  ;;  %v5786_v35 = vmax.f32 %v5754_v19, 0.0 }
 0x23a   : > { %5819 = vst.msk [vmem:[%s8289_s27 + $0xe8] sm:$0xff] %vm5789_vm10, %v5786_v35 }
 0x23b PF: > { %s14_s17 = sadd.s32 1, %s6866_s17   ;;  %s8565_s15 = smov %s6862_s16 }
 0x23c   : > { %p11_p5 = scmp.ge.s32.totalorder %s14_s17, 4   ;;  %s8566_s16 = smov %s8568_s18 }
 0x23e   :  { %13 = sbr.rel (!%p11_p5) target bundleno = 2 (0x2), region = 80 }

</bundles_post_ra>
